<compile_context>
chip_gen: v7x
topology: tpu7x:2x2x1
jax: 0.10.0
libtpu: 0.0.40
codegen_flags: <defaults>
</compile_context>

<pallas_src>
import functools

import jax
import jax.numpy as jnp
import numpy as np
from jax.experimental import pallas as pl
from jax.experimental.pallas import tpu as pltpu

# ---------------- architecture constants (from the nn.Module) ----------------
C_IN = 4                  # in_channels
C1, K1, S1 = 4, 8, 2      # conv1
C2, K2, S2 = 8, 4, 2      # conv2
POOL_K = 22
N_OUT = 2

# Input length chosen so AvgPool1d(22) output length is exactly 1 (required by
# .squeeze(-1) + Linear(8, 2) in the reference forward).
L2 = POOL_K                      # conv2 output length = 22
L1 = (L2 - 1) * S2 + K2          # = 46
L0 = (L1 - 1) * S1 + K1          # = 98
HALF1 = L1 // 2                  # 23 conv1 output times of each parity

W_ROWS = 16                      # packed weight slab: (16, 128) f32

# --- mod-4 permutation of the input time axis --------------------------------
# With x's time axis reordered into residue-mod-4 blocks, the input times needed
# by conv1 tap k for even conv1-output times (4s+k) and odd output times (4s+2+k)
# each become a contiguous run of 23 permuted indices.  Consequently conv1 can be
# evaluated with its output columns already ordered [even t | odd t], which makes
# every conv2 (stride 2) tap a contiguous slice as well.
_PERM4 = np.concatenate([np.arange(r, L0, 4) for r in range(4)])          # len 98
_COUNTS4 = [len(range(r, L0, 4)) for r in range(4)]                       # 25,25,24,24
_OFF4 = (0,
         _COUNTS4[0],
         _COUNTS4[0] + _COUNTS4[1],
         _COUNTS4[0] + _COUNTS4[1] + _COUNTS4[2])
_STARTS_EVEN = tuple(_OFF4[k % 4] + k // 4 for k in range(K1))            # tap k, even t
_STARTS_ODD = tuple(_OFF4[(k + 2) % 4] + (k + 2) // 4 for k in range(K1))  # tap k, odd t


# ------------------------------- Pallas kernel -------------------------------
def _net_kernel(x_ref, w_ref, o_ref, *, tb):
    """x_ref: (C_IN, L0*tb) mod-4-time-permuted, lane = perm_time*tb + b.
    w_ref: (16,128) packed f32 weights/biases.  o_ref: (N_OUT, tb) probabilities."""
    f32 = jnp.float32
    cdt = x_ref.dtype
    n1 = HALF1 * tb                    # 23 * tb   (conv1 half width, lane aligned)
    n2 = L2 * tb                       # 22 * tb   (conv2 width, lane aligned)

    def conv_w(r0, r1, c0, c1):
        # Conv-weight MXU operand: cast to the activation dtype (bf16 path) so the
        # matmul stays narrow; f32 path is a no-op.
        blk = w_ref[r0:r1, c0:c1]
        return blk if cdt == f32 else blk.astype(cdt)

    # biases / output weights stay f32 (accuracy: not rounded to bf16)
    b1 = w_ref[0:C1, 32:33]                                          # (4, 1)
    b2 = w_ref[C1:C1 + C2, 16:17]                                    # (8, 1)
    wo = w_ref[C1 + C2:C1 + C2 + N_OUT, 0:C2]                        # (2, 8)
    bo = w_ref[C1 + C2:C1 + C2 + N_OUT, C2:C2 + 1]                   # (2, 1)

    # ---- conv1 (k=8, s=2) as 8 tap matmuls per output-parity half ----
    def conv1_half(starts):
        s0 = starts[0] * tb
        acc = jnp.dot(conv_w(0, C1, 0, C_IN), x_ref[:, s0:s0 + n1],
                      preferred_element_type=f32)
        for k in range(1, K1):
            s = starts[k] * tb
            acc = acc + jnp.dot(conv_w(0, C1, k * C_IN, (k + 1) * C_IN),
                                x_ref[:, s:s + n1],
                                preferred_element_type=f32)
        return jnp.maximum(acc + b1, 0.0)                            # (4, 23*tb) f32

    h1e = conv1_half(_STARTS_EVEN)     # conv1 output at even times
    h1o = conv1_half(_STARTS_ODD)      # conv1 output at odd times

    if cdt != f32:                     # bf16 path: keep MXU operands narrow
        h1e = h1e.astype(cdt)
        h1o = h1o.astype(cdt)

    # ---- conv2 (k=4, s=2): each tap is a contiguous lane slice ----
    taps2 = (h1e[:, 0:n2],             # h1[:, 2t'+0]
             h1o[:, 0:n2],             # h1[:, 2t'+1]
             h1e[:, tb:tb + n2],       # h1[:, 2t'+2]
             h1o[:, tb:tb + n2])       # h1[:, 2t'+3]
    acc2 = jnp.dot(conv_w(C1, C1 + C2, 0, C1), taps2[0], preferred_element_type=f32)
    for k in range(1, K2):
        acc2 = acc2 + jnp.dot(conv_w(C1, C1 + C2, k * C1, (k + 1) * C1), taps2[k],
                              preferred_element_type=f32)
    h2 = jnp.maximum(acc2 + b2, 0.0)                                 # (8, 22*tb) f32

    # ---- AvgPool1d(22): mean over the 22 time blocks (each block = tb lanes) ----
    pooled = h2[:, 0:tb]
    for t in range(1, L2):
        pooled = pooled + h2[:, t * tb:(t + 1) * tb]
    pooled = pooled * (1.0 / L2)                                     # (8, tb) f32

    # ---- Linear(8 -> 2) + softmax over the 2 classes (lane-dense over batch) ----
    logits = jnp.dot(wo, pooled, preferred_element_type=f32) + bo    # (2, tb)
    m = jnp.max(logits, axis=0, keepdims=True)
    e = jnp.exp(logits - m)
    denom = jnp.sum(e, axis=0, keepdims=True)
    # approx reciprocal (EUP): rows sum to 1 only up to ~1e-3 relative.
    o_ref[...] = e * pl.reciprocal(denom, approx=True)


# --------------------------------- wrapper -----------------------------------
def _round_up(x, m):
    return -(-x // m) * m


def _select_tb(batch, tb):
    """Pick the batch-tile (lane) width.

    Target 512 lanes (sweep 512-1024 for very large B); clamp to the padded batch
    for tiny B, and keep at least 2 grid tiles when B > 128 so v7x's two
    TensorCores both get a 'parallel' tile.
    """
    if tb is not None:
        if tb % 128 != 0:
            raise ValueError("tb must be a multiple of 128 (TPU lane width)")
        return tb
    tb = min(512, _round_up(batch, 128))
    if batch > 128 and -(-batch // tb) < 2:
        tb = _round_up(-(-batch // 2), 128)
    return tb


def _pack_weights(params):
    """Pack all weights/biases into one (16,128) lane-aligned f32 slab."""
    w1, b1, w2, b2, wo, bo = params
    f32 = jnp.float32
    w1_cols = jnp.transpose(w1, (0, 2, 1)).reshape(C1, K1 * C_IN)   # [c, 4k+ci] = w1[c,ci,k]
    w2_cols = jnp.transpose(w2, (0, 2, 1)).reshape(C2, K2 * C1)     # [c, 4k+c1] = w2[c,c1,k]
    slab = jnp.zeros((W_ROWS, 128), f32)
    slab = slab.at[0:C1, 0:K1 * C_IN].set(w1_cols.astype(f32))
    slab = slab.at[0:C1, 32:33].set(b1[:, None].astype(f32))
    slab = slab.at[C1:C1 + C2, 0:K2 * C1].set(w2_cols.astype(f32))
    slab = slab.at[C1:C1 + C2, 16:17].set(b2[:, None].astype(f32))
    slab = slab.at[C1 + C2:C1 + C2 + N_OUT, 0:C2].set(wo.astype(f32))
    slab = slab.at[C1 + C2:C1 + C2 + N_OUT, C2:C2 + 1].set(bo[:, None].astype(f32))
    return slab


def avgpool_convnet(x, params, *, tb=None, compute_dtype=jnp.float32, input_buffers=2):
    """Forward pass. x: (B, C_IN, 98) -> (B, 2) softmax probabilities.

    tb: samples per grid step (lane width, multiple of 128). None = auto (target
        512, >=2 tiles for v7x when B allows).
    compute_dtype: MXU activation/conv-weight dtype. bfloat16 is recommended on
        all generations (v5e/v6e/v7x) - biases, Linear(8,2) and all post-matmul
        elementwise math stay f32 regardless.
    input_buffers: pipeline depth for the x BlockSpec (set 3 on v5e if the trace
        shows exposed input DMA at large tb).
    """
    if x.ndim != 3 or x.shape[1] != C_IN or x.shape[2] != L0:
        raise ValueError(f"expected x of shape (B, {C_IN}, {L0}); got {x.shape}")
    B = x.shape[0]
    tb = _select_tb(B, tb)
    G = -(-B // tb)                    # ceil(B / tb) batch tiles
    Bp = G * tb

    # --- single fused relayout pass: cast -> pad -> (mod-4 gather ∘ transpose) ---
    # Written as one expression so XLA fuses the gather into the transpose copy and
    # materializes a single compute_dtype-width intermediate (lane = perm_time*tb + b).
    xc = x.astype(compute_dtype)
    if Bp != B:
        xc = jnp.pad(xc, ((0, Bp - B), (0, 0), (0, 0)))
    xc = jnp.transpose(xc.reshape(G, tb, C_IN, L0)[..., _PERM4],
                       (0, 2, 3, 1)).reshape(G, C_IN, L0 * tb)

    slab = _pack_weights(params)

    itemsize = np.dtype(compute_dtype).itemsize
    flops_per_sample = (2 * C1 * L1 * C_IN * K1      # conv1
                        + 2 * C2 * L2 * C1 * K2      # conv2
                        + C2 * L2                    # avg pool adds
                        + 2 * N_OUT * C2)            # linear
    cost = pl.CostEstimate(
        flops=int(Bp * flops_per_sample),
        transcendentals=int(Bp * (N_OUT + 1)),       # 2 exp + 1 reciprocal per sample
        bytes_accessed=int(Bp * C_IN * L0 * itemsize + Bp * N_OUT * 4 + W_ROWS * 128 * 4),
    )

    cp_kwargs = dict(dimension_semantics=("parallel",))  # batch tiles shard across TCs (v7x)
    # Per-step VMEM: sublane dim 4 pads to 8 in vregs; only set an explicit limit if
    # the footprint would exceed the default scoped limit (tb <= 1024 never triggers).
    vmem_est = (input_buffers * 8 * L0 * tb * itemsize       # x buffers (sublane-padded)
                + 2 * 8 * tb * 4                             # output buffers (padded)
                + 2 * W_ROWS * 128 * 4                       # weight slab buffers
                + (1 << 20))                                 # headroom for temporaries
    if vmem_est > 24 * 1024 * 1024:
        cp_kwargs["vmem_limit_bytes"] = int(min(vmem_est * 2, 60 * 1024 * 1024))

    x_spec_kwargs = {}
    if input_buffers != 2:
        x_spec_kwargs["pipeline_mode"] = pl.Buffered(input_buffers)

    kernel = functools.partial(_net_kernel, tb=tb)
    out = pl.pallas_call(
        kernel,
        out_shape=jax.ShapeDtypeStruct((G, N_OUT, tb), jnp.float32),
        grid=(G,),
        in_specs=[
            pl.BlockSpec((None, C_IN, L0 * tb), lambda g: (g, 0, 0), **x_spec_kwargs),
            pl.BlockSpec((W_ROWS, 128), lambda g: (0, 0)),
        ],
        out_specs=pl.BlockSpec((None, N_OUT, tb), lambda g: (g, 0, 0)),
        compiler_params=pltpu.CompilerParams(**cp_kwargs),
        cost_estimate=cost,
    )(xc, slab)

    return jnp.transpose(out, (0, 2, 1)).reshape(Bp, N_OUT)[:B]


# ------------------------- pure-JAX reference (check) -------------------------
def reference(x, params):
    w1, b1, w2, b2, wo, bo = params
    dn = ("NCH", "OIH", "NCH")
    h = jax.lax.conv_general_dilated(x, w1, (S1,), "VALID", dimension_numbers=dn)
    h = jax.nn.relu(h + b1[None, :, None])
    h = jax.lax.conv_general_dilated(h, w2, (S2,), "VALID", dimension_numbers=dn)
    h = jax.nn.relu(h + b2[None, :, None])
    h = jnp.mean(h, axis=-1)                     # AvgPool1d(22) over len-22 -> squeeze
    y = h @ wo.T + bo
    return jax.nn.softmax(y, axis=-1)


def init_params(key):
    ks = jax.random.split(key, 6)

    def u(k, shape, fan_in):
        bound = 1.0 / np.sqrt(fan_in)
        return jax.random.uniform(k, shape, jnp.float32, -bound, bound)

    w1 = u(ks[0], (C1, C_IN, K1), C_IN * K1)
    b1 = u(ks[1], (C1,), C_IN * K1)
    w2 = u(ks[2], (C2, C1, K2), C1 * K2)
    b2 = u(ks[3], (C2,), C1 * K2)
    wo = u(ks[4], (N_OUT, C2), C2)
    bo = u(ks[5], (N_OUT,), C2)
    return (w1, b1, w2, b2, wo, bo)


if __name__ == "__main__":
    key = jax.random.PRNGKey(0)
    k_param, k_x, k_x2 = jax.random.split(key, 3)
    params = init_params(k_param)

    # Small shape implied by the module: (B=2, C=4, L=98)  (98 => pool output len 1)
    x = jax.random.normal(k_x, (2, C_IN, L0), dtype=jnp.float32)
    y_ref = jax.block_until_ready(reference(x, params))

    # f32 path (exact up to approx-reciprocal softmax normalization)
    run_f32 = jax.jit(functools.partial(avgpool_convnet, compute_dtype=jnp.float32))
    y_f32 = jax.block_until_ready(run_f32(x, params))
    np.testing.assert_allclose(np.asarray(y_f32), np.asarray(y_ref), rtol=2e-3, atol=2e-3)

    # bf16 MXU-operand path (recommended on v5e/v6e/v7x; biases/linear/softmax stay f32)
    run_bf16 = jax.jit(functools.partial(avgpool_convnet, compute_dtype=jnp.bfloat16))
    y_bf16 = jax.block_until_ready(run_bf16(x, params))
    np.testing.assert_allclose(np.asarray(y_bf16), np.asarray(y_ref), rtol=5e-2, atol=5e-2)

    # Multi-tile / padded-batch path: B=300 -> auto tb=256, grid=(2,) (v7x gets 2 tiles).
    x_big = jax.random.normal(k_x2, (300, C_IN, L0), dtype=jnp.float32)
    y_big = jax.block_until_ready(run_f32(x_big, params))
    y_big_ref = jax.block_until_ready(reference(x_big, params))
    np.testing.assert_allclose(np.asarray(y_big), np.asarray(y_big_ref), rtol=2e-3, atol=2e-3)

    print("KERNEL_OK")
</pallas_src>

<mosaic_0001>
module attributes {stable_mosaic.version = 11 : i64} {
  func.func @_net_kernel(%arg0: i32, %arg1: memref<1x4x12544xf32, #tpu.memory_space<vmem>>, %arg2: memref<16x128xf32, #tpu.memory_space<vmem>>, %arg3: memref<1x2x128xf32, #tpu.memory_space<vmem>>) attributes {dimension_semantics = [#tpu.dimension_semantics<parallel>], iteration_bounds = array<i64: 1>, scalar_prefetch = 0 : i64, scratch_operands = 0 : i64, tpu.core_type = #tpu.core_type<tc>, window_params = [{transform_indices = @transform_0, window_bounds = array<i64: 1, 4, 12544>}, {pipeline_mode = #tpu.pipeline_mode<synchronous>, transform_indices = @transform_1, window_bounds = array<i64: 16, 128>}, {transform_indices = @transform_2, window_bounds = array<i64: 1, 2, 128>}]} {
    %c0 = arith.constant 0 : index
    %c32 = arith.constant 32 : index
    %0 = vector.load %arg2[%c0, %c32] : memref<16x128xf32, #tpu.memory_space<vmem>>, vector<4x1xf32>
    %c4 = arith.constant 4 : index
    %c16 = arith.constant 16 : index
    %1 = vector.load %arg2[%c4, %c16] : memref<16x128xf32, #tpu.memory_space<vmem>>, vector<8x1xf32>
    %c12 = arith.constant 12 : index
    %c0_0 = arith.constant 0 : index
    %2 = vector.load %arg2[%c12, %c0_0] : memref<16x128xf32, #tpu.memory_space<vmem>>, vector<2x8xf32>
    %c12_1 = arith.constant 12 : index
    %c8 = arith.constant 8 : index
    %3 = vector.load %arg2[%c12_1, %c8] : memref<16x128xf32, #tpu.memory_space<vmem>>, vector<2x1xf32>
    %c0_2 = arith.constant 0 : index
    %c0_3 = arith.constant 0 : index
    %4 = vector.load %arg2[%c0_2, %c0_3] : memref<16x128xf32, #tpu.memory_space<vmem>>, vector<4x4xf32>
    %c0_4 = arith.constant 0 : index
    %c0_5 = arith.constant 0 : index
    %c0_6 = arith.constant 0 : index
    %5 = vector.load %arg1[%c0_4, %c0_5, %c0_6] : memref<1x4x12544xf32, #tpu.memory_space<vmem>>, vector<1x4x2944xf32>
    %6 = vector.shape_cast %5 : vector<1x4x2944xf32> to vector<4x2944xf32>
    %cst = arith.constant dense<0.000000e+00> : vector<4x2944xf32>
    %7 = tpu.matmul %4, %6, %cst {dimension_numbers = #tpu.dot_dimension_numbers<[1], [0], [0], [1], [0, 0, 1, 1], [], []>} : vector<4x4xf32>, vector<4x2944xf32>, vector<4x2944xf32> -> vector<4x2944xf32>
    %c0_7 = arith.constant 0 : index
    %c4_8 = arith.constant 4 : index
    %8 = vector.load %arg2[%c0_7, %c4_8] : memref<16x128xf32, #tpu.memory_space<vmem>>, vector<4x4xf32>
    %c0_9 = arith.constant 0 : index
    %c0_10 = arith.constant 0 : index
    %c3200 = arith.constant 3200 : index
    %9 = vector.load %arg1[%c0_9, %c0_10, %c3200] : memref<1x4x12544xf32, #tpu.memory_space<vmem>>, vector<1x4x2944xf32>
    %10 = vector.shape_cast %9 : vector<1x4x2944xf32> to vector<4x2944xf32>
    %cst_11 = arith.constant dense<0.000000e+00> : vector<4x2944xf32>
    %11 = tpu.matmul %8, %10, %cst_11 {dimension_numbers = #tpu.dot_dimension_numbers<[1], [0], [0], [1], [0, 0, 1, 1], [], []>} : vector<4x4xf32>, vector<4x2944xf32>, vector<4x2944xf32> -> vector<4x2944xf32>
    %12 = arith.addf %7, %11 : vector<4x2944xf32>
    %c0_12 = arith.constant 0 : index
    %c8_13 = arith.constant 8 : index
    %13 = vector.load %arg2[%c0_12, %c8_13] : memref<16x128xf32, #tpu.memory_space<vmem>>, vector<4x4xf32>
    %c0_14 = arith.constant 0 : index
    %c0_15 = arith.constant 0 : index
    %c6400 = arith.constant 6400 : index
    %14 = vector.load %arg1[%c0_14, %c0_15, %c6400] : memref<1x4x12544xf32, #tpu.memory_space<vmem>>, vector<1x4x2944xf32>
    %15 = vector.shape_cast %14 : vector<1x4x2944xf32> to vector<4x2944xf32>
    %cst_16 = arith.constant dense<0.000000e+00> : vector<4x2944xf32>
    %16 = tpu.matmul %13, %15, %cst_16 {dimension_numbers = #tpu.dot_dimension_numbers<[1], [0], [0], [1], [0, 0, 1, 1], [], []>} : vector<4x4xf32>, vector<4x2944xf32>, vector<4x2944xf32> -> vector<4x2944xf32>
    %17 = arith.addf %12, %16 : vector<4x2944xf32>
    %c0_17 = arith.constant 0 : index
    %c12_18 = arith.constant 12 : index
    %18 = vector.load %arg2[%c0_17, %c12_18] : memref<16x128xf32, #tpu.memory_space<vmem>>, vector<4x4xf32>
    %c0_19 = arith.constant 0 : index
    %c0_20 = arith.constant 0 : index
    %c9472 = arith.constant 9472 : index
    %19 = vector.load %arg1[%c0_19, %c0_20, %c9472] : memref<1x4x12544xf32, #tpu.memory_space<vmem>>, vector<1x4x2944xf32>
    %20 = vector.shape_cast %19 : vector<1x4x2944xf32> to vector<4x2944xf32>
    %cst_21 = arith.constant dense<0.000000e+00> : vector<4x2944xf32>
    %21 = tpu.matmul %18, %20, %cst_21 {dimension_numbers = #tpu.dot_dimension_numbers<[1], [0], [0], [1], [0, 0, 1, 1], [], []>} : vector<4x4xf32>, vector<4x2944xf32>, vector<4x2944xf32> -> vector<4x2944xf32>
    %22 = arith.addf %17, %21 : vector<4x2944xf32>
    %c0_22 = arith.constant 0 : index
    %c16_23 = arith.constant 16 : index
    %23 = vector.load %arg2[%c0_22, %c16_23] : memref<16x128xf32, #tpu.memory_space<vmem>>, vector<4x4xf32>
    %c0_24 = arith.constant 0 : index
    %c0_25 = arith.constant 0 : index
    %c128 = arith.constant 128 : index
    %24 = vector.load %arg1[%c0_24, %c0_25, %c128] : memref<1x4x12544xf32, #tpu.memory_space<vmem>>, vector<1x4x2944xf32>
    %25 = vector.shape_cast %24 : vector<1x4x2944xf32> to vector<4x2944xf32>
    %cst_26 = arith.constant dense<0.000000e+00> : vector<4x2944xf32>
    %26 = tpu.matmul %23, %25, %cst_26 {dimension_numbers = #tpu.dot_dimension_numbers<[1], [0], [0], [1], [0, 0, 1, 1], [], []>} : vector<4x4xf32>, vector<4x2944xf32>, vector<4x2944xf32> -> vector<4x2944xf32>
    %27 = arith.addf %22, %26 : vector<4x2944xf32>
    %c0_27 = arith.constant 0 : index
    %c20 = arith.constant 20 : index
    %28 = vector.load %arg2[%c0_27, %c20] : memref<16x128xf32, #tpu.memory_space<vmem>>, vector<4x4xf32>
    %c0_28 = arith.constant 0 : index
    %c0_29 = arith.constant 0 : index
    %c3328 = arith.constant 3328 : index
    %29 = vector.load %arg1[%c0_28, %c0_29, %c3328] : memref<1x4x12544xf32, #tpu.memory_space<vmem>>, vector<1x4x2944xf32>
    %30 = vector.shape_cast %29 : vector<1x4x2944xf32> to vector<4x2944xf32>
    %cst_30 = arith.constant dense<0.000000e+00> : vector<4x2944xf32>
    %31 = tpu.matmul %28, %30, %cst_30 {dimension_numbers = #tpu.dot_dimension_numbers<[1], [0], [0], [1], [0, 0, 1, 1], [], []>} : vector<4x4xf32>, vector<4x2944xf32>, vector<4x2944xf32> -> vector<4x2944xf32>
    %32 = arith.addf %27, %31 : vector<4x2944xf32>
    %c0_31 = arith.constant 0 : index
    %c24 = arith.constant 24 : index
    %33 = vector.load %arg2[%c0_31, %c24] : memref<16x128xf32, #tpu.memory_space<vmem>>, vector<4x4xf32>
    %c0_32 = arith.constant 0 : index
    %c0_33 = arith.constant 0 : index
    %c6528 = arith.constant 6528 : index
    %34 = vector.load %arg1[%c0_32, %c0_33, %c6528] : memref<1x4x12544xf32, #tpu.memory_space<vmem>>, vector<1x4x2944xf32>
    %35 = vector.shape_cast %34 : vector<1x4x2944xf32> to vector<4x2944xf32>
    %cst_34 = arith.constant dense<0.000000e+00> : vector<4x2944xf32>
    %36 = tpu.matmul %33, %35, %cst_34 {dimension_numbers = #tpu.dot_dimension_numbers<[1], [0], [0], [1], [0, 0, 1, 1], [], []>} : vector<4x4xf32>, vector<4x2944xf32>, vector<4x2944xf32> -> vector<4x2944xf32>
    %37 = arith.addf %32, %36 : vector<4x2944xf32>
    %c0_35 = arith.constant 0 : index
    %c28 = arith.constant 28 : index
    %38 = vector.load %arg2[%c0_35, %c28] : memref<16x128xf32, #tpu.memory_space<vmem>>, vector<4x4xf32>
    %c0_36 = arith.constant 0 : index
    %c0_37 = arith.constant 0 : index
    %c9600 = arith.constant 9600 : index
    %39 = vector.load %arg1[%c0_36, %c0_37, %c9600] : memref<1x4x12544xf32, #tpu.memory_space<vmem>>, vector<1x4x2944xf32>
    %40 = vector.shape_cast %39 : vector<1x4x2944xf32> to vector<4x2944xf32>
    %cst_38 = arith.constant dense<0.000000e+00> : vector<4x2944xf32>
    %41 = tpu.matmul %38, %40, %cst_38 {dimension_numbers = #tpu.dot_dimension_numbers<[1], [0], [0], [1], [0, 0, 1, 1], [], []>} : vector<4x4xf32>, vector<4x2944xf32>, vector<4x2944xf32> -> vector<4x2944xf32>
    %42 = arith.addf %37, %41 : vector<4x2944xf32>
    %43 = vector.broadcast %0 : vector<4x1xf32> to vector<4x2944xf32>
    %44 = arith.addf %42, %43 : vector<4x2944xf32>
    %cst_39 = arith.constant 0.000000e+00 : f32
    %45 = vector.broadcast %cst_39 : f32 to vector<4x2944xf32>
    %46 = arith.maximumf %44, %45 : vector<4x2944xf32>
    %c0_40 = arith.constant 0 : index
    %c0_41 = arith.constant 0 : index
    %47 = vector.load %arg2[%c0_40, %c0_41] : memref<16x128xf32, #tpu.memory_space<vmem>>, vector<4x4xf32>
    %c0_42 = arith.constant 0 : index
    %c0_43 = arith.constant 0 : index
    %c6400_44 = arith.constant 6400 : index
    %48 = vector.load %arg1[%c0_42, %c0_43, %c6400_44] : memref<1x4x12544xf32, #tpu.memory_space<vmem>>, vector<1x4x2944xf32>
    %49 = vector.shape_cast %48 : vector<1x4x2944xf32> to vector<4x2944xf32>
    %cst_45 = arith.constant dense<0.000000e+00> : vector<4x2944xf32>
    %50 = tpu.matmul %47, %49, %cst_45 {dimension_numbers = #tpu.dot_dimension_numbers<[1], [0], [0], [1], [0, 0, 1, 1], [], []>} : vector<4x4xf32>, vector<4x2944xf32>, vector<4x2944xf32> -> vector<4x2944xf32>
    %c0_46 = arith.constant 0 : index
    %c4_47 = arith.constant 4 : index
    %51 = vector.load %arg2[%c0_46, %c4_47] : memref<16x128xf32, #tpu.memory_space<vmem>>, vector<4x4xf32>
    %c0_48 = arith.constant 0 : index
    %c0_49 = arith.constant 0 : index
    %c9472_50 = arith.constant 9472 : index
    %52 = vector.load %arg1[%c0_48, %c0_49, %c9472_50] : memref<1x4x12544xf32, #tpu.memory_space<vmem>>, vector<1x4x2944xf32>
    %53 = vector.shape_cast %52 : vector<1x4x2944xf32> to vector<4x2944xf32>
    %cst_51 = arith.constant dense<0.000000e+00> : vector<4x2944xf32>
    %54 = tpu.matmul %51, %53, %cst_51 {dimension_numbers = #tpu.dot_dimension_numbers<[1], [0], [0], [1], [0, 0, 1, 1], [], []>} : vector<4x4xf32>, vector<4x2944xf32>, vector<4x2944xf32> -> vector<4x2944xf32>
    %55 = arith.addf %50, %54 : vector<4x2944xf32>
    %c0_52 = arith.constant 0 : index
    %c8_53 = arith.constant 8 : index
    %56 = vector.load %arg2[%c0_52, %c8_53] : memref<16x128xf32, #tpu.memory_space<vmem>>, vector<4x4xf32>
    %c0_54 = arith.constant 0 : index
    %c0_55 = arith.constant 0 : index
    %c128_56 = arith.constant 128 : index
    %57 = vector.load %arg1[%c0_54, %c0_55, %c128_56] : memref<1x4x12544xf32, #tpu.memory_space<vmem>>, vector<1x4x2944xf32>
    %58 = vector.shape_cast %57 : vector<1x4x2944xf32> to vector<4x2944xf32>
    %cst_57 = arith.constant dense<0.000000e+00> : vector<4x2944xf32>
    %59 = tpu.matmul %56, %58, %cst_57 {dimension_numbers = #tpu.dot_dimension_numbers<[1], [0], [0], [1], [0, 0, 1, 1], [], []>} : vector<4x4xf32>, vector<4x2944xf32>, vector<4x2944xf32> -> vector<4x2944xf32>
    %60 = arith.addf %55, %59 : vector<4x2944xf32>
    %c0_58 = arith.constant 0 : index
    %c12_59 = arith.constant 12 : index
    %61 = vector.load %arg2[%c0_58, %c12_59] : memref<16x128xf32, #tpu.memory_space<vmem>>, vector<4x4xf32>
    %c0_60 = arith.constant 0 : index
    %c0_61 = arith.constant 0 : index
    %c3328_62 = arith.constant 3328 : index
    %62 = vector.load %arg1[%c0_60, %c0_61, %c3328_62] : memref<1x4x12544xf32, #tpu.memory_space<vmem>>, vector<1x4x2944xf32>
    %63 = vector.shape_cast %62 : vector<1x4x2944xf32> to vector<4x2944xf32>
    %cst_63 = arith.constant dense<0.000000e+00> : vector<4x2944xf32>
    %64 = tpu.matmul %61, %63, %cst_63 {dimension_numbers = #tpu.dot_dimension_numbers<[1], [0], [0], [1], [0, 0, 1, 1], [], []>} : vector<4x4xf32>, vector<4x2944xf32>, vector<4x2944xf32> -> vector<4x2944xf32>
    %65 = arith.addf %60, %64 : vector<4x2944xf32>
    %c0_64 = arith.constant 0 : index
    %c16_65 = arith.constant 16 : index
    %66 = vector.load %arg2[%c0_64, %c16_65] : memref<16x128xf32, #tpu.memory_space<vmem>>, vector<4x4xf32>
    %c0_66 = arith.constant 0 : index
    %c0_67 = arith.constant 0 : index
    %c6528_68 = arith.constant 6528 : index
    %67 = vector.load %arg1[%c0_66, %c0_67, %c6528_68] : memref<1x4x12544xf32, #tpu.memory_space<vmem>>, vector<1x4x2944xf32>
    %68 = vector.shape_cast %67 : vector<1x4x2944xf32> to vector<4x2944xf32>
    %cst_69 = arith.constant dense<0.000000e+00> : vector<4x2944xf32>
    %69 = tpu.matmul %66, %68, %cst_69 {dimension_numbers = #tpu.dot_dimension_numbers<[1], [0], [0], [1], [0, 0, 1, 1], [], []>} : vector<4x4xf32>, vector<4x2944xf32>, vector<4x2944xf32> -> vector<4x2944xf32>
    %70 = arith.addf %65, %69 : vector<4x2944xf32>
    %c0_70 = arith.constant 0 : index
    %c20_71 = arith.constant 20 : index
    %71 = vector.load %arg2[%c0_70, %c20_71] : memref<16x128xf32, #tpu.memory_space<vmem>>, vector<4x4xf32>
    %c0_72 = arith.constant 0 : index
    %c0_73 = arith.constant 0 : index
    %c9600_74 = arith.constant 9600 : index
    %72 = vector.load %arg1[%c0_72, %c0_73, %c9600_74] : memref<1x4x12544xf32, #tpu.memory_space<vmem>>, vector<1x4x2944xf32>
    %73 = vector.shape_cast %72 : vector<1x4x2944xf32> to vector<4x2944xf32>
    %cst_75 = arith.constant dense<0.000000e+00> : vector<4x2944xf32>
    %74 = tpu.matmul %71, %73, %cst_75 {dimension_numbers = #tpu.dot_dimension_numbers<[1], [0], [0], [1], [0, 0, 1, 1], [], []>} : vector<4x4xf32>, vector<4x2944xf32>, vector<4x2944xf32> -> vector<4x2944xf32>
    %75 = arith.addf %70, %74 : vector<4x2944xf32>
    %c0_76 = arith.constant 0 : index
    %c24_77 = arith.constant 24 : index
    %76 = vector.load %arg2[%c0_76, %c24_77] : memref<16x128xf32, #tpu.memory_space<vmem>>, vector<4x4xf32>
    %c0_78 = arith.constant 0 : index
    %c0_79 = arith.constant 0 : index
    %c256 = arith.constant 256 : index
    %77 = vector.load %arg1[%c0_78, %c0_79, %c256] : memref<1x4x12544xf32, #tpu.memory_space<vmem>>, vector<1x4x2944xf32>
    %78 = vector.shape_cast %77 : vector<1x4x2944xf32> to vector<4x2944xf32>
    %cst_80 = arith.constant dense<0.000000e+00> : vector<4x2944xf32>
    %79 = tpu.matmul %76, %78, %cst_80 {dimension_numbers = #tpu.dot_dimension_numbers<[1], [0], [0], [1], [0, 0, 1, 1], [], []>} : vector<4x4xf32>, vector<4x2944xf32>, vector<4x2944xf32> -> vector<4x2944xf32>
    %80 = arith.addf %75, %79 : vector<4x2944xf32>
    %c0_81 = arith.constant 0 : index
    %c28_82 = arith.constant 28 : index
    %81 = vector.load %arg2[%c0_81, %c28_82] : memref<16x128xf32, #tpu.memory_space<vmem>>, vector<4x4xf32>
    %c0_83 = arith.constant 0 : index
    %c0_84 = arith.constant 0 : index
    %c3456 = arith.constant 3456 : index
    %82 = vector.load %arg1[%c0_83, %c0_84, %c3456] : memref<1x4x12544xf32, #tpu.memory_space<vmem>>, vector<1x4x2944xf32>
    %83 = vector.shape_cast %82 : vector<1x4x2944xf32> to vector<4x2944xf32>
    %cst_85 = arith.constant dense<0.000000e+00> : vector<4x2944xf32>
    %84 = tpu.matmul %81, %83, %cst_85 {dimension_numbers = #tpu.dot_dimension_numbers<[1], [0], [0], [1], [0, 0, 1, 1], [], []>} : vector<4x4xf32>, vector<4x2944xf32>, vector<4x2944xf32> -> vector<4x2944xf32>
    %85 = arith.addf %80, %84 : vector<4x2944xf32>
    %86 = vector.broadcast %0 : vector<4x1xf32> to vector<4x2944xf32>
    %87 = arith.addf %85, %86 : vector<4x2944xf32>
    %cst_86 = arith.constant 0.000000e+00 : f32
    %88 = vector.broadcast %cst_86 : f32 to vector<4x2944xf32>
    %89 = arith.maximumf %87, %88 : vector<4x2944xf32>
    %90 = vector.extract_strided_slice %46 {offsets = [0, 0], sizes = [4, 2816], strides = [1, 1]} : vector<4x2944xf32> to vector<4x2816xf32>
    %91 = vector.extract_strided_slice %89 {offsets = [0, 0], sizes = [4, 2816], strides = [1, 1]} : vector<4x2944xf32> to vector<4x2816xf32>
    %92 = vector.extract_strided_slice %46 {offsets = [0, 128], sizes = [4, 2816], strides = [1, 1]} : vector<4x2944xf32> to vector<4x2816xf32>
    %93 = vector.extract_strided_slice %89 {offsets = [0, 128], sizes = [4, 2816], strides = [1, 1]} : vector<4x2944xf32> to vector<4x2816xf32>
    %c4_87 = arith.constant 4 : index
    %c0_88 = arith.constant 0 : index
    %94 = vector.load %arg2[%c4_87, %c0_88] : memref<16x128xf32, #tpu.memory_space<vmem>>, vector<8x4xf32>
    %cst_89 = arith.constant dense<0.000000e+00> : vector<8x2816xf32>
    %95 = tpu.matmul %94, %90, %cst_89 {dimension_numbers = #tpu.dot_dimension_numbers<[1], [0], [0], [1], [0, 0, 1, 1], [], []>} : vector<8x4xf32>, vector<4x2816xf32>, vector<8x2816xf32> -> vector<8x2816xf32>
    %c4_90 = arith.constant 4 : index
    %c4_91 = arith.constant 4 : index
    %96 = vector.load %arg2[%c4_90, %c4_91] : memref<16x128xf32, #tpu.memory_space<vmem>>, vector<8x4xf32>
    %cst_92 = arith.constant dense<0.000000e+00> : vector<8x2816xf32>
    %97 = tpu.matmul %96, %91, %cst_92 {dimension_numbers = #tpu.dot_dimension_numbers<[1], [0], [0], [1], [0, 0, 1, 1], [], []>} : vector<8x4xf32>, vector<4x2816xf32>, vector<8x2816xf32> -> vector<8x2816xf32>
    %98 = arith.addf %95, %97 : vector<8x2816xf32>
    %c4_93 = arith.constant 4 : index
    %c8_94 = arith.constant 8 : index
    %99 = vector.load %arg2[%c4_93, %c8_94] : memref<16x128xf32, #tpu.memory_space<vmem>>, vector<8x4xf32>
    %cst_95 = arith.constant dense<0.000000e+00> : vector<8x2816xf32>
    %100 = tpu.matmul %99, %92, %cst_95 {dimension_numbers = #tpu.dot_dimension_numbers<[1], [0], [0], [1], [0, 0, 1, 1], [], []>} : vector<8x4xf32>, vector<4x2816xf32>, vector<8x2816xf32> -> vector<8x2816xf32>
    %101 = arith.addf %98, %100 : vector<8x2816xf32>
    %c4_96 = arith.constant 4 : index
    %c12_97 = arith.constant 12 : index
    %102 = vector.load %arg2[%c4_96, %c12_97] : memref<16x128xf32, #tpu.memory_space<vmem>>, vector<8x4xf32>
    %cst_98 = arith.constant dense<0.000000e+00> : vector<8x2816xf32>
    %103 = tpu.matmul %102, %93, %cst_98 {dimension_numbers = #tpu.dot_dimension_numbers<[1], [0], [0], [1], [0, 0, 1, 1], [], []>} : vector<8x4xf32>, vector<4x2816xf32>, vector<8x2816xf32> -> vector<8x2816xf32>
    %104 = arith.addf %101, %103 : vector<8x2816xf32>
    %105 = vector.broadcast %1 : vector<8x1xf32> to vector<8x2816xf32>
    %106 = arith.addf %104, %105 : vector<8x2816xf32>
    %cst_99 = arith.constant 0.000000e+00 : f32
    %107 = vector.broadcast %cst_99 : f32 to vector<8x2816xf32>
    %108 = arith.maximumf %106, %107 : vector<8x2816xf32>
    %109 = vector.extract_strided_slice %108 {offsets = [0, 0], sizes = [8, 128], strides = [1, 1]} : vector<8x2816xf32> to vector<8x128xf32>
    %110 = vector.extract_strided_slice %108 {offsets = [0, 128], sizes = [8, 128], strides = [1, 1]} : vector<8x2816xf32> to vector<8x128xf32>
    %111 = arith.addf %109, %110 : vector<8x128xf32>
    %112 = vector.extract_strided_slice %108 {offsets = [0, 256], sizes = [8, 128], strides = [1, 1]} : vector<8x2816xf32> to vector<8x128xf32>
    %113 = arith.addf %111, %112 : vector<8x128xf32>
    %114 = vector.extract_strided_slice %108 {offsets = [0, 384], sizes = [8, 128], strides = [1, 1]} : vector<8x2816xf32> to vector<8x128xf32>
    %115 = arith.addf %113, %114 : vector<8x128xf32>
    %116 = vector.extract_strided_slice %108 {offsets = [0, 512], sizes = [8, 128], strides = [1, 1]} : vector<8x2816xf32> to vector<8x128xf32>
    %117 = arith.addf %115, %116 : vector<8x128xf32>
    %118 = vector.extract_strided_slice %108 {offsets = [0, 640], sizes = [8, 128], strides = [1, 1]} : vector<8x2816xf32> to vector<8x128xf32>
    %119 = arith.addf %117, %118 : vector<8x128xf32>
    %120 = vector.extract_strided_slice %108 {offsets = [0, 768], sizes = [8, 128], strides = [1, 1]} : vector<8x2816xf32> to vector<8x128xf32>
    %121 = arith.addf %119, %120 : vector<8x128xf32>
    %122 = vector.extract_strided_slice %108 {offsets = [0, 896], sizes = [8, 128], strides = [1, 1]} : vector<8x2816xf32> to vector<8x128xf32>
    %123 = arith.addf %121, %122 : vector<8x128xf32>
    %124 = vector.extract_strided_slice %108 {offsets = [0, 1024], sizes = [8, 128], strides = [1, 1]} : vector<8x2816xf32> to vector<8x128xf32>
    %125 = arith.addf %123, %124 : vector<8x128xf32>
    %126 = vector.extract_strided_slice %108 {offsets = [0, 1152], sizes = [8, 128], strides = [1, 1]} : vector<8x2816xf32> to vector<8x128xf32>
    %127 = arith.addf %125, %126 : vector<8x128xf32>
    %128 = vector.extract_strided_slice %108 {offsets = [0, 1280], sizes = [8, 128], strides = [1, 1]} : vector<8x2816xf32> to vector<8x128xf32>
    %129 = arith.addf %127, %128 : vector<8x128xf32>
    %130 = vector.extract_strided_slice %108 {offsets = [0, 1408], sizes = [8, 128], strides = [1, 1]} : vector<8x2816xf32> to vector<8x128xf32>
    %131 = arith.addf %129, %130 : vector<8x128xf32>
    %132 = vector.extract_strided_slice %108 {offsets = [0, 1536], sizes = [8, 128], strides = [1, 1]} : vector<8x2816xf32> to vector<8x128xf32>
    %133 = arith.addf %131, %132 : vector<8x128xf32>
    %134 = vector.extract_strided_slice %108 {offsets = [0, 1664], sizes = [8, 128], strides = [1, 1]} : vector<8x2816xf32> to vector<8x128xf32>
    %135 = arith.addf %133, %134 : vector<8x128xf32>
    %136 = vector.extract_strided_slice %108 {offsets = [0, 1792], sizes = [8, 128], strides = [1, 1]} : vector<8x2816xf32> to vector<8x128xf32>
    %137 = arith.addf %135, %136 : vector<8x128xf32>
    %138 = vector.extract_strided_slice %108 {offsets = [0, 1920], sizes = [8, 128], strides = [1, 1]} : vector<8x2816xf32> to vector<8x128xf32>
    %139 = arith.addf %137, %138 : vector<8x128xf32>
    %140 = vector.extract_strided_slice %108 {offsets = [0, 2048], sizes = [8, 128], strides = [1, 1]} : vector<8x2816xf32> to vector<8x128xf32>
    %141 = arith.addf %139, %140 : vector<8x128xf32>
    %142 = vector.extract_strided_slice %108 {offsets = [0, 2176], sizes = [8, 128], strides = [1, 1]} : vector<8x2816xf32> to vector<8x128xf32>
    %143 = arith.addf %141, %142 : vector<8x128xf32>
    %144 = vector.extract_strided_slice %108 {offsets = [0, 2304], sizes = [8, 128], strides = [1, 1]} : vector<8x2816xf32> to vector<8x128xf32>
    %145 = arith.addf %143, %144 : vector<8x128xf32>
    %146 = vector.extract_strided_slice %108 {offsets = [0, 2432], sizes = [8, 128], strides = [1, 1]} : vector<8x2816xf32> to vector<8x128xf32>
    %147 = arith.addf %145, %146 : vector<8x128xf32>
    %148 = vector.extract_strided_slice %108 {offsets = [0, 2560], sizes = [8, 128], strides = [1, 1]} : vector<8x2816xf32> to vector<8x128xf32>
    %149 = arith.addf %147, %148 : vector<8x128xf32>
    %150 = vector.extract_strided_slice %108 {offsets = [0, 2688], sizes = [8, 128], strides = [1, 1]} : vector<8x2816xf32> to vector<8x128xf32>
    %151 = arith.addf %149, %150 : vector<8x128xf32>
    %cst_100 = arith.constant 0.0454545468 : f32
    %152 = vector.broadcast %cst_100 : f32 to vector<8x128xf32>
    %153 = arith.mulf %151, %152 : vector<8x128xf32>
    %cst_101 = arith.constant dense<0.000000e+00> : vector<2x128xf32>
    %154 = tpu.matmul %2, %153, %cst_101 {dimension_numbers = #tpu.dot_dimension_numbers<[1], [0], [0], [1], [0, 0, 1, 1], [], []>} : vector<2x8xf32>, vector<8x128xf32>, vector<2x128xf32> -> vector<2x128xf32>
    %155 = vector.broadcast %3 : vector<2x1xf32> to vector<2x128xf32>
    %156 = arith.addf %154, %155 : vector<2x128xf32>
    %cst_102 = arith.constant dense<0xFF800000> : vector<128xf32>
    %157 = vector.multi_reduction <maximumf>, %156, %cst_102 [0] : vector<2x128xf32> to vector<128xf32>
    %158 = vector.shape_cast %157 : vector<128xf32> to vector<1x128xf32>
    %159 = vector.broadcast %158 : vector<1x128xf32> to vector<2x128xf32>
    %160 = arith.subf %156, %159 : vector<2x128xf32>
    %161 = math.exp %160 : vector<2x128xf32>
    %cst_103 = arith.constant dense<0.000000e+00> : vector<128xf32>
    %162 = vector.multi_reduction <add>, %161, %cst_103 [0] : vector<2x128xf32> to vector<128xf32>
    %163 = vector.shape_cast %162 : vector<128xf32> to vector<1x128xf32>
    %164 = tpu.reciprocal %163 {approx = true} : vector<1x128xf32> -> vector<1x128xf32>
    %165 = vector.broadcast %164 : vector<1x128xf32> to vector<2x128xf32>
    %166 = arith.mulf %161, %165 : vector<2x128xf32>
    %c0_104 = arith.constant 0 : index
    %c0_105 = arith.constant 0 : index
    %c0_106 = arith.constant 0 : index
    %167 = vector.load %arg3[%c0_104, %c0_105, %c0_106] : memref<1x2x128xf32, #tpu.memory_space<vmem>>, vector<1x2x128xf32>
    %168 = vector.shape_cast %167 : vector<1x2x128xf32> to vector<2x128xf32>
    %169 = vector.shape_cast %166 : vector<2x128xf32> to vector<1x2x128xf32>
    tpu.vector_store %arg3[%c0_104, %c0_105, %c0_106], %169 {strides = array<i32>} : memref<1x2x128xf32, #tpu.memory_space<vmem>>, vector<1x2x128xf32>,
    return
  }
  func.func @transform_0(%arg0: i32) -> (i32, i32, i32) {
    %c0_i32 = arith.constant 0 : i32
    %c0_i32_0 = arith.constant 0 : i32
    %c0_i32_1 = arith.constant 0 : i32
    return %arg0, %c0_i32, %c0_i32_0 : i32, i32, i32
  }
  func.func @transform_1(%arg0: i32) -> (i32, i32) {
    %c0_i32 = arith.constant 0 : i32
    %c0_i32_0 = arith.constant 0 : i32
    %c0_i32_1 = arith.constant 0 : i32
    return %c0_i32, %c0_i32_0 : i32, i32
  }
  func.func @transform_2(%arg0: i32) -> (i32, i32, i32) {
    %c0_i32 = arith.constant 0 : i32
    %c0_i32_0 = arith.constant 0 : i32
    %c0_i32_1 = arith.constant 0 : i32
    return %arg0, %c0_i32, %c0_i32_0 : i32, i32, i32
  }
}

</mosaic_0001>

<bundles_post_ra>
// kernel: avgpool_convnet.1
= control target key start
LH: loop header
LB: loop body
LE: loop exit
PB: predicated region body
PF: predicated region fallthrough
CT: control target
= control target key end

     0   :  { %v22403_v2 = vmov 0.0   ;;  %s19670_s13 = smov 124   ;;  %vm67_vm0 = vcmask 1043456   ;;  %s19671_s20 = smov 116   ;;  %vm64_vm1 = vcmask 31744   ;;  %vm19677_vm2 = vmmov 0   ;;  %s22400_s1 = inlined_call_operand.vmem [shape: f32[16,128], index: 1, kind: input, shape index: {}]   ;;  %s22401_s0 = inlined_call_operand.vmem [shape: f32[1,4,12544], index: 0, kind: input, shape index: {}]   ;;  %s22402_s2 = inlined_call_operand.vmem [shape: f32[1,2,128], index: 2, kind: output, shape index: {}]  }
   0x1   :  { %v19699_v0 = vld [vmem:[%s22400_s1] sm:$0xf]  ;;  %178 = vmatprep.mubr.f32.mxu1 %v22403_v2  ;;  %320 = vmatprep.mubr.f32.mxu0 %v22403_v2  ;;  %v26_v3 = vld [vmem:[%s22401_s0 + $0x64] sm:$0xff]  ;;  %v28_v4 = vld [vmem:[%s22401_s0 + $0x74] sm:$0xff]  ;;  %s19672_s27 = smov 120   ;;  %s19673_s28 = smov 112  }
   0x2   :  { %v2848_v1 = vld [vmem:[%s22400_s1] sm:$0xf]  ;;  %39 = vrot.lane.b32.xlu0 %v19699_v0, %s19670_s13  ;;  %v53_v6 = vcombine.high %v26_v3, %v26_v3  ;;  %v55_v7 = vcombine.high %v28_v4, %v28_v4  ;;  %v27_v8 = vld [vmem:[%s22401_s0 + $0x6c] sm:$0xff]  ;;  %v30_v9 = vld [vmem:[%s22401_s0 + $0x84] sm:$0xff]  ;;  %s19674_s3 = smov 108   ;;  %s19675_s6 = smov 104  }
   0x3   :  { %v1887_v5 = vld [vmem:[%s22400_s1] sm:$0xf]  ;;  %2862 = vrot.lane.b32.xlu1 %v2848_v1, %s19671_s20  ;;  %v54_v11 = vcombine.high %v27_v8, %v27_v8  ;;  %v57_v12 = vcombine.high %v30_v9, %v30_v9  ;;  %s19676_s9 = smov 100   ;;  %v32_v17 = vld [vmem:[%s22401_s0 + $0x94] sm:$0xff]  ;;  %v31_v21 = vld [vmem:[%s22401_s0 + $0x8c] sm:$0xff]  ;;  %vm18255_vm3 = vcmask 64512  }
   0x4   :  { %v3809_v10 = vld [vmem:[%s22400_s1] sm:$0xf]  ;;  %18353 = vmatprep.subr.msk.mxu1 %vm67_vm0, %v53_v6  ;;  %18359 = vmatprep.subr.msk.mxu0 %vm67_vm0, %v55_v7  ;;  %v59_v20 = vcombine.high %v32_v17, %v32_v17  ;;  %v34_v22 = vld [vmem:[%s22401_s0 + $0xa4] sm:$0xff]  ;;  %v58_v23 = vcombine.high %v31_v21, %v31_v21  ;;  %v36_v26 = vld [vmem:[%s22401_s0 + $0xb4] sm:$0xff]  ;;  %vm18328_vm4 = vcmask 1041408  }
   0x5   :  { %18354 = vmatpush1.msk.msra.mxu1 %vm67_vm0, %v26_v3  ;;  %18360 = vmatpush1.msk.msra.mxu0 %vm67_vm0, %v28_v4  ;;  %v4770_v13 = vld [vmem:[%s22400_s1] sm:$0xf]  ;;  %v61_v24 = vcombine.high %v34_v22, %v34_v22  ;;  %v63_v28 = vcombine.high %v36_v26, %v36_v26  ;;  %v35_v29 = vld [vmem:[%s22401_s0 + $0xac] sm:$0xff]  ;;  %v37_v37 = vld [vmem:[%s22401_s0 + $0xbc] sm:$0xf] }
   0x6   :  { %1901 = vrot.lane.b32.xlu0 %v1887_v5, %s19672_s27  ;;  %18356 = vmatprep.subr.msk.mxu1 %vm67_vm0, %v54_v11  ;;  %v5731_v14 = vld [vmem:[%s22400_s1] sm:$0xf]  ;;  %v62_v31 = vcombine.high %v35_v29, %v35_v29  ;;  %v16_v33 = vld [vmem:[%s22401_s0 + $0x10] sm:$0xff]  ;;  %v15_v35 = vld [vmem:[%s22401_s0 + $0x8] sm:$0xff] }
   0x7   :  { %3823 = vrot.lane.b32.xlu1 %v3809_v10, %s19673_s28  ;;  %18365 = vmatprep.subr.msk.mxu0 %vm67_vm0, %v57_v12  ;;  %v6692_v15 = vld [vmem:[%s22400_s1] sm:$0xf]  ;;  %v979_v34 = vcombine.high %v16_v33, %v16_v33  ;;  %v978_v38 = vcombine.high %v15_v35, %v15_v35  ;;  %v17_v40 = vld [vmem:[%s22401_s0 + $0x18] sm:$0xff]  ;;  %v20_v41 = vld [vmem:[%s22401_s0 + $0x30] sm:$0xff] }
   0x8   :  { %v29_v16 = vld [vmem:[%s22401_s0 + $0x7c] sm:$0xff]  ;;  %v980_v42 = vcombine.high %v17_v40, %v17_v40  ;;  %v983_v43 = vcombine.high %v20_v41, %v20_v41  ;;  %v19_v44 = vld [vmem:[%s22401_s0 + $0x28] sm:$0xff]  ;;  %v24_v49 = vld [vmem:[%s22401_s0 + $0x50] sm:$0xff] }
   0x9   :  { %v56_v19 = vcombine.high %v29_v16, %v29_v16  ;;  %v33_v25 = vld [vmem:[%s22401_s0 + $0x9c] sm:$0xff]  ;;  %v982_v46 = vcombine.high %v19_v44, %v19_v44  ;;  %v987_v51 = vcombine.high %v24_v49, %v24_v49  ;;  %v23_v52 = vld [vmem:[%s22401_s0 + $0x48] sm:$0xff]  ;;  %v19929_v58 = vld [vmem:[%s22401_s0 + $0xd0] sm:$0xff] }
   0xa   :  { %4784 = vrot.lane.b32.xlu0 %v4770_v13, %s19674_s3  ;;  %v60_v27 = vcombine.high %v33_v25, %v33_v25  ;;  %v14_v30 = vld [vmem:[%s22401_s0] sm:$0xff]  ;;  %v21_v48 = vld [vmem:[%s22401_s0 + $0x38] sm:$0xff]  ;;  %v19890_v53 = vld [vmem:[%s22401_s0 + $0xc8] sm:$0xff]  ;;  %v986_v54 = vcombine.high %v23_v52, %v23_v52  ;;  %v19951_v62 = vcombine.high %v19929_v58, %v19929_v58 }
   0xb   :  { %5745 = vrot.lane.b32.xlu1 %v5731_v14, %s19675_s6  ;;  %v977_v32 = vcombine.high %v14_v30, %v14_v30  ;;  %v18_v36 = vld [vmem:[%s22401_s0 + $0x20] sm:$0xff]  ;;  %v984_v50 = vcombine.high %v21_v48, %v21_v48  ;;  %v19900_v55 = vcombine.high %v19890_v53, %v19890_v53  ;;  %v19909_v56 = vld [vmem:[%s22401_s0 + $0xd8] sm:$0xff]  ;;  %v19934_v59 = vld [vmem:[%s22401_s0 + $0xe8] sm:$0xff] }
   0xc   :  { %v981_v39 = vcombine.high %v18_v36, %v18_v36  ;;  %v22_v45 = vld [vmem:[%s22401_s0 + $0x40] sm:$0xff]  ;;  %v19920_v57 = vcombine.high %v19909_v56, %v19909_v56  ;;  %v25_v61 = vld [vmem:[%s22401_s0 + $0x58] sm:$0xf]  ;;  %v19955_v63 = vcombine.high %v19934_v59, %v19934_v59  ;;  %v19996_v6 = vld [vmem:[%s22401_s0 + $0xf0] sm:$0xff] }
   0xd   :  { %v985_v47 = vcombine.high %v22_v45, %v22_v45  ;;  %v19964_v1 = vld [vmem:[%s22401_s0 + $0xe0] sm:$0xff]  ;;  %v19969_v3 = vld [vmem:[%s22401_s0 + $0xf8] sm:$0xff]  ;;  %v20001_v7 = vld [vmem:[%s22401_s0 + $0x108] sm:$0xff] }
   0xe   :  { %6706 = vrot.lane.b32.xlu0 %v6692_v15, %s19676_s9  ;;  %v19983_v4 = vcombine.high %v19964_v1, %v19964_v1  ;;  %v19987_v5 = vcombine.high %v19969_v3, %v19969_v3  ;;  %v20033_v10 = vld [vmem:[%s22401_s0 + $0x118] sm:$0xff]  ;;  %v20060_v13 = vld [vmem:[%s22401_s0 + $0x110] sm:$0xff]  ;;  %v20065_v14 = vld [vmem:[%s22401_s0 + $0x128] sm:$0xff] }
   0xf   :  { %v20051_v12 = vcombine.high %v20033_v10, %v20033_v10  ;;  %v20079_v15 = vcombine.high %v20060_v13, %v20060_v13 }
  0x74   :  { %v19749_v18 = vpop.permute.xlu0 %39 }
  0x75   :  { %18355 = vmatmul.mubr.msk.f32.vlgmr.msra.gmra.mrb[0].mxu1 %vm64_vm1, %v19749_v18  ;;  %18361 = vmatmul.mubr.msk.f32.vlgmr.msra.gmra.mrb[0].mxu0 %vm64_vm1, %v19749_v18 }
  0x76   :  { %18357 = vmatpush1.msk.msra.mxu1 %vm67_vm0, %v27_v8  ;;  %249 = vmatprep.mubr.f32.mxu1 %v22403_v2  ;;  %v20019_v8 = vcombine.high %v20001_v7, %v20001_v7 }
  0x77   :  { %18366 = vmatpush1.msk.msra.mxu0 %vm67_vm0, %v30_v9  ;;  %462 = vmatprep.mubr.f32.mxu0 %v22403_v2  ;;  %v20028_v9 = vld [vmem:[%s22401_s0 + $0x100] sm:$0xff] }
  0x78   :  { %18362 = vmatprep.subr.msk.mxu1 %vm67_vm0, %v56_v19  ;;  %18371 = vmatprep.subr.msk.mxu0 %vm67_vm0, %v59_v20  ;;  %v19936_v60 = vpop.permute.xlu0 %1901  ;;  %v20047_v11 = vcombine.high %v20028_v9, %v20028_v9  ;;  %v20115_v20 = vld [vmem:[%s22401_s0 + $0x130] sm:$0xff] }
  0x79   :  { %18358 = vmatmul.mubr.msk.f32.vlgmr.msra.gmra.mrb[2].mxu1 %vm64_vm1, %v19749_v18  ;;  %18367 = vmatmul.mubr.msk.f32.vlgmr.msra.gmra.mrb[2].mxu0 %vm64_vm1, %v19749_v18 }
  0x7a   :  { %18363 = vmatpush1.msk.msra.mxu1 %vm67_vm0, %v29_v16  ;;  %391 = vmatprep.mubr.f32.mxu1 %v22403_v2  ;;  %v20083_v16 = vcombine.high %v20065_v14, %v20065_v14 }
  0x7b   :  { %18372 = vmatpush1.msk.msra.mxu0 %vm67_vm0, %v32_v17  ;;  %604 = vmatprep.mubr.f32.mxu0 %v22403_v2  ;;  %v20092_v17 = vld [vmem:[%s22401_s0 + $0x138] sm:$0xff] }
  0x7c   :  { %18368 = vmatprep.subr.msk.mxu1 %vm67_vm0, %v58_v23  ;;  %18377 = vmatprep.subr.msk.mxu0 %vm67_vm0, %v61_v24  ;;  %v20106_v19 = vcombine.high %v20092_v17, %v20092_v17  ;;  %v20133_v23 = vld [vmem:[%s22401_s0 + $0x120] sm:$0xf]  ;;  %v20140_v24 = vcombine.high %v20115_v20, %v20115_v20 }
  0x7d   :  { %18364 = vmatmul.mubr.msk.f32.vlgmr.msra.gmra.mrb[4].mxu1 %vm64_vm1, %v19749_v18  ;;  %18373 = vmatmul.mubr.msk.f32.vlgmr.msra.gmra.mrb[4].mxu0 %vm64_vm1, %v19749_v18 }
  0x7e   :  { %18369 = vmatpush1.msk.msra.mxu1 %vm67_vm0, %v31_v21  ;;  %533 = vmatprep.mubr.f32.mxu1 %v22403_v2  ;;  %v20120_v21 = vld [vmem:[%s22401_s0 + $0x148] sm:$0xff] }
  0x7f   :  { %18378 = vmatpush1.msk.msra.mxu0 %vm67_vm0, %v34_v22  ;;  %746 = vmatprep.mubr.f32.mxu0 %v22403_v2  ;;  %v20122_v22 = vpop.permute.xlu1 %2862 }
  0x80   :  { %18374 = vmatprep.subr.msk.mxu1 %vm67_vm0, %v60_v27  ;;  %18383 = vmatprep.subr.msk.mxu0 %vm67_vm0, %v63_v28  ;;  %22512 = vst [vmem:[#allocation2_spill] sm:$0xff] %v20122_v22  ;;  %v20158_v27 = vld [vmem:[%s22401_s0 + $0x158] sm:$0xff] }
  0x81   :  { %18370 = vmatmul.mubr.msk.f32.vlgmr.msra.gmra.mrb[6].mxu1 %vm64_vm1, %v19749_v18  ;;  %18379 = vmatmul.mubr.msk.f32.vlgmr.msra.gmra.mrb[6].mxu0 %vm64_vm1, %v19749_v18 }
  0x82   :  { %18375 = vmatpush1.msk.msra.mxu1 %vm67_vm0, %v33_v25  ;;  %675 = vmatprep.mubr.f32.mxu1 %v22403_v2  ;;  %v20144_v25 = vcombine.high %v20120_v21, %v20120_v21 }
  0x83   :  { %18384 = vmatpush1.msk.msra.mxu0 %vm67_vm0, %v36_v26  ;;  %888 = vmatprep.mubr.f32.mxu0 %v22403_v2  ;;  %v20153_v26 = vld [vmem:[%s22401_s0 + $0x140] sm:$0xff] }
  0x84   :  { %18380 = vmatprep.subr.msk.mxu1 %vm67_vm0, %v62_v31  ;;  %18388 = vmatprep.subr.msk.mxu0 %vm67_vm0, %v977_v32  ;;  %v20173_v28 = vcombine.high %v20153_v26, %v20153_v26  ;;  %v20191_v31 = vld [vmem:[%s22401_s0 + $0x168] sm:$0xff] }
  0x85   :  { %18376 = vmatmul.mubr.msk.f32.vlgmr.msra.gmra.mrb[8].mxu1 %vm64_vm1, %v19749_v18  ;;  %18385 = vmatmul.mubr.msk.f32.vlgmr.msra.gmra.mrb[8].mxu0 %vm64_vm1, %v19749_v18 }
  0x86   :  { %18381 = vmatpush1.msk.msra.mxu1 %vm67_vm0, %v35_v29  ;;  %817 = vmatprep.mubr.f32.mxu1 %v22403_v2  ;;  %v20177_v29 = vcombine.high %v20158_v27, %v20158_v27 }
  0x87   :  { %18389 = vmatpush1.msk.msra.mxu0 %vm67_vm0, %v14_v30  ;;  %1100 = vmatprep.mubr.f32.mxu0 %v22403_v2  ;;  %v20186_v30 = vld [vmem:[%s22401_s0 + $0x150] sm:$0xff] }
  0x88   :  { %19080 = vmatprep.subr.mxu1 %v22403_v2  ;;  %18394 = vmatprep.subr.msk.mxu0 %vm67_vm0, %v979_v34  ;;  %v20205_v32 = vcombine.high %v20186_v30, %v20186_v30  ;;  %v20218_v34 = vld [vmem:[%s22401_s0 + $0x160] sm:$0xff] }
  0x89   :  { %18382 = vmatmul.mubr.msk.f32.vlgmr.msra.gmra.mrb[10].mxu1 %vm64_vm1, %v19749_v18  ;;  %18390 = vmatmul.mubr.msk.f32.vlgmr.msra.gmra.mrb[10].mxu0 %vm64_vm1, %v19699_v0 }
  0x8a   :  { %19081 = vmatpush3.msk.msra.mxu1 %vm67_vm0, %v37_v37  ;;  %19082 = vmatprep.mubr.msk.f32.mxu1 %vm19677_vm2, %v22403_v2 }
  0x8b   :  { %18395 = vmatpush1.msk.msra.mxu0 %vm67_vm0, %v16_v33  ;;  %1242 = vmatprep.mubr.f32.mxu0 %v22403_v2  ;;  %v20209_v33 = vcombine.high %v20191_v31, %v20191_v31 }
  0x8c   :  { %18391 = vmatprep.subr.msk.mxu1 %vm67_vm0, %v978_v38  ;;  %18400 = vmatprep.subr.msk.mxu0 %vm67_vm0, %v981_v39  ;;  %v20250_v38 = vld [vmem:[%s22401_s0 + $0x170] sm:$0xff]  ;;  %v20255_v39 = vld [vmem:[%s22401_s0 + $0x4] sm:$0xff] }
  0x8d   :  { %19083 = vmatmul.mubr.msk.f32.vlgmr.msra.gmra.mrb[12].mxu1 %vm64_vm1, %v19749_v18  ;;  %18396 = vmatmul.mubr.msk.f32.vlgmr.msra.gmra.mrb[0].mxu0 %vm64_vm1, %v19699_v0 }
  0x8e   :  { %18392 = vmatpush1.msk.msra.mxu1 %vm67_vm0, %v15_v35  ;;  %1171 = vmatprep.mubr.f32.mxu1 %v22403_v2  ;;  %v20223_v35 = vld [vmem:[%s22401_s0 + $0x178] sm:$0xff] }
  0x8f   :  { %18401 = vmatpush1.msk.msra.mxu0 %vm67_vm0, %v18_v36  ;;  %1384 = vmatprep.mubr.f32.mxu0 %v22403_v2  ;;  %v20237_v36 = vcombine.high %v20218_v34, %v20218_v34  ;;  %v20241_v37 = vcombine.high %v20223_v35, %v20223_v35 }
  0x90   :  { %18397 = vmatprep.subr.msk.mxu1 %vm67_vm0, %v980_v42  ;;  %18406 = vmatprep.subr.msk.mxu0 %vm67_vm0, %v983_v43  ;;  %v20282_v42 = vld [vmem:[%s22401_s0 + $0x14] sm:$0xff] }
  0x91   :  { %18393 = vmatmul.mubr.msk.f32.vlgmr.msra.gmra.mrb[2].mxu1 %vm64_vm1, %v19699_v0  ;;  %18402 = vmatmul.mubr.msk.f32.vlgmr.msra.gmra.mrb[2].mxu0 %vm64_vm1, %v19699_v0  ;;  %v20296_v43 = vcombine.high %v20282_v42, %v20282_v42 }
  0x92   :  { %18398 = vmatpush1.msk.msra.mxu1 %vm67_vm0, %v17_v40  ;;  %1313 = vmatprep.mubr.f32.mxu1 %v22403_v2  ;;  %v20269_v40 = vcombine.high %v20250_v38, %v20250_v38 }
  0x93   :  { %18407 = vmatpush1.msk.msra.mxu0 %vm67_vm0, %v20_v41  ;;  %1526 = vmatprep.mubr.f32.mxu0 %v22403_v2  ;;  %v20273_v41 = vcombine.high %v20255_v39, %v20255_v39 }
  0x94   :  { %18403 = vmatprep.subr.msk.mxu1 %vm67_vm0, %v982_v46  ;;  %18412 = vmatprep.subr.msk.mxu0 %vm67_vm0, %v985_v47  ;;  %v20312_v46 = vpop.permute.xlu1 %3823  ;;  %v20323_v47 = vld [vmem:[%s22401_s0 + $0x180] sm:$0xf] }
  0x95   :  { %18399 = vmatmul.mubr.msk.f32.vlgmr.msra.gmra.mrb[4].mxu1 %vm64_vm1, %v19699_v0  ;;  %18408 = vmatmul.mubr.msk.f32.vlgmr.msra.gmra.mrb[4].mxu0 %vm64_vm1, %v19699_v0  ;;  %22515 = vst [vmem:[#allocation5_spill] sm:$0xff] %v20312_v46 }
  0x96   :  { %18404 = vmatpush1.msk.msra.mxu1 %vm67_vm0, %v19_v44  ;;  %1455 = vmatprep.mubr.f32.mxu1 %v22403_v2  ;;  %v20305_v44 = vld [vmem:[%s22401_s0 + $0xc] sm:$0xff] }
  0x97   :  { %18413 = vmatpush1.msk.msra.mxu0 %vm67_vm0, %v22_v45  ;;  %1668 = vmatprep.mubr.f32.mxu0 %v22403_v2  ;;  %22513 = vst [vmem:[#allocation3_spill] sm:$0xff] %v20305_v44  ;;  %v20310_v45 = vld [vmem:[%s22401_s0 + $0x24] sm:$0xff] }
  0x98   :  { %18409 = vmatprep.subr.msk.mxu1 %vm67_vm0, %v984_v50  ;;  %18418 = vmatprep.subr.msk.mxu0 %vm67_vm0, %v987_v51  ;;  %22514 = vst [vmem:[#allocation4_spill] sm:$0xff] %v20310_v45  ;;  %v20343_v50 = vld [vmem:[%s22401_s0 + $0x1c] sm:$0xff]  ;;  %v20348_v51 = vld [vmem:[%s22401_s0 + $0x34] sm:$0xff] }
  0x99   :  { %18405 = vmatmul.mubr.msk.f32.vlgmr.msra.gmra.mrb[6].mxu1 %vm64_vm1, %v19699_v0  ;;  %18414 = vmatmul.mubr.msk.f32.vlgmr.msra.gmra.mrb[6].mxu0 %vm64_vm1, %v19699_v0  ;;  %22518 = vst [vmem:[#allocation8_spill] sm:$0xff] %v20343_v50  ;;  %22519 = vst [vmem:[#allocation9_spill] sm:$0xff] %v20348_v51 }
  0x9a   :  { %18410 = vmatpush1.msk.msra.mxu1 %vm67_vm0, %v21_v48  ;;  %1597 = vmatprep.mubr.f32.mxu1 %v22403_v2  ;;  %v20330_v48 = vcombine.high %v20305_v44, %v20305_v44 }
  0x9b   :  { %18419 = vmatpush1.msk.msra.mxu0 %vm67_vm0, %v24_v49  ;;  %1810 = vmatprep.mubr.f32.mxu0 %v22403_v2  ;;  %v20334_v49 = vcombine.high %v20310_v45, %v20310_v45 }
  0x9c   :  { %18415 = vmatprep.subr.msk.mxu1 %vm67_vm0, %v986_v54  ;;  %18423 = vmatprep.subr.msk.mxu0 %vm67_vm0, %v19900_v55  ;;  %22516 = vst [vmem:[#allocation6_spill] sm:$0xff] %v20330_v48  ;;  %v20367_v54 = vcombine.high %v20348_v51, %v20348_v51 }
  0x9d   :  { %18411 = vmatmul.mubr.msk.f32.vlgmr.msra.gmra.mrb[8].mxu1 %vm64_vm1, %v19699_v0  ;;  %18420 = vmatmul.mubr.msk.f32.vlgmr.msra.gmra.mrb[8].mxu0 %vm64_vm1, %v19699_v0  ;;  %22517 = vst [vmem:[#allocation7_spill] sm:$0xff] %v20334_v49 }
  0x9e   :  { %18416 = vmatpush1.msk.msra.mxu1 %vm67_vm0, %v23_v52  ;;  %1739 = vmatprep.mubr.f32.mxu1 %v22403_v2  ;;  %v20363_v52 = vcombine.high %v20343_v50, %v20343_v50  ;;  %22521 = vst [vmem:[#allocation11_spill] sm:$0xff] %v20367_v54 }
  0x9f   :  { %18424 = vmatpush1.msk.msra.mxu0 %vm67_vm0, %v19890_v53  ;;  %2038 = vmatprep.mubr.f32.mxu0 %v22403_v2 }
  0xa0   :  { %19085 = vmatprep.subr.mxu1 %v22403_v2  ;;  %18429 = vmatprep.subr.msk.mxu0 %vm67_vm0, %v19920_v57  ;;  %22520 = vst [vmem:[#allocation10_spill] sm:$0xff] %v20363_v52 }
  0xa1   :  { %18417 = vmatmul.mubr.msk.f32.vlgmr.msra.gmra.mrb[10].mxu1 %vm64_vm1, %v19699_v0  ;;  %18425 = vmatmul.mubr.msk.f32.vlgmr.msra.gmra.mrb[10].mxu0 %vm64_vm1, %v19936_v60 }
  0xa2   :  { %19086 = vmatpush3.msk.msra.mxu1 %vm67_vm0, %v25_v61  ;;  %19087 = vmatprep.mubr.msk.f32.mxu1 %vm19677_vm2, %v22403_v2  ;;  %v20376_v61 = vld [vmem:[%s22401_s0 + $0x2c] sm:$0xff] }
  0xa3   :  { %18430 = vmatpush1.msk.msra.mxu0 %vm67_vm0, %v19909_v56  ;;  %2180 = vmatprep.mubr.f32.mxu0 %v22403_v2  ;;  %22522 = vst [vmem:[#allocation12_spill] sm:$0xff] %v20376_v61 }
  0xa4   :  { %18426 = vmatprep.subr.msk.mxu1 %vm67_vm0, %v19951_v62  ;;  %18435 = vmatprep.subr.msk.mxu0 %vm67_vm0, %v19955_v63 }
  0xa5   :  { %19088 = vmatmul.mubr.msk.f32.vlgmr.msra.gmra.mrb[14].mxu1 %vm64_vm1, %v19699_v0  ;;  %18431 = vmatmul.mubr.msk.f32.vlgmr.msra.gmra.mrb[0].mxu0 %vm64_vm1, %v19936_v60  ;;  %v20015_v0 = vcombine.high %v19996_v6, %v19996_v6 }
  0xa6   :  { %18427 = vmatpush1.msk.msra.mxu1 %vm67_vm0, %v19929_v58  ;;  %2109 = vmatprep.mubr.f32.mxu1 %v22403_v2 }
  0xa7   :  { %18436 = vmatpush1.msk.msra.mxu0 %vm67_vm0, %v19934_v59  ;;  %2322 = vmatprep.mubr.f32.mxu0 %v22403_v2 }
  0xa8   :  { %18432 = vmatprep.subr.msk.mxu1 %vm67_vm0, %v19983_v4  ;;  %18441 = vmatprep.subr.msk.mxu0 %vm67_vm0, %v19987_v5 }
  0xa9   :  { %18428 = vmatmul.mubr.msk.f32.vlgmr.msra.gmra.mrb[2].mxu1 %vm64_vm1, %v19936_v60  ;;  %18437 = vmatmul.mubr.msk.f32.vlgmr.msra.gmra.mrb[2].mxu0 %vm64_vm1, %v19936_v60 }
  0xaa   :  { %18433 = vmatpush1.msk.msra.mxu1 %vm67_vm0, %v19964_v1  ;;  %2251 = vmatprep.mubr.f32.mxu1 %v22403_v2 }
  0xab   :  { %18442 = vmatpush1.msk.msra.mxu0 %vm67_vm0, %v19969_v3  ;;  %2464 = vmatprep.mubr.f32.mxu0 %v22403_v2 }
  0xac   :  { %18438 = vmatprep.subr.msk.mxu1 %vm67_vm0, %v20015_v0  ;;  %18447 = vmatprep.subr.msk.mxu0 %vm67_vm0, %v20019_v8 }
  0xad   :  { %18434 = vmatmul.mubr.msk.f32.vlgmr.msra.gmra.mrb[4].mxu1 %vm64_vm1, %v19936_v60  ;;  %18443 = vmatmul.mubr.msk.f32.vlgmr.msra.gmra.mrb[4].mxu0 %vm64_vm1, %v19936_v60 }
  0xae   :  { %18439 = vmatpush1.msk.msra.mxu1 %vm67_vm0, %v19996_v6  ;;  %2393 = vmatprep.mubr.f32.mxu1 %v22403_v2 }
  0xaf   :  { %18448 = vmatpush1.msk.msra.mxu0 %vm67_vm0, %v20001_v7  ;;  %2606 = vmatprep.mubr.f32.mxu0 %v22403_v2 }
  0xb0   :  { %18444 = vmatprep.subr.msk.mxu1 %vm67_vm0, %v20047_v11  ;;  %18453 = vmatprep.subr.msk.mxu0 %vm67_vm0, %v20051_v12 }
  0xb1   :  { %18440 = vmatmul.mubr.msk.f32.vlgmr.msra.gmra.mrb[6].mxu1 %vm64_vm1, %v19936_v60  ;;  %18449 = vmatmul.mubr.msk.f32.vlgmr.msra.gmra.mrb[6].mxu0 %vm64_vm1, %v19936_v60 }
  0xb2   :  { %18445 = vmatpush1.msk.msra.mxu1 %vm67_vm0, %v20028_v9  ;;  %2535 = vmatprep.mubr.f32.mxu1 %v22403_v2 }
  0xb3   :  { %18454 = vmatpush1.msk.msra.mxu0 %vm67_vm0, %v20033_v10  ;;  %2748 = vmatprep.mubr.f32.mxu0 %v22403_v2 }
  0xb4   :  { %18450 = vmatprep.subr.msk.mxu1 %vm67_vm0, %v20079_v15  ;;  %18458 = vmatprep.subr.msk.mxu0 %vm67_vm0, %v20083_v16 }
  0xb5   :  { %18446 = vmatmul.mubr.msk.f32.vlgmr.msra.gmra.mrb[8].mxu1 %vm64_vm1, %v19936_v60  ;;  %18455 = vmatmul.mubr.msk.f32.vlgmr.msra.gmra.mrb[8].mxu0 %vm64_vm1, %v19936_v60 }
  0xb6   :  { %18451 = vmatpush1.msk.msra.mxu1 %vm67_vm0, %v20060_v13  ;;  %2677 = vmatprep.mubr.f32.mxu1 %v22403_v2 }
  0xb7   :  { %18459 = vmatpush1.msk.msra.mxu0 %vm67_vm0, %v20065_v14  ;;  %2999 = vmatprep.mubr.f32.mxu0 %v22403_v2 }
  0xb8   :  { %19090 = vmatprep.subr.mxu1 %v22403_v2  ;;  %18464 = vmatprep.subr.msk.mxu0 %vm67_vm0, %v20106_v19 }
  0xb9   :  { %18452 = vmatmul.mubr.msk.f32.vlgmr.msra.gmra.mrb[10].mxu1 %vm64_vm1, %v19936_v60  ;;  %18460 = vmatmul.mubr.msk.f32.vlgmr.msra.gmra.mrb[10].mxu0 %vm64_vm1, %v20122_v22 }
  0xba   :  { %19091 = vmatpush3.msk.msra.mxu1 %vm67_vm0, %v20133_v23  ;;  %19092 = vmatprep.mubr.msk.f32.mxu1 %vm19677_vm2, %v22403_v2 }
  0xbb   :  { %18465 = vmatpush1.msk.msra.mxu0 %vm67_vm0, %v20092_v17  ;;  %3141 = vmatprep.mubr.f32.mxu0 %v22403_v2 }
  0xbc   :  { %18461 = vmatprep.subr.msk.mxu1 %vm67_vm0, %v20140_v24  ;;  %18470 = vmatprep.subr.msk.mxu0 %vm67_vm0, %v20144_v25 }
  0xbd   :  { %19093 = vmatmul.mubr.msk.f32.vlgmr.msra.gmra.mrb[16].mxu1 %vm64_vm1, %v19936_v60  ;;  %18466 = vmatmul.mubr.msk.f32.vlgmr.msra.gmra.mrb[0].mxu0 %vm64_vm1, %v20122_v22 }
  0xbe   :  { %18462 = vmatpush1.msk.msra.mxu1 %vm67_vm0, %v20115_v20  ;;  %3070 = vmatprep.mubr.f32.mxu1 %v22403_v2 }
  0xbf   :  { %18471 = vmatpush1.msk.msra.mxu0 %vm67_vm0, %v20120_v21  ;;  %3283 = vmatprep.mubr.f32.mxu0 %v22403_v2 }
  0xc0   :  { %18467 = vmatprep.subr.msk.mxu1 %vm67_vm0, %v20173_v28  ;;  %18476 = vmatprep.subr.msk.mxu0 %vm67_vm0, %v20177_v29 }
  0xc1   :  { %18463 = vmatmul.mubr.msk.f32.vlgmr.msra.gmra.mrb[2].mxu1 %vm64_vm1, %v20122_v22  ;;  %18472 = vmatmul.mubr.msk.f32.vlgmr.msra.gmra.mrb[2].mxu0 %vm64_vm1, %v20122_v22 }
  0xc2   :  { %18468 = vmatpush1.msk.msra.mxu1 %vm67_vm0, %v20153_v26  ;;  %3212 = vmatprep.mubr.f32.mxu1 %v22403_v2 }
  0xc3   :  { %18477 = vmatpush1.msk.msra.mxu0 %vm67_vm0, %v20158_v27  ;;  %3425 = vmatprep.mubr.f32.mxu0 %v22403_v2 }
  0xc4   :  { %18473 = vmatprep.subr.msk.mxu1 %vm67_vm0, %v20205_v32  ;;  %18482 = vmatprep.subr.msk.mxu0 %vm67_vm0, %v20209_v33 }
  0xc5   :  { %18469 = vmatmul.mubr.msk.f32.vlgmr.msra.gmra.mrb[4].mxu1 %vm64_vm1, %v20122_v22  ;;  %18478 = vmatmul.mubr.msk.f32.vlgmr.msra.gmra.mrb[4].mxu0 %vm64_vm1, %v20122_v22 }
  0xc6   :  { %18474 = vmatpush1.msk.msra.mxu1 %vm67_vm0, %v20186_v30  ;;  %3354 = vmatprep.mubr.f32.mxu1 %v22403_v2 }
  0xc7   :  { %18483 = vmatpush1.msk.msra.mxu0 %vm67_vm0, %v20191_v31  ;;  %3567 = vmatprep.mubr.f32.mxu0 %v22403_v2 }
  0xc8   :  { %18479 = vmatprep.subr.msk.mxu1 %vm67_vm0, %v20237_v36  ;;  %18488 = vmatprep.subr.msk.mxu0 %vm67_vm0, %v20241_v37 }
  0xc9   :  { %18475 = vmatmul.mubr.msk.f32.vlgmr.msra.gmra.mrb[6].mxu1 %vm64_vm1, %v20122_v22  ;;  %18484 = vmatmul.mubr.msk.f32.vlgmr.msra.gmra.mrb[6].mxu0 %vm64_vm1, %v20122_v22 }
  0xca   :  { %18480 = vmatpush1.msk.msra.mxu1 %vm67_vm0, %v20218_v34  ;;  %3496 = vmatprep.mubr.f32.mxu1 %v22403_v2 }
  0xcb   :  { %18489 = vmatpush1.msk.msra.mxu0 %vm67_vm0, %v20223_v35  ;;  %3709 = vmatprep.mubr.f32.mxu0 %v22403_v2 }
  0xcc   :  { %18485 = vmatprep.subr.msk.mxu1 %vm67_vm0, %v20269_v40  ;;  %18493 = vmatprep.subr.msk.mxu0 %vm67_vm0, %v20273_v41 }
  0xcd   :  { %18481 = vmatmul.mubr.msk.f32.vlgmr.msra.gmra.mrb[8].mxu1 %vm64_vm1, %v20122_v22  ;;  %18490 = vmatmul.mubr.msk.f32.vlgmr.msra.gmra.mrb[8].mxu0 %vm64_vm1, %v20122_v22 }
  0xce   :  { %18486 = vmatpush1.msk.msra.mxu1 %vm67_vm0, %v20250_v38  ;;  %3638 = vmatprep.mubr.f32.mxu1 %v22403_v2 }
  0xcf   :  { %18494 = vmatpush1.msk.msra.mxu0 %vm67_vm0, %v20255_v39  ;;  %3960 = vmatprep.mubr.f32.mxu0 %v22403_v2 }
  0xd0   :  { %19095 = vmatprep.subr.mxu1 %v22403_v2  ;;  %18499 = vmatprep.subr.msk.mxu0 %vm67_vm0, %v20296_v43 }
  0xd1   :  { %18487 = vmatmul.mubr.msk.f32.vlgmr.msra.gmra.mrb[10].mxu1 %vm64_vm1, %v20122_v22  ;;  %18495 = vmatmul.mubr.msk.f32.vlgmr.msra.gmra.mrb[10].mxu0 %vm64_vm1, %v20312_v46 }
  0xd2   :  { %19096 = vmatpush3.msk.msra.mxu1 %vm67_vm0, %v20323_v47  ;;  %19097 = vmatprep.mubr.msk.f32.mxu1 %vm19677_vm2, %v22403_v2 }
  0xd3   :  { %18500 = vmatpush1.msk.msra.mxu0 %vm67_vm0, %v20282_v42  ;;  %4102 = vmatprep.mubr.f32.mxu0 %v22403_v2  ;;  %v20381_v2 = vld [vmem:[%s22401_s0 + $0x44] sm:$0xff] }
  0xd4   :  { %18496 = vmatprep.subr.msk.mxu1 %vm67_vm0, %v20330_v48  ;;  %18505 = vmatprep.subr.msk.mxu0 %vm67_vm0, %v20334_v49  ;;  %22523 = vst [vmem:[#allocation13_spill] sm:$0xff] %v20381_v2  ;;  %v22524_v49 = vmov 0.0  }
  0xd5   :  { %19098 = vmatmul.mubr.msk.f32.vlgmr.msra.gmra.mrb[18].mxu1 %vm64_vm1, %v20122_v22  ;;  %18501 = vmatmul.mubr.msk.f32.vlgmr.msra.gmra.mrb[0].mxu0 %vm64_vm1, %v20312_v46  ;;  %v20395_v22 = vcombine.high %v20376_v61, %v20376_v61 }
  0xd6   :  { %18497 = vmatpush1.msk.msra.mxu1 %vm67_vm0, %v20305_v44  ;;  %4031 = vmatprep.mubr.f32.mxu1 %v22524_v49  ;;  %v20399_v44 = vcombine.high %v20381_v2, %v20381_v2 }
  0xd7   :  { %18506 = vmatpush1.msk.msra.mxu0 %vm67_vm0, %v20310_v45  ;;  %4244 = vmatprep.mubr.f32.mxu0 %v22524_v49  ;;  %22525 = vst [vmem:[#allocation14_spill] sm:$0xff] %v20395_v22 }
  0xd8   :  { %18502 = vmatprep.subr.msk.mxu1 %vm67_vm0, %v20363_v52  ;;  %18511 = vmatprep.subr.msk.mxu0 %vm67_vm0, %v20367_v54  ;;  %22526 = vst [vmem:[#allocation15_spill] sm:$0xff] %v20399_v44  ;;  %v20408_v52 = vld [vmem:[%s22401_s0 + $0x3c] sm:$0xff]  ;;  %v20413_v54 = vld [vmem:[%s22401_s0 + $0x54] sm:$0xff] }
  0xd9   :  { %18498 = vmatmul.mubr.msk.f32.vlgmr.msra.gmra.mrb[2].mxu1 %vm64_vm1, %v20312_v46  ;;  %18507 = vmatmul.mubr.msk.f32.vlgmr.msra.gmra.mrb[2].mxu0 %vm64_vm1, %v20312_v46  ;;  %22527 = vst [vmem:[#allocation16_spill] sm:$0xff] %v20408_v52  ;;  %22528 = vst [vmem:[#allocation17_spill] sm:$0xff] %v20413_v54  ;;  %v20427_v45 = vcombine.high %v20408_v52, %v20408_v52 }
  0xda   :  { %18503 = vmatpush1.msk.msra.mxu1 %vm67_vm0, %v20343_v50  ;;  %4173 = vmatprep.mubr.f32.mxu1 %v22524_v49  ;;  %v20431_v50 = vcombine.high %v20413_v54, %v20413_v54 }
  0xdb   :  { %18512 = vmatpush1.msk.msra.mxu0 %vm67_vm0, %v20348_v51  ;;  %4386 = vmatprep.mubr.f32.mxu0 %v22524_v49  ;;  %22529 = vst [vmem:[#allocation18_spill] sm:$0xff] %v20427_v45 }
  0xdc   :  { %18508 = vmatprep.subr.msk.mxu1 %vm67_vm0, %v20395_v22  ;;  %18517 = vmatprep.subr.msk.mxu0 %vm67_vm0, %v20399_v44  ;;  %22530 = vst [vmem:[#allocation19_spill] sm:$0xff] %v20431_v50  ;;  %v20440_v22 = vld [vmem:[%s22401_s0 + $0x4c] sm:$0xff] }
  0xdd   :  { %18504 = vmatmul.mubr.msk.f32.vlgmr.msra.gmra.mrb[4].mxu1 %vm64_vm1, %v20312_v46  ;;  %18513 = vmatmul.mubr.msk.f32.vlgmr.msra.gmra.mrb[4].mxu0 %vm64_vm1, %v20312_v46  ;;  %22531 = vst [vmem:[#allocation20_spill] sm:$0xff] %v20440_v22  ;;  %v20445_v44 = vld [vmem:[%s22401_s0 + $0x68] sm:$0xff]  ;;  %v20459_v51 = vcombine.high %v20440_v22, %v20440_v22 }
  0xde   :  { %22532 = vst [vmem:[#allocation21_spill] sm:$0xff] %v20445_v44  ;;  %18509 = vmatpush1.msk.msra.mxu1 %vm67_vm0, %v20376_v61  ;;  %4315 = vmatprep.mubr.f32.mxu1 %v22524_v49  ;;  %v20463_v61 = vcombine.high %v20445_v44, %v20445_v44 }
  0xdf   :  { %18518 = vmatpush1.msk.msra.mxu0 %vm67_vm0, %v20381_v2  ;;  %4528 = vmatprep.mubr.f32.mxu0 %v22524_v49  ;;  %22533 = vst [vmem:[#allocation22_spill] sm:$0xff] %v20459_v51 }
  0xe0   :  { %18514 = vmatprep.subr.msk.mxu1 %vm67_vm0, %v20427_v45  ;;  %18523 = vmatprep.subr.msk.mxu0 %vm67_vm0, %v20431_v50  ;;  %22534 = vst [vmem:[#allocation23_spill] sm:$0xff] %v20463_v61  ;;  %v20472_v45 = vld [vmem:[%s22401_s0 + $0x78] sm:$0xff] }
  0xe1   :  { %18510 = vmatmul.mubr.msk.f32.vlgmr.msra.gmra.mrb[6].mxu1 %vm64_vm1, %v20312_v46  ;;  %18519 = vmatmul.mubr.msk.f32.vlgmr.msra.gmra.mrb[6].mxu0 %vm64_vm1, %v20312_v46  ;;  %22535 = vst [vmem:[#allocation24_spill] sm:$0xff] %v20472_v45  ;;  %v20486_v50 = vcombine.high %v20472_v45, %v20472_v45 }
  0xe2   :  { %18515 = vmatpush1.msk.msra.mxu1 %vm67_vm0, %v20408_v52  ;;  %4457 = vmatprep.mubr.f32.mxu1 %v22524_v49  ;;  %v20513_v52 = vld [vmem:[%s22401_s0 + $0x5c] sm:$0xf] }
  0xe3   :  { %18524 = vmatpush1.msk.msra.mxu0 %vm67_vm0, %v20413_v54  ;;  %4670 = vmatprep.mubr.f32.mxu0 %v22524_v49  ;;  %22536 = vst [vmem:[#allocation25_spill] sm:$0xff] %v20486_v50  ;;  %v20495_v54 = vld [vmem:[%s22401_s0 + $0x70] sm:$0xff]  ;;  %22540 = vst [vmem:[#allocation29_spill] sm:$0xff] %v20513_v52 }
  0xe4   :  { %18520 = vmatprep.subr.msk.mxu1 %vm67_vm0, %v20459_v51  ;;  %18528 = vmatprep.subr.msk.mxu0 %vm67_vm0, %v20463_v61  ;;  %22537 = vst [vmem:[#allocation26_spill] sm:$0xff] %v20495_v54  ;;  %v20500_v51 = vld [vmem:[%s22401_s0 + $0x88] sm:$0xff]  ;;  %v20502_v61 = vpop.permute.xlu0 %4784 }
  0xe5   :  { %18516 = vmatmul.mubr.msk.f32.vlgmr.msra.gmra.mrb[8].mxu1 %vm64_vm1, %v20312_v46  ;;  %18525 = vmatmul.mubr.msk.f32.vlgmr.msra.gmra.mrb[8].mxu0 %vm64_vm1, %v20312_v46  ;;  %22538 = vst [vmem:[#allocation27_spill] sm:$0xff] %v20500_v51  ;;  %22539 = vst [vmem:[#allocation28_spill] sm:$0xff] %v20502_v61  ;;  %v20524_v2 = vcombine.high %v20500_v51, %v20500_v51 }
  0xe6   :  { %18521 = vmatpush1.msk.msra.mxu1 %vm67_vm0, %v20440_v22  ;;  %4599 = vmatprep.mubr.f32.mxu1 %v22524_v49  ;;  %v20520_v22 = vcombine.high %v20495_v54, %v20495_v54 }
  0xe7   :  { %18529 = vmatpush1.msk.msra.mxu0 %vm67_vm0, %v20445_v44  ;;  %4921 = vmatprep.mubr.f32.mxu0 %v22524_v49  ;;  %22542 = vst [vmem:[#allocation31_spill] sm:$0xff] %v20524_v2  ;;  %v20533_v44 = vld [vmem:[%s22401_s0 + $0x80] sm:$0xff] }
  0xe8   :  { %19100 = vmatprep.subr.mxu1 %v22524_v49  ;;  %18534 = vmatprep.subr.msk.mxu0 %vm67_vm0, %v20486_v50  ;;  %22541 = vst [vmem:[#allocation30_spill] sm:$0xff] %v20520_v22  ;;  %22543 = vst [vmem:[#allocation32_spill] sm:$0xff] %v20533_v44  ;;  %v20538_v50 = vld [vmem:[%s22401_s0 + $0x98] sm:$0xff]  ;;  %v20553_v48 = vcombine.high %v20533_v44, %v20533_v44 }
  0xe9   :  { %18522 = vmatmul.mubr.msk.f32.vlgmr.msra.gmra.mrb[10].mxu1 %vm64_vm1, %v20312_v46  ;;  %18530 = vmatmul.mubr.msk.f32.vlgmr.msra.gmra.mrb[10].mxu0 %vm64_vm1, %v20502_v61  ;;  %22544 = vst [vmem:[#allocation33_spill] sm:$0xff] %v20538_v50 }
  0xea   :  { %19101 = vmatpush3.msk.msra.mxu1 %vm67_vm0, %v20513_v52  ;;  %19102 = vmatprep.mubr.msk.f32.mxu1 %vm19677_vm2, %v22524_v49  ;;  %22545 = vst [vmem:[#allocation34_spill] sm:$0xff] %v20553_v48  ;;  %v20557_v52 = vcombine.high %v20538_v50, %v20538_v50 }
  0xeb   :  { %18535 = vmatpush1.msk.msra.mxu0 %vm67_vm0, %v20472_v45  ;;  %5063 = vmatprep.mubr.f32.mxu0 %v22524_v49 }
  0xec   :  { %18531 = vmatprep.subr.msk.mxu1 %vm67_vm0, %v20520_v22  ;;  %18540 = vmatprep.subr.msk.mxu0 %vm67_vm0, %v20524_v2  ;;  %22546 = vst [vmem:[#allocation35_spill] sm:$0xff] %v20557_v52  ;;  %v20566_v22 = vld [vmem:[%s22401_s0 + $0x90] sm:$0xff]  ;;  %v20571_v2 = vld [vmem:[%s22401_s0 + $0xa8] sm:$0xff] }
  0xed   :  { %19103 = vmatmul.mubr.msk.f32.vlgmr.msra.gmra.mrb[20].mxu1 %vm64_vm1, %v20312_v46  ;;  %18536 = vmatmul.mubr.msk.f32.vlgmr.msra.gmra.mrb[0].mxu0 %vm64_vm1, %v20502_v61  ;;  %22547 = vst [vmem:[#allocation36_spill] sm:$0xff] %v20566_v22  ;;  %22548 = vst [vmem:[#allocation37_spill] sm:$0xff] %v20571_v2  ;;  %v20585_v46 = vcombine.high %v20566_v22, %v20566_v22 }
  0xee   :  { %18532 = vmatpush1.msk.msra.mxu1 %vm67_vm0, %v20495_v54  ;;  %4992 = vmatprep.mubr.f32.mxu1 %v22524_v49  ;;  %v20589_v54 = vcombine.high %v20571_v2, %v20571_v2 }
  0xef   :  { %18541 = vmatpush1.msk.msra.mxu0 %vm67_vm0, %v20500_v51  ;;  %5205 = vmatprep.mubr.f32.mxu0 %v22524_v49  ;;  %22549 = vst [vmem:[#allocation38_spill] sm:$0xff] %v20585_v46 }
  0xf0   :  { %18537 = vmatprep.subr.msk.mxu1 %vm67_vm0, %v20553_v48  ;;  %18546 = vmatprep.subr.msk.mxu0 %vm67_vm0, %v20557_v52  ;;  %22550 = vst [vmem:[#allocation39_spill] sm:$0xff] %v20589_v54  ;;  %v20598_v48 = vld [vmem:[%s22401_s0 + $0xa0] sm:$0xff]  ;;  %v20603_v52 = vld [vmem:[%s22401_s0 + $0xb8] sm:$0xff] }
  0xf1   :  { %18533 = vmatmul.mubr.msk.f32.vlgmr.msra.gmra.mrb[2].mxu1 %vm64_vm1, %v20502_v61  ;;  %18542 = vmatmul.mubr.msk.f32.vlgmr.msra.gmra.mrb[2].mxu0 %vm64_vm1, %v20502_v61  ;;  %22551 = vst [vmem:[#allocation40_spill] sm:$0xff] %v20598_v48  ;;  %22552 = vst [vmem:[#allocation41_spill] sm:$0xff] %v20603_v52  ;;  %v20617_v51 = vcombine.high %v20598_v48, %v20598_v48 }
  0xf2   :  { %18538 = vmatpush1.msk.msra.mxu1 %vm67_vm0, %v20533_v44  ;;  %5134 = vmatprep.mubr.f32.mxu1 %v22524_v49  ;;  %v20621_v44 = vcombine.high %v20603_v52, %v20603_v52 }
  0xf3   :  { %18547 = vmatpush1.msk.msra.mxu0 %vm67_vm0, %v20538_v50  ;;  %5347 = vmatprep.mubr.f32.mxu0 %v22524_v49  ;;  %22553 = vst [vmem:[#allocation42_spill] sm:$0xff] %v20617_v51 }
  0xf4   :  { %18543 = vmatprep.subr.msk.mxu1 %vm67_vm0, %v20585_v46  ;;  %18552 = vmatprep.subr.msk.mxu0 %vm67_vm0, %v20589_v54  ;;  %22554 = vst [vmem:[#allocation43_spill] sm:$0xff] %v20621_v44  ;;  %v20630_v46 = vld [vmem:[%s22401_s0 + $0xb0] sm:$0xff] }
  0xf5   :  { %18539 = vmatmul.mubr.msk.f32.vlgmr.msra.gmra.mrb[4].mxu1 %vm64_vm1, %v20502_v61  ;;  %18548 = vmatmul.mubr.msk.f32.vlgmr.msra.gmra.mrb[4].mxu0 %vm64_vm1, %v20502_v61  ;;  %22555 = vst [vmem:[#allocation44_spill] sm:$0xff] %v20630_v46  ;;  %v20635_v54 = vld [vmem:[%s22401_s0 + $0xcc] sm:$0xff]  ;;  %v20649_v50 = vcombine.high %v20630_v46, %v20630_v46 }
  0xf6   :  { %22556 = vst [vmem:[#allocation45_spill] sm:$0xff] %v20635_v54  ;;  %18544 = vmatpush1.msk.msra.mxu1 %vm67_vm0, %v20566_v22  ;;  %5276 = vmatprep.mubr.f32.mxu1 %v22524_v49  ;;  %v20653_v22 = vcombine.high %v20635_v54, %v20635_v54 }
  0xf7   :  { %18553 = vmatpush1.msk.msra.mxu0 %vm67_vm0, %v20571_v2  ;;  %5489 = vmatprep.mubr.f32.mxu0 %v22524_v49  ;;  %22557 = vst [vmem:[#allocation46_spill] sm:$0xff] %v20649_v50 }
  0xf8   :  { %18549 = vmatprep.subr.msk.mxu1 %vm67_vm0, %v20617_v51  ;;  %18558 = vmatprep.subr.msk.mxu0 %vm67_vm0, %v20621_v44  ;;  %22558 = vst [vmem:[#allocation47_spill] sm:$0xff] %v20653_v22  ;;  %v20662_v51 = vld [vmem:[%s22401_s0 + $0xdc] sm:$0xff] }
  0xf9   :  { %18545 = vmatmul.mubr.msk.f32.vlgmr.msra.gmra.mrb[6].mxu1 %vm64_vm1, %v20502_v61  ;;  %18554 = vmatmul.mubr.msk.f32.vlgmr.msra.gmra.mrb[6].mxu0 %vm64_vm1, %v20502_v61  ;;  %22559 = vst [vmem:[#allocation48_spill] sm:$0xff] %v20662_v51  ;;  %v20676_v44 = vcombine.high %v20662_v51, %v20662_v51 }
  0xfa   :  { %18550 = vmatpush1.msk.msra.mxu1 %vm67_vm0, %v20598_v48  ;;  %5418 = vmatprep.mubr.f32.mxu1 %v22524_v49  ;;  %v20703_v48 = vld [vmem:[%s22401_s0 + $0xc0] sm:$0xf] }
  0xfb   :  { %18559 = vmatpush1.msk.msra.mxu0 %vm67_vm0, %v20603_v52  ;;  %5631 = vmatprep.mubr.f32.mxu0 %v22524_v49  ;;  %22560 = vst [vmem:[#allocation49_spill] sm:$0xff] %v20676_v44  ;;  %v20685_v52 = vld [vmem:[%s22401_s0 + $0xd4] sm:$0xff]  ;;  %22564 = vst [vmem:[#allocation53_spill] sm:$0xff] %v20703_v48 }
  0xfc   :  { %18555 = vmatprep.subr.msk.mxu1 %vm67_vm0, %v20649_v50  ;;  %18563 = vmatprep.subr.msk.mxu0 %vm67_vm0, %v20653_v22  ;;  %22561 = vst [vmem:[#allocation50_spill] sm:$0xff] %v20685_v52  ;;  %v20690_v50 = vld [vmem:[%s22401_s0 + $0xec] sm:$0xff]  ;;  %v20692_v22 = vpop.permute.xlu1 %5745 }
  0xfd   :  { %18551 = vmatmul.mubr.msk.f32.vlgmr.msra.gmra.mrb[8].mxu1 %vm64_vm1, %v20502_v61  ;;  %18560 = vmatmul.mubr.msk.f32.vlgmr.msra.gmra.mrb[8].mxu0 %vm64_vm1, %v20502_v61  ;;  %22562 = vst [vmem:[#allocation51_spill] sm:$0xff] %v20690_v50  ;;  %22563 = vst [vmem:[#allocation52_spill] sm:$0xff] %v20692_v22  ;;  %v20714_v2 = vcombine.high %v20690_v50, %v20690_v50 }
  0xfe   :  { %18556 = vmatpush1.msk.msra.mxu1 %vm67_vm0, %v20630_v46  ;;  %5560 = vmatprep.mubr.f32.mxu1 %v22524_v49  ;;  %v20710_v46 = vcombine.high %v20685_v52, %v20685_v52 }
  0xff   :  { %18564 = vmatpush1.msk.msra.mxu0 %vm67_vm0, %v20635_v54  ;;  %5882 = vmatprep.mubr.f32.mxu0 %v22524_v49  ;;  %22566 = vst [vmem:[#allocation55_spill] sm:$0xff] %v20714_v2  ;;  %v20723_v54 = vld [vmem:[%s22401_s0 + $0xe4] sm:$0xff] }
 0x100   :  { %19105 = vmatprep.subr.mxu1 %v22524_v49  ;;  %18569 = vmatprep.subr.msk.mxu0 %vm67_vm0, %v20676_v44  ;;  %22565 = vst [vmem:[#allocation54_spill] sm:$0xff] %v20710_v46  ;;  %22567 = vst [vmem:[#allocation56_spill] sm:$0xff] %v20723_v54  ;;  %v20728_v44 = vld [vmem:[%s22401_s0 + $0xfc] sm:$0xff]  ;;  %v20743_v45 = vcombine.high %v20723_v54, %v20723_v54 }
 0x101   :  { %18557 = vmatmul.mubr.msk.f32.vlgmr.msra.gmra.mrb[10].mxu1 %vm64_vm1, %v20502_v61  ;;  %18565 = vmatmul.mubr.msk.f32.vlgmr.msra.gmra.mrb[10].mxu0 %vm64_vm1, %v20692_v22  ;;  %22568 = vst [vmem:[#allocation57_spill] sm:$0xff] %v20728_v44 }
 0x102   :  { %19106 = vmatpush3.msk.msra.mxu1 %vm67_vm0, %v20703_v48  ;;  %19107 = vmatprep.mubr.msk.f32.mxu1 %vm19677_vm2, %v22524_v49  ;;  %22569 = vst [vmem:[#allocation58_spill] sm:$0xff] %v20743_v45  ;;  %v20747_v48 = vcombine.high %v20728_v44, %v20728_v44 }
 0x103   :  { %18570 = vmatpush1.msk.msra.mxu0 %vm67_vm0, %v20662_v51  ;;  %6024 = vmatprep.mubr.f32.mxu0 %v22524_v49 }
 0x104   :  { %18566 = vmatprep.subr.msk.mxu1 %vm67_vm0, %v20710_v46  ;;  %18575 = vmatprep.subr.msk.mxu0 %vm67_vm0, %v20714_v2  ;;  %22570 = vst [vmem:[#allocation59_spill] sm:$0xff] %v20747_v48  ;;  %v20756_v46 = vld [vmem:[%s22401_s0 + $0xf4] sm:$0xff]  ;;  %v20761_v2 = vld [vmem:[%s22401_s0 + $0x10c] sm:$0xff] }
 0x105   :  { %19108 = vmatmul.mubr.msk.f32.vlgmr.msra.gmra.mrb[22].mxu1 %vm64_vm1, %v20502_v61  ;;  %18571 = vmatmul.mubr.msk.f32.vlgmr.msra.gmra.mrb[0].mxu0 %vm64_vm1, %v20692_v22  ;;  %22571 = vst [vmem:[#allocation60_spill] sm:$0xff] %v20756_v46  ;;  %22572 = vst [vmem:[#allocation61_spill] sm:$0xff] %v20761_v2  ;;  %v20775_v61 = vcombine.high %v20756_v46, %v20756_v46 }
 0x106   :  { %18567 = vmatpush1.msk.msra.mxu1 %vm67_vm0, %v20685_v52  ;;  %5953 = vmatprep.mubr.f32.mxu1 %v22524_v49  ;;  %v20779_v52 = vcombine.high %v20761_v2, %v20761_v2 }
 0x107   :  { %18576 = vmatpush1.msk.msra.mxu0 %vm67_vm0, %v20690_v50  ;;  %6166 = vmatprep.mubr.f32.mxu0 %v22524_v49  ;;  %22573 = vst [vmem:[#allocation62_spill] sm:$0xff] %v20775_v61 }
 0x108   :  { %18572 = vmatprep.subr.msk.mxu1 %vm67_vm0, %v20743_v45  ;;  %18581 = vmatprep.subr.msk.mxu0 %vm67_vm0, %v20747_v48  ;;  %22574 = vst [vmem:[#allocation63_spill] sm:$0xff] %v20779_v52  ;;  %v20788_v45 = vld [vmem:[%s22401_s0 + $0x104] sm:$0xff]  ;;  %v20793_v48 = vld [vmem:[%s22401_s0 + $0x11c] sm:$0xff] }
 0x109   :  { %18568 = vmatmul.mubr.msk.f32.vlgmr.msra.gmra.mrb[2].mxu1 %vm64_vm1, %v20692_v22  ;;  %18577 = vmatmul.mubr.msk.f32.vlgmr.msra.gmra.mrb[2].mxu0 %vm64_vm1, %v20692_v22  ;;  %22575 = vst [vmem:[#allocation64_spill] sm:$0xff] %v20788_v45  ;;  %22576 = vst [vmem:[#allocation65_spill] sm:$0xff] %v20793_v48  ;;  %v20807_v50 = vcombine.high %v20788_v45, %v20788_v45 }
 0x10a   :  { %18573 = vmatpush1.msk.msra.mxu1 %vm67_vm0, %v20723_v54  ;;  %6095 = vmatprep.mubr.f32.mxu1 %v22524_v49  ;;  %v20811_v54 = vcombine.high %v20793_v48, %v20793_v48 }
 0x10b   :  { %18582 = vmatpush1.msk.msra.mxu0 %vm67_vm0, %v20728_v44  ;;  %6308 = vmatprep.mubr.f32.mxu0 %v22524_v49  ;;  %22577 = vst [vmem:[#allocation66_spill] sm:$0xff] %v20807_v50 }
 0x10c   :  { %18578 = vmatprep.subr.msk.mxu1 %vm67_vm0, %v20775_v61  ;;  %18587 = vmatprep.subr.msk.mxu0 %vm67_vm0, %v20779_v52  ;;  %22578 = vst [vmem:[#allocation67_spill] sm:$0xff] %v20811_v54  ;;  %v20820_v61 = vld [vmem:[%s22401_s0 + $0x114] sm:$0xff]  ;;  %v20825_v52 = vld [vmem:[%s22401_s0 + $0x12c] sm:$0xff] }
 0x10d   :  { %18574 = vmatmul.mubr.msk.f32.vlgmr.msra.gmra.mrb[4].mxu1 %vm64_vm1, %v20692_v22  ;;  %18583 = vmatmul.mubr.msk.f32.vlgmr.msra.gmra.mrb[4].mxu0 %vm64_vm1, %v20692_v22  ;;  %22579 = vst [vmem:[#allocation68_spill] sm:$0xff] %v20820_v61  ;;  %22580 = vst [vmem:[#allocation69_spill] sm:$0xff] %v20825_v52  ;;  %v20839_v44 = vcombine.high %v20820_v61, %v20820_v61 }
 0x10e   :  { %18579 = vmatpush1.msk.msra.mxu1 %vm67_vm0, %v20756_v46  ;;  %6237 = vmatprep.mubr.f32.mxu1 %v22524_v49  ;;  %v20843_v46 = vcombine.high %v20825_v52, %v20825_v52 }
 0x10f   :  { %18588 = vmatpush1.msk.msra.mxu0 %vm67_vm0, %v20761_v2  ;;  %6450 = vmatprep.mubr.f32.mxu0 %v22524_v49  ;;  %22581 = vst [vmem:[#allocation70_spill] sm:$0xff] %v20839_v44 }
 0x110   :  { %18584 = vmatprep.subr.msk.mxu1 %vm67_vm0, %v20807_v50  ;;  %18593 = vmatprep.subr.msk.mxu0 %vm67_vm0, %v20811_v54  ;;  %22582 = vst [vmem:[#allocation71_spill] sm:$0xff] %v20843_v46  ;;  %v20852_v50 = vld [vmem:[%s22401_s0 + $0x13c] sm:$0xff] }
 0x111   :  { %18580 = vmatmul.mubr.msk.f32.vlgmr.msra.gmra.mrb[6].mxu1 %vm64_vm1, %v20692_v22  ;;  %18589 = vmatmul.mubr.msk.f32.vlgmr.msra.gmra.mrb[6].mxu0 %vm64_vm1, %v20692_v22  ;;  %v20866_v54 = vcombine.high %v20852_v50, %v20852_v50 }
 0x112   :  { %18585 = vmatpush1.msk.msra.mxu1 %vm67_vm0, %v20788_v45  ;;  %6379 = vmatprep.mubr.f32.mxu1 %v22524_v49  ;;  %v20893_v45 = vld [vmem:[%s22401_s0 + $0x124] sm:$0xf] }
 0x113   :  { %18594 = vmatpush1.msk.msra.mxu0 %vm67_vm0, %v20793_v48  ;;  %6592 = vmatprep.mubr.f32.mxu0 %v22524_v49  ;;  %22583 = vst [vmem:[#allocation72_spill] sm:$0xff] %v20866_v54  ;;  %v20875_v48 = vld [vmem:[%s22401_s0 + $0x134] sm:$0xff]  ;;  %22586 = vst [vmem:[#allocation75_spill] sm:$0xff] %v20893_v45 }
 0x114   :  { %18590 = vmatprep.subr.msk.mxu1 %vm67_vm0, %v20839_v44  ;;  %18598 = vmatprep.subr.msk.mxu0 %vm67_vm0, %v20843_v46  ;;  %22584 = vst [vmem:[#allocation73_spill] sm:$0xff] %v20875_v48  ;;  %v20880_v44 = vld [vmem:[%s22401_s0 + $0x14c] sm:$0xff]  ;;  %v20882_v46 = vpop.permute.xlu0 %6706 }
 0x115   :  { %18586 = vmatmul.mubr.msk.f32.vlgmr.msra.gmra.mrb[8].mxu1 %vm64_vm1, %v20692_v22  ;;  %18595 = vmatmul.mubr.msk.f32.vlgmr.msra.gmra.mrb[8].mxu0 %vm64_vm1, %v20692_v22  ;;  %22585 = vst [vmem:[#allocation74_spill] sm:$0xff] %v20880_v44  ;;  %v20904_v2 = vcombine.high %v20880_v44, %v20880_v44 }
 0x116   :  { %18591 = vmatpush1.msk.msra.mxu1 %vm67_vm0, %v20820_v61  ;;  %6521 = vmatprep.mubr.f32.mxu1 %v22524_v49  ;;  %v20900_v61 = vcombine.high %v20875_v48, %v20875_v48 }
 0x117   :  { %18599 = vmatpush1.msk.msra.mxu0 %vm67_vm0, %v20825_v52  ;;  %6843 = vmatprep.mubr.f32.mxu0 %v22524_v49  ;;  %22588 = vst [vmem:[#allocation77_spill] sm:$0xff] %v20904_v2  ;;  %v20913_v52 = vld [vmem:[%s22401_s0 + $0x144] sm:$0xff] }
 0x118   :  { %19110 = vmatprep.subr.mxu1 %v22524_v49  ;;  %18604 = vmatprep.subr.msk.mxu0 %vm67_vm0, %v20866_v54  ;;  %22587 = vst [vmem:[#allocation76_spill] sm:$0xff] %v20900_v61  ;;  %22589 = vst [vmem:[#allocation78_spill] sm:$0xff] %v20913_v52  ;;  %v20918_v54 = vld [vmem:[%s22401_s0 + $0x15c] sm:$0xff]  ;;  %v20933_v51 = vcombine.high %v20913_v52, %v20913_v52 }
 0x119   :  { %18592 = vmatmul.mubr.msk.f32.vlgmr.msra.gmra.mrb[10].mxu1 %vm64_vm1, %v20692_v22  ;;  %18600 = vmatmul.mubr.msk.f32.vlgmr.msra.gmra.mrb[10].mxu0 %vm64_vm1, %v20882_v46 }
 0x11a   :  { %19111 = vmatpush3.msk.msra.mxu1 %vm67_vm0, %v20893_v45  ;;  %19112 = vmatprep.mubr.msk.f32.mxu1 %vm19677_vm2, %v22524_v49  ;;  %22590 = vst [vmem:[#allocation79_spill] sm:$0xff] %v20933_v51  ;;  %v20937_v45 = vcombine.high %v20918_v54, %v20918_v54 }
 0x11b   :  { %18605 = vmatpush1.msk.msra.mxu0 %vm67_vm0, %v20852_v50  ;;  %6985 = vmatprep.mubr.f32.mxu0 %v22524_v49 }
 0x11c   :  { %18601 = vmatprep.subr.msk.mxu1 %vm67_vm0, %v20900_v61  ;;  %18610 = vmatprep.subr.msk.mxu0 %vm67_vm0, %v20904_v2  ;;  %22591 = vst [vmem:[#allocation80_spill] sm:$0xff] %v20937_v45  ;;  %v20946_v61 = vld [vmem:[%s22401_s0 + $0x154] sm:$0xff]  ;;  %v20951_v2 = vld [vmem:[%s22401_s0 + $0x16c] sm:$0xff] }
 0x11d   :  { %19113 = vmatmul.mubr.msk.f32.vlgmr.msra.gmra.mrb[24].mxu1 %vm64_vm1, %v20692_v22  ;;  %18606 = vmatmul.mubr.msk.f32.vlgmr.msra.gmra.mrb[0].mxu0 %vm64_vm1, %v20882_v46  ;;  %v20965_v22 = vcombine.high %v20946_v61, %v20946_v61 }
 0x11e   :  { %18602 = vmatpush1.msk.msra.mxu1 %vm67_vm0, %v20875_v48  ;;  %6914 = vmatprep.mubr.f32.mxu1 %v22524_v49  ;;  %v20969_v48 = vcombine.high %v20951_v2, %v20951_v2 }
 0x11f   :  { %18611 = vmatpush1.msk.msra.mxu0 %vm67_vm0, %v20880_v44  ;;  %7127 = vmatprep.mubr.f32.mxu0 %v22524_v49  ;;  %22592 = vst [vmem:[#allocation81_spill] sm:$0xff] %v20965_v22 }
 0x120   :  { %18607 = vmatprep.subr.msk.mxu1 %vm67_vm0, %v20933_v51  ;;  %18616 = vmatprep.subr.msk.mxu0 %vm67_vm0, %v20937_v45  ;;  %22593 = vst [vmem:[#allocation82_spill] sm:$0xff] %v20969_v48  ;;  %v20978_v51 = vld [vmem:[%s22401_s0 + $0x164] sm:$0xff]  ;;  %v20983_v45 = vld [vmem:[%s22401_s0 + $0x17c] sm:$0xff] }
 0x121   :  { %18603 = vmatmul.mubr.msk.f32.vlgmr.msra.gmra.mrb[2].mxu1 %vm64_vm1, %v20882_v46  ;;  %18612 = vmatmul.mubr.msk.f32.vlgmr.msra.gmra.mrb[2].mxu0 %vm64_vm1, %v20882_v46  ;;  %v20997_v44 = vcombine.high %v20978_v51, %v20978_v51 }
 0x122   :  { %18608 = vmatpush1.msk.msra.mxu1 %vm67_vm0, %v20913_v52  ;;  %7056 = vmatprep.mubr.f32.mxu1 %v22524_v49  ;;  %v21001_v52 = vcombine.high %v20983_v45, %v20983_v45 }
 0x123   :  { %18617 = vmatpush1.msk.msra.mxu0 %vm67_vm0, %v20918_v54  ;;  %7269 = vmatprep.mubr.f32.mxu0 %v22524_v49 }
 0x124   :  { %18613 = vmatprep.subr.msk.mxu1 %vm67_vm0, %v20965_v22  ;;  %18622 = vmatprep.subr.msk.mxu0 %vm67_vm0, %v20969_v48  ;;  %v21010_v22 = vld [vmem:[%s22401_s0 + $0x174] sm:$0xff] }
 0x125   :  { %18609 = vmatmul.mubr.msk.f32.vlgmr.msra.gmra.mrb[4].mxu1 %vm64_vm1, %v20882_v46  ;;  %18618 = vmatmul.mubr.msk.f32.vlgmr.msra.gmra.mrb[4].mxu0 %vm64_vm1, %v20882_v46  ;;  %v21024_v48 = vcombine.high %v21010_v22, %v21010_v22 }
 0x126   :  { %18614 = vmatpush1.msk.msra.mxu1 %vm67_vm0, %v20946_v61  ;;  %7198 = vmatprep.mubr.f32.mxu1 %v22524_v49 }
 0x127   :  { %18623 = vmatpush1.msk.msra.mxu0 %vm67_vm0, %v20951_v2  ;;  %7411 = vmatprep.mubr.f32.mxu0 %v22524_v49 }
 0x128   :  { %18619 = vmatprep.subr.msk.mxu1 %vm67_vm0, %v20997_v44  ;;  %18628 = vmatprep.subr.msk.mxu0 %vm67_vm0, %v21001_v52 }
 0x129   :  { %18615 = vmatmul.mubr.msk.f32.vlgmr.msra.gmra.mrb[6].mxu1 %vm64_vm1, %v20882_v46  ;;  %18624 = vmatmul.mubr.msk.f32.vlgmr.msra.gmra.mrb[6].mxu0 %vm64_vm1, %v20882_v46 }
 0x12a   :  { %18620 = vmatpush1.msk.msra.mxu1 %vm67_vm0, %v20978_v51  ;;  %7340 = vmatprep.mubr.f32.mxu1 %v22524_v49 }
 0x12b   :  { %18629 = vmatpush1.msk.msra.mxu0 %vm67_vm0, %v20983_v45  ;;  %7553 = vmatprep.mubr.f32.mxu0 %v22524_v49 }
 0x12c   :  { %18625 = vmatprep.subr.msk.mxu1 %vm67_vm0, %v21024_v48  ;;  %18633 = vmatprep.subr.msk.mxu0 %vm67_vm0, %v20083_v16  ;;  %v21053_v16 = vld [vmem:[%s22401_s0 + $0x184] sm:$0xf] }
 0x12d   :  { %18621 = vmatmul.mubr.msk.f32.vlgmr.msra.gmra.mrb[8].mxu1 %vm64_vm1, %v20882_v46  ;;  %18630 = vmatmul.mubr.msk.f32.vlgmr.msra.gmra.mrb[8].mxu0 %vm64_vm1, %v20882_v46 }
 0x12e   :  { %18626 = vmatpush1.msk.msra.mxu1 %vm67_vm0, %v21010_v22  ;;  %7482 = vmatprep.mubr.f32.mxu1 %v22524_v49 }
 0x12f   :  { %18634 = vmatpush1.msk.msra.mxu0 %vm67_vm0, %v20065_v14  ;;  %7767 = vmatprep.mubr.f32.mxu0 %v22524_v49 }
 0x130   :  { %19115 = vmatprep.subr.mxu1 %v22524_v49  ;;  %18639 = vmatprep.subr.msk.mxu0 %vm67_vm0, %v20106_v19 }
 0x131   :  { %18627 = vmatmul.mubr.msk.f32.vlgmr.msra.gmra.mrb[10].mxu1 %vm64_vm1, %v20882_v46  ;;  %18635 = vmatmul.mubr.msk.f32.vlgmr.msra.gmra.mrb[12].mxu0 %vm64_vm1, %v19749_v18 }
 0x132   :  { %19116 = vmatpush3.msk.msra.mxu1 %vm67_vm0, %v21053_v16  ;;  %19117 = vmatprep.mubr.msk.f32.mxu1 %vm19677_vm2, %v22524_v49 }
 0x133   :  { %18640 = vmatpush1.msk.msra.mxu0 %vm67_vm0, %v20092_v17  ;;  %7909 = vmatprep.mubr.f32.mxu0 %v22524_v49  ;;  %v21151_v17 = vld [vmem:[%s22400_s1] sm:$0xf] }
 0x134   :  { %18636 = vmatprep.subr.msk.mxu1 %vm67_vm0, %v20140_v24  ;;  %18645 = vmatprep.subr.msk.mxu0 %vm67_vm0, %v20144_v25  ;;  %v22615_v25 = vld [vmem:[#allocation25_spill] sm:$0xff] }
 0x135   :  { %19118 = vmatmul.mubr.msk.f32.vlgmr.msra.gmra.mrb[26].mxu1 %vm64_vm1, %v20882_v46  ;;  %18641 = vmatmul.mubr.msk.f32.vlgmr.msra.gmra.mrb[14].mxu0 %vm64_vm1, %v19749_v18 }
 0x136   :  { %18637 = vmatpush1.msk.msra.mxu1 %vm67_vm0, %v20115_v20  ;;  %7838 = vmatprep.mubr.f32.mxu1 %v22524_v49  ;;  %v22613_v20 = vld [vmem:[#allocation21_spill] sm:$0xff] }
 0x137   :  { %18646 = vmatpush1.msk.msra.mxu0 %vm67_vm0, %v20120_v21  ;;  %8051 = vmatprep.mubr.f32.mxu0 %v22524_v49 }
 0x138   :  { %18642 = vmatprep.subr.msk.mxu1 %vm67_vm0, %v20173_v28  ;;  %18651 = vmatprep.subr.msk.mxu0 %vm67_vm0, %v20177_v29  ;;  %v22618_v28 = vld [vmem:[#allocation30_spill] sm:$0xff]  ;;  %v22619_v29 = vld [vmem:[#allocation31_spill] sm:$0xff] }
 0x139   :  { %18638 = vmatmul.mubr.msk.f32.vlgmr.msra.gmra.mrb[28].mxu1 %vm64_vm1, %v19749_v18  ;;  %18647 = vmatmul.mubr.msk.f32.vlgmr.msra.gmra.mrb[16].mxu0 %vm64_vm1, %v19749_v18 }
 0x13a   :  { %18643 = vmatpush1.msk.msra.mxu1 %vm67_vm0, %v20153_v26  ;;  %7980 = vmatprep.mubr.f32.mxu1 %v22524_v49  ;;  %v22616_v26 = vld [vmem:[#allocation29_spill] sm:$0xff] }
 0x13b   :  { %18652 = vmatpush1.msk.msra.mxu0 %vm67_vm0, %v20158_v27  ;;  %8193 = vmatprep.mubr.f32.mxu0 %v22524_v49  ;;  %v22617_v27 = vld [vmem:[#allocation24_spill] sm:$0xff] }
 0x13c   :  { %18648 = vmatprep.subr.msk.mxu1 %vm67_vm0, %v20205_v32  ;;  %18657 = vmatprep.subr.msk.mxu0 %vm67_vm0, %v20209_v33  ;;  %v22623_v32 = vld [vmem:[#allocation35_spill] sm:$0xff]  ;;  %v22624_v33 = vld [vmem:[#allocation32_spill] sm:$0xff] }
 0x13d   :  { %18644 = vmatmul.mubr.msk.f32.vlgmr.msra.gmra.mrb[30].mxu1 %vm64_vm1, %v19749_v18  ;;  %18653 = vmatmul.mubr.msk.f32.vlgmr.msra.gmra.mrb[18].mxu0 %vm64_vm1, %v19749_v18 }
 0x13e   :  { %18649 = vmatpush1.msk.msra.mxu1 %vm67_vm0, %v20186_v30  ;;  %8122 = vmatprep.mubr.f32.mxu1 %v22524_v49  ;;  %v22620_v30 = vld [vmem:[#allocation26_spill] sm:$0xff] }
 0x13f   :  { %18658 = vmatpush1.msk.msra.mxu0 %vm67_vm0, %v20191_v31  ;;  %8335 = vmatprep.mubr.f32.mxu0 %v22524_v49  ;;  %v22621_v31 = vld [vmem:[#allocation27_spill] sm:$0xff] }
 0x140   :  { %18654 = vmatprep.subr.msk.mxu1 %vm67_vm0, %v20237_v36  ;;  %18663 = vmatprep.subr.msk.mxu0 %vm67_vm0, %v20241_v37  ;;  %v22627_v36 = vld [vmem:[#allocation39_spill] sm:$0xff]  ;;  %v22628_v37 = vld [vmem:[#allocation36_spill] sm:$0xff] }
 0x141   :  { %18650 = vmatmul.mubr.msk.f32.vlgmr.msra.gmra.mrb[32].mxu1 %vm64_vm1, %v19749_v18  ;;  %18659 = vmatmul.mubr.msk.f32.vlgmr.msra.gmra.mrb[20].mxu0 %vm64_vm1, %v19749_v18 }
 0x142   :  { %18655 = vmatpush1.msk.msra.mxu1 %vm67_vm0, %v20218_v34  ;;  %8264 = vmatprep.mubr.f32.mxu1 %v22524_v49  ;;  %v22625_v34 = vld [vmem:[#allocation33_spill] sm:$0xff] }
 0x143   :  { %18664 = vmatpush1.msk.msra.mxu0 %vm67_vm0, %v20223_v35  ;;  %8477 = vmatprep.mubr.f32.mxu0 %v22524_v49  ;;  %v22626_v35 = vld [vmem:[#allocation38_spill] sm:$0xff] }
 0x144   :  { %18660 = vmatprep.subr.msk.mxu1 %vm67_vm0, %v20269_v40  ;;  %18668 = vmatprep.subr.msk.mxu0 %vm67_vm0, %v19900_v55  ;;  %v22631_v40 = vld [vmem:[#allocation43_spill] sm:$0xff] }
 0x145   :  { %18656 = vmatmul.mubr.msk.f32.vlgmr.msra.gmra.mrb[34].mxu1 %vm64_vm1, %v19749_v18  ;;  %18665 = vmatmul.mubr.msk.f32.vlgmr.msra.gmra.mrb[22].mxu0 %vm64_vm1, %v19749_v18 }
 0x146   :  { %18661 = vmatpush1.msk.msra.mxu1 %vm67_vm0, %v20250_v38  ;;  %8406 = vmatprep.mubr.f32.mxu1 %v22524_v49  ;;  %v22629_v38 = vld [vmem:[#allocation37_spill] sm:$0xff] }
 0x147   :  { %18669 = vmatpush1.msk.msra.mxu0 %vm67_vm0, %v19890_v53  ;;  %8618 = vmatprep.mubr.f32.mxu0 %v22524_v49 }
 0x148   :  { %v21139_v14 = vpop.f32.mrb[0].mxu1  ;;  %19120 = vmatprep.subr.mxu1 %v22524_v49  ;;  %18674 = vmatprep.subr.msk.mxu0 %vm67_vm0, %v19920_v57  ;;  %v22595_v57 = vld [vmem:[#allocation7_spill] sm:$0xff] }
 0x149   :  { %v21144_v55 = vpop.f32.mrb[1].mxu1  ;;  %18662 = vmatmul.mubr.msk.f32.vlgmr.msra.gmra.mrb[36].mxu1 %vm64_vm1, %v19749_v18  ;;  %18670 = vmatmul.mubr.msk.f32.vlgmr.msra.gmra.mrb[12].mxu0 %vm64_vm1, %v21151_v17 }
 0x14a   :  { %19121 = vmatpush3.msk.msra.mxu1 %vm67_vm0, %v20323_v47  ;;  %19122 = vmatprep.mubr.msk.f32.mxu1 %vm19677_vm2, %v22524_v49  ;;  %v22635_v47 = vld [vmem:[#allocation47_spill] sm:$0xff] }
 0x14b   :  { %18675 = vmatpush1.msk.msra.mxu0 %vm67_vm0, %v19909_v56  ;;  %8760 = vmatprep.mubr.f32.mxu0 %v22524_v49  ;;  %v22594_v56 = vld [vmem:[#allocation6_spill] sm:$0xff] }
 0x14c   :  { %18671 = vmatprep.subr.msk.mxu1 %vm67_vm0, %v19951_v62  ;;  %18680 = vmatprep.subr.msk.mxu0 %vm67_vm0, %v19955_v63  ;;  %v22598_v62 = vld [vmem:[#allocation10_spill] sm:$0xff]  ;;  %v22599_v63 = vld [vmem:[#allocation11_spill] sm:$0xff] }
 0x14d   :  { %19123 = vmatmul.mubr.msk.f32.vlgmr.msra.gmra.mrb[38].mxu1 %vm64_vm1, %v19749_v18  ;;  %18676 = vmatmul.mubr.msk.f32.vlgmr.msra.gmra.mrb[14].mxu0 %vm64_vm1, %v21151_v17 }
 0x14e   :  { %18672 = vmatpush1.msk.msra.mxu1 %vm67_vm0, %v19929_v58  ;;  %8689 = vmatprep.mubr.f32.mxu1 %v22524_v49  ;;  %v22596_v58 = vld [vmem:[#allocation3_spill] sm:$0xff] }
 0x14f   :  { %18681 = vmatpush1.msk.msra.mxu0 %vm67_vm0, %v19934_v59  ;;  %8902 = vmatprep.mubr.f32.mxu0 %v22524_v49  ;;  %v22597_v59 = vld [vmem:[#allocation4_spill] sm:$0xff] }
 0x150   :  { %18677 = vmatprep.subr.msk.mxu1 %vm67_vm0, %v19983_v4  ;;  %18686 = vmatprep.subr.msk.mxu0 %vm67_vm0, %v19987_v5  ;;  %v19678_v4 = vmov 32   ;;  %v22602_v5 = vld [vmem:[#allocation14_spill] sm:$0xff] }
 0x151   :  { %18673 = vmatmul.mubr.msk.f32.vlgmr.msra.gmra.mrb[28].mxu1 %vm64_vm1, %v21151_v17  ;;  %18682 = vmatmul.mubr.msk.f32.vlgmr.msra.gmra.mrb[16].mxu0 %vm64_vm1, %v21151_v17 }
 0x152   :  { %18678 = vmatpush1.msk.msra.mxu1 %vm67_vm0, %v19964_v1  ;;  %8831 = vmatprep.mubr.f32.mxu1 %v22524_v49  ;;  %v22600_v1 = vld [vmem:[#allocation8_spill] sm:$0xff] }
 0x153   :  { %18687 = vmatpush1.msk.msra.mxu0 %vm67_vm0, %v19969_v3  ;;  %9044 = vmatprep.mubr.f32.mxu0 %v22524_v49  ;;  %v22601_v3 = vld [vmem:[#allocation9_spill] sm:$0xff] }
 0x154   :  { %18683 = vmatprep.subr.msk.mxu1 %vm67_vm0, %v20015_v0  ;;  %18692 = vmatprep.subr.msk.mxu0 %vm67_vm0, %v20019_v8  ;;  %v22605_v0 = vld [vmem:[#allocation13_spill] sm:$0xff]  ;;  %v22606_v8 = vld [vmem:[#allocation18_spill] sm:$0xff] }
 0x155   :  { %18679 = vmatmul.mubr.msk.f32.vlgmr.msra.gmra.mrb[30].mxu1 %vm64_vm1, %v21151_v17  ;;  %18688 = vmatmul.mubr.msk.f32.vlgmr.msra.gmra.mrb[18].mxu0 %vm64_vm1, %v21151_v17 }
 0x156   :  { %18684 = vmatpush1.msk.msra.mxu1 %vm67_vm0, %v19996_v6  ;;  %8973 = vmatprep.mubr.f32.mxu1 %v22524_v49  ;;  %v22603_v6 = vld [vmem:[#allocation15_spill] sm:$0xff] }
 0x157   :  { %18693 = vmatpush1.msk.msra.mxu0 %vm67_vm0, %v20001_v7  ;;  %9186 = vmatprep.mubr.f32.mxu0 %v22524_v49  ;;  %v22604_v7 = vld [vmem:[#allocation12_spill] sm:$0xff] }
 0x158   :  { %18689 = vmatprep.subr.msk.mxu1 %vm67_vm0, %v20047_v11  ;;  %18698 = vmatprep.subr.msk.mxu0 %vm67_vm0, %v20051_v12  ;;  %v22609_v11 = vld [vmem:[#allocation17_spill] sm:$0xff]  ;;  %v22610_v12 = vld [vmem:[#allocation22_spill] sm:$0xff] }
 0x159   :  { %18685 = vmatmul.mubr.msk.f32.vlgmr.msra.gmra.mrb[32].mxu1 %vm64_vm1, %v21151_v17  ;;  %18694 = vmatmul.mubr.msk.f32.vlgmr.msra.gmra.mrb[20].mxu0 %vm64_vm1, %v21151_v17 }
 0x15a   :  { %18690 = vmatpush1.msk.msra.mxu1 %vm67_vm0, %v20028_v9  ;;  %9115 = vmatprep.mubr.f32.mxu1 %v22524_v49  ;;  %v22607_v9 = vld [vmem:[#allocation19_spill] sm:$0xff] }
 0x15b   :  { %18699 = vmatpush1.msk.msra.mxu0 %vm67_vm0, %v20033_v10  ;;  %9328 = vmatprep.mubr.f32.mxu0 %v22524_v49  ;;  %v22608_v10 = vld [vmem:[#allocation16_spill] sm:$0xff] }
 0x15c   :  { %18695 = vmatprep.subr.msk.mxu1 %vm67_vm0, %v20079_v15  ;;  %18703 = vmatprep.subr.msk.mxu0 %vm67_vm0, %v20273_v41  ;;  %v22612_v15 = vld [vmem:[#allocation20_spill] sm:$0xff] }
 0x15d   :  { %18691 = vmatmul.mubr.msk.f32.vlgmr.msra.gmra.mrb[34].mxu1 %vm64_vm1, %v21151_v17  ;;  %18700 = vmatmul.mubr.msk.f32.vlgmr.msra.gmra.mrb[22].mxu0 %vm64_vm1, %v21151_v17  ;;  %v22632_v41 = vld [vmem:[#allocation40_spill] sm:$0xff] }
 0x15e   :  { %18696 = vmatpush1.msk.msra.mxu1 %vm67_vm0, %v20060_v13  ;;  %9257 = vmatprep.mubr.f32.mxu1 %v22524_v49  ;;  %v22611_v13 = vld [vmem:[#allocation23_spill] sm:$0xff] }
 0x15f   :  { %18704 = vmatpush1.msk.msra.mxu0 %vm67_vm0, %v20255_v39  ;;  %9469 = vmatprep.mubr.f32.mxu0 %v22524_v49  ;;  %v22630_v39 = vld [vmem:[#allocation42_spill] sm:$0xff] }
 0x160   :  { %v961_v18 = vpop.f32.mrb[12].mxu1  ;;  %19125 = vmatprep.subr.mxu1 %v22524_v49  ;;  %18709 = vmatprep.subr.msk.mxu0 %vm67_vm0, %v20296_v43  ;;  %v22634_v43 = vld [vmem:[#allocation46_spill] sm:$0xff] }
 0x161   :  { %v19084_v53 = vpop.f32.mrb[13].mxu1  ;;  %18697 = vmatmul.mubr.msk.f32.vlgmr.msra.gmra.mrb[36].mxu1 %vm64_vm1, %v21151_v17  ;;  %18705 = vmatmul.mubr.msk.f32.vlgmr.msra.gmra.mrb[12].mxu0 %vm64_vm1, %v19936_v60 }
 0x162   :  { %19126 = vmatpush3.msk.msra.mxu1 %vm67_vm0, %v20133_v23  ;;  %19127 = vmatprep.mubr.msk.f32.mxu1 %vm19677_vm2, %v22524_v49  ;;  %v22614_v23 = vld [vmem:[#allocation2_spill] sm:$0xff]  ;;  %v22637_v53 = vld [vmem:[#allocation45_spill] sm:$0xff] }
 0x163   :  { %18710 = vmatpush1.msk.msra.mxu0 %vm67_vm0, %v20282_v42  ;;  %9611 = vmatprep.mubr.f32.mxu0 %v22524_v49  ;;  %v22633_v42 = vld [vmem:[#allocation41_spill] sm:$0xff] }
 0x164   :  { %18706 = vmatprep.subr.msk.mxu1 %vm67_vm0, %v22594_v56  ;;  %18715 = vmatprep.subr.msk.mxu0 %vm67_vm0, %v22595_v57 }
 0x165   :  { %19128 = vmatmul.mubr.msk.f32.vlgmr.msra.gmra.mrb[40].mxu1 %vm64_vm1, %v21151_v17  ;;  %18711 = vmatmul.mubr.msk.f32.vlgmr.msra.gmra.mrb[14].mxu0 %vm64_vm1, %v19936_v60 }
 0x166   :  { %18707 = vmatpush1.msk.msra.mxu1 %vm67_vm0, %v22596_v58  ;;  %9540 = vmatprep.mubr.f32.mxu1 %v22524_v49  ;;  %v22638_v58 = vld [vmem:[#allocation5_spill] sm:$0xff] }
 0x167   :  { %18716 = vmatpush1.msk.msra.mxu0 %vm67_vm0, %v22597_v59  ;;  %9753 = vmatprep.mubr.f32.mxu0 %v22524_v49  ;;  %v22639_v59 = vld [vmem:[#allocation49_spill] sm:$0xff] }
 0x168   :  { %18712 = vmatprep.subr.msk.mxu1 %vm67_vm0, %v22598_v62  ;;  %18721 = vmatprep.subr.msk.mxu0 %vm67_vm0, %v22599_v63  ;;  %v22640_v62 = vld [vmem:[#allocation53_spill] sm:$0xff]  ;;  %v22641_v63 = vld [vmem:[#allocation48_spill] sm:$0xff] }
 0x169   :  { %18708 = vmatmul.mubr.msk.f32.vlgmr.msra.gmra.mrb[28].mxu1 %vm64_vm1, %v19936_v60  ;;  %18717 = vmatmul.mubr.msk.f32.vlgmr.msra.gmra.mrb[16].mxu0 %vm64_vm1, %v19936_v60 }
 0x16a   :  { %18713 = vmatpush1.msk.msra.mxu1 %vm67_vm0, %v22600_v1  ;;  %9682 = vmatprep.mubr.f32.mxu1 %v22524_v49  ;;  %v22642_v1 = vld [vmem:[#allocation54_spill] sm:$0xff] }
 0x16b   :  { %18722 = vmatpush1.msk.msra.mxu0 %vm67_vm0, %v22601_v3  ;;  %9895 = vmatprep.mubr.f32.mxu0 %v22524_v49  ;;  %v22643_v3 = vld [vmem:[#allocation55_spill] sm:$0xff] }
 0x16c   :  { %19551 = vset.pattern.permute.xlu1 %v19678_v4  ;;  %18718 = vmatprep.subr.msk.mxu1 %vm67_vm0, %v22602_v5  ;;  %v22644_v4 = vld [vmem:[#allocation50_spill] sm:$0xff]  ;;  %v22645_v5 = vld [vmem:[#allocation51_spill] sm:$0xff] }
 0x16d   :  { %18714 = vmatmul.mubr.msk.f32.vlgmr.msra.gmra.mrb[30].mxu1 %vm64_vm1, %v19936_v60  ;;  %18723 = vmatmul.mubr.msk.f32.vlgmr.msra.gmra.mrb[18].mxu0 %vm64_vm1, %v19936_v60 }
 0x16e   :  { %7654 = vperm.xlu1 %19551, %v21151_v17   ;;  %18727 = vmatprep.subr.msk.mxu0 %vm67_vm0, %v22603_v6  ;;  %v22636_v17 = vld [vmem:[#allocation44_spill] sm:$0xff]  ;;  %v22646_v6 = vld [vmem:[#allocation58_spill] sm:$0xff] }
 0x16f   :  { %18719 = vmatpush1.msk.msra.mxu1 %vm67_vm0, %v22604_v7  ;;  %9824 = vmatprep.mubr.f32.mxu1 %v22524_v49  ;;  %v22647_v7 = vld [vmem:[#allocation59_spill] sm:$0xff] }
 0x170   :  { %18728 = vmatpush1.msk.msra.mxu0 %vm67_vm0, %v22605_v0  ;;  %10037 = vmatprep.mubr.f32.mxu0 %v22524_v49  ;;  %v22648_v0 = vld [vmem:[#allocation56_spill] sm:$0xff] }
 0x171   :  { %18720 = vmatmul.mubr.msk.f32.vlgmr.msra.gmra.mrb[32].mxu1 %vm64_vm1, %v19936_v60  ;;  %18729 = vmatmul.mubr.msk.f32.vlgmr.msra.gmra.mrb[20].mxu0 %vm64_vm1, %v19936_v60 }
 0x172   :  { %18724 = vmatprep.subr.msk.mxu1 %vm67_vm0, %v22606_v8  ;;  %18733 = vmatprep.subr.msk.mxu0 %vm67_vm0, %v22607_v9  ;;  %v22649_v8 = vld [vmem:[#allocation57_spill] sm:$0xff]  ;;  %v22650_v9 = vld [vmem:[#allocation62_spill] sm:$0xff] }
 0x173   :  { %18725 = vmatpush1.msk.msra.mxu1 %vm67_vm0, %v22608_v10  ;;  %9966 = vmatprep.mubr.f32.mxu1 %v22524_v49  ;;  %v22651_v10 = vld [vmem:[#allocation63_spill] sm:$0xff] }
 0x174   :  { %18734 = vmatpush1.msk.msra.mxu0 %vm67_vm0, %v22609_v11  ;;  %10179 = vmatprep.mubr.f32.mxu0 %v22524_v49  ;;  %v22652_v11 = vld [vmem:[#allocation60_spill] sm:$0xff] }
 0x175   :  { %18726 = vmatmul.mubr.msk.f32.vlgmr.msra.gmra.mrb[34].mxu1 %vm64_vm1, %v19936_v60  ;;  %18735 = vmatmul.mubr.msk.f32.vlgmr.msra.gmra.mrb[22].mxu0 %vm64_vm1, %v19936_v60 }
 0x176   :  { %18730 = vmatprep.subr.msk.mxu1 %vm67_vm0, %v22610_v12  ;;  %18738 = vmatprep.subr.msk.mxu0 %vm67_vm0, %v22611_v13  ;;  %v22653_v12 = vld [vmem:[#allocation61_spill] sm:$0xff]  ;;  %v22654_v13 = vld [vmem:[#allocation66_spill] sm:$0xff] }
 0x177   :  { %18731 = vmatpush1.msk.msra.mxu1 %vm67_vm0, %v22612_v15  ;;  %10108 = vmatprep.mubr.f32.mxu1 %v22524_v49  ;;  %v22655_v15 = vld [vmem:[#allocation67_spill] sm:$0xff] }
 0x178   :  { %v1883_v19 = vpop.f32.mrb[14].mxu1  ;;  %18739 = vmatpush1.msk.msra.mxu0 %vm67_vm0, %v22613_v20  ;;  %10343 = vmatprep.mubr.f32.mxu0 %v22524_v49  ;;  %v22657_v20 = vld [vmem:[#allocation65_spill] sm:$0xff] }
 0x179   :  { %v1884_v21 = vadd.f32 %v1883_v19, %v961_v18  ;;  %18732 = vmatmul.mubr.msk.f32.vlgmr.msra.gmra.mrb[36].mxu1 %vm64_vm1, %v19936_v60  ;;  %18740 = vmatmul.mubr.msk.f32.vlgmr.msra.gmra.mrb[12].mxu0 %vm64_vm1, %v22614_v23  ;;  %v19089_v24 = vpop.f32.mrb[15].mxu1  ;;  %v22656_v19 = vld [vmem:[#allocation64_spill] sm:$0xff] }
 0x17a   :  { %19130 = vmatprep.subr.mxu1 %v22524_v49  ;;  %18744 = vmatprep.subr.msk.mxu0 %vm67_vm0, %v22615_v25  ;;  %v22660_v24 = vld [vmem:[#allocation68_spill] sm:$0xff] }
 0x17b   :  { %19131 = vmatpush3.msk.msra.mxu1 %vm67_vm0, %v22616_v26  ;;  %19132 = vmatprep.mubr.msk.f32.mxu1 %vm19677_vm2, %v22524_v49  ;;  %v22661_v26 = vld [vmem:[#allocation69_spill] sm:$0xff] }
 0x17c   :  { %18745 = vmatpush1.msk.msra.mxu0 %vm67_vm0, %v22617_v27  ;;  %10485 = vmatprep.mubr.f32.mxu0 %v22524_v49 }
 0x17d   :  { %19133 = vmatmul.mubr.msk.f32.vlgmr.msra.gmra.mrb[42].mxu1 %vm64_vm1, %v19936_v60  ;;  %18746 = vmatmul.mubr.msk.f32.vlgmr.msra.gmra.mrb[14].mxu0 %vm64_vm1, %v22614_v23  ;;  %v22622_v60 = vld [vmem:[#allocation34_spill] sm:$0xff] }
 0x17e   :  { %18741 = vmatprep.subr.msk.mxu1 %vm67_vm0, %v22618_v28  ;;  %18750 = vmatprep.subr.msk.mxu0 %vm67_vm0, %v22619_v29  ;;  %v22662_v29 = vld [vmem:[#allocation28_spill] sm:$0xff] }
 0x17f   :  { %18742 = vmatpush1.msk.msra.mxu1 %vm67_vm0, %v22620_v30  ;;  %10414 = vmatprep.mubr.f32.mxu1 %v22524_v49  ;;  %v22663_v30 = vld [vmem:[#allocation72_spill] sm:$0xff] }
 0x180   :  { %18751 = vmatpush1.msk.msra.mxu0 %vm67_vm0, %v22621_v31  ;;  %10627 = vmatprep.mubr.f32.mxu0 %v22524_v49  ;;  %v22664_v31 = vld [vmem:[#allocation75_spill] sm:$0xff] }
 0x181   :  { %18743 = vmatmul.mubr.msk.f32.vlgmr.msra.gmra.mrb[28].mxu1 %vm64_vm1, %v22614_v23  ;;  %18752 = vmatmul.mubr.msk.f32.vlgmr.msra.gmra.mrb[16].mxu0 %vm64_vm1, %v22614_v23 }
 0x182   :  { %18747 = vmatprep.subr.msk.mxu1 %vm67_vm0, %v22622_v60  ;;  %18756 = vmatprep.subr.msk.mxu0 %vm67_vm0, %v22623_v32  ;;  %v22665_v60 = vld [vmem:[#allocation76_spill] sm:$0xff]  ;;  %v22666_v32 = vld [vmem:[#allocation77_spill] sm:$0xff] }
 0x183   :  { %18748 = vmatpush1.msk.msra.mxu1 %vm67_vm0, %v22624_v33  ;;  %10556 = vmatprep.mubr.f32.mxu1 %v22524_v49  ;;  %v22667_v33 = vld [vmem:[#allocation73_spill] sm:$0xff] }
 0x184   :  { %18757 = vmatpush1.msk.msra.mxu0 %vm67_vm0, %v22625_v34  ;;  %10769 = vmatprep.mubr.f32.mxu0 %v22524_v49  ;;  %v22669_v34 = vld [vmem:[#allocation79_spill] sm:$0xff] }
 0x185   :  { %18749 = vmatmul.mubr.msk.f32.vlgmr.msra.gmra.mrb[30].mxu1 %vm64_vm1, %v22614_v23  ;;  %18758 = vmatmul.mubr.msk.f32.vlgmr.msra.gmra.mrb[18].mxu0 %vm64_vm1, %v22614_v23 }
 0x186   :  { %18753 = vmatprep.subr.msk.mxu1 %vm67_vm0, %v22626_v35  ;;  %18762 = vmatprep.subr.msk.mxu0 %vm67_vm0, %v22627_v36  ;;  %v22670_v35 = vld [vmem:[#allocation80_spill] sm:$0xff]  ;;  %v22671_v36 = vld [vmem:[#allocation78_spill] sm:$0xff] }
 0x187   :  { %18754 = vmatpush1.msk.msra.mxu1 %vm67_vm0, %v22628_v37  ;;  %10698 = vmatprep.mubr.f32.mxu1 %v22524_v49  ;;  %v22672_v37 = vld [vmem:[#allocation81_spill] sm:$0xff] }
 0x188   :  { %18763 = vmatpush1.msk.msra.mxu0 %vm67_vm0, %v22629_v38  ;;  %10911 = vmatprep.mubr.f32.mxu0 %v22524_v49  ;;  %v22673_v38 = vld [vmem:[#allocation82_spill] sm:$0xff] }
 0x189   :  { %18755 = vmatmul.mubr.msk.f32.vlgmr.msra.gmra.mrb[32].mxu1 %vm64_vm1, %v22614_v23  ;;  %18764 = vmatmul.mubr.msk.f32.vlgmr.msra.gmra.mrb[20].mxu0 %vm64_vm1, %v22614_v23 }
 0x18a   :  { %18759 = vmatprep.subr.msk.mxu1 %vm67_vm0, %v22630_v39  ;;  %18768 = vmatprep.subr.msk.mxu0 %vm67_vm0, %v22631_v40 }
 0x18b   :  { %18760 = vmatpush1.msk.msra.mxu1 %vm67_vm0, %v22632_v41  ;;  %10840 = vmatprep.mubr.f32.mxu1 %v22524_v49 }
 0x18c   :  { %18769 = vmatpush1.msk.msra.mxu0 %vm67_vm0, %v22633_v42  ;;  %11053 = vmatprep.mubr.f32.mxu0 %v22524_v49  ;;  %v12904_v42 = vld [vmem:[%s22401_s0 + $0x20] sm:$0xff] }
 0x18d   :  { %18761 = vmatmul.mubr.msk.f32.vlgmr.msra.gmra.mrb[34].mxu1 %vm64_vm1, %v22614_v23  ;;  %18770 = vmatmul.mubr.msk.f32.vlgmr.msra.gmra.mrb[22].mxu0 %vm64_vm1, %v22614_v23 }
 0x18e   :  { %18765 = vmatprep.subr.msk.mxu1 %vm67_vm0, %v22634_v43  ;;  %18773 = vmatprep.subr.msk.mxu0 %vm67_vm0, %v22635_v47  ;;  %v12907_v43 = vld [vmem:[%s22401_s0 + $0x38] sm:$0xff] }
 0x18f   :  { %18766 = vmatpush1.msk.msra.mxu1 %vm67_vm0, %v22636_v17  ;;  %10982 = vmatprep.mubr.f32.mxu1 %v22524_v49  ;;  %v12931_v47 = vcombine.high %v12907_v43, %v12907_v43  ;;  %v12906_v17 = vld [vmem:[%s22401_s0 + $0x30] sm:$0xff] }
 0x190   :  { %v2821_v18 = vpop.f32.mrb[16].mxu1  ;;  %18774 = vmatpush1.msk.msra.mxu0 %vm67_vm0, %v22637_v53  ;;  %11217 = vmatprep.mubr.f32.mxu0 %v22524_v49  ;;  %v12930_v53 = vcombine.high %v12906_v17, %v12906_v17 }
 0x191   :  { %v2847_v56 = vadd.f32 %v2821_v18, %v1884_v21  ;;  %v19094_v57 = vpop.f32.mrb[17].mxu1  ;;  %18767 = vmatmul.mubr.msk.f32.vlgmr.msra.gmra.mrb[36].mxu1 %vm64_vm1, %v22614_v23  ;;  %18775 = vmatmul.mubr.msk.f32.vlgmr.msra.gmra.mrb[12].mxu0 %vm64_vm1, %v22638_v58  ;;  %v22658_v21 = vld [vmem:[#allocation70_spill] sm:$0xff]  ;;  %v12909_v18 = vld [vmem:[%s22401_s0 + $0x48] sm:$0xff] }
 0x192   :  { %19135 = vmatprep.subr.mxu1 %v22524_v49  ;;  %18779 = vmatprep.subr.msk.mxu0 %vm67_vm0, %v22639_v59  ;;  %v12908_v57 = vld [vmem:[%s22401_s0 + $0x40] sm:$0xff] }
 0x193   :  { %19136 = vmatpush3.msk.msra.mxu1 %vm67_vm0, %v22640_v62  ;;  %19137 = vmatprep.mubr.msk.f32.mxu1 %vm19677_vm2, %v22524_v49  ;;  %v12932_v59 = vcombine.high %v12908_v57, %v12908_v57 }
 0x194   :  { %18780 = vmatpush1.msk.msra.mxu0 %vm67_vm0, %v22641_v63  ;;  %11359 = vmatprep.mubr.f32.mxu0 %v22524_v49  ;;  %v12910_v63 = vld [vmem:[%s22401_s0 + $0x50] sm:$0xff] }
 0x195   :  { %19138 = vmatmul.mubr.msk.f32.vlgmr.msra.gmra.mrb[44].mxu1 %vm64_vm1, %v22614_v23  ;;  %18781 = vmatmul.mubr.msk.f32.vlgmr.msra.gmra.mrb[14].mxu0 %vm64_vm1, %v22638_v58  ;;  %v22659_v23 = vld [vmem:[#allocation71_spill] sm:$0xff] }
 0x196   :  { %18776 = vmatprep.subr.msk.mxu1 %vm67_vm0, %v22642_v1  ;;  %18785 = vmatprep.subr.msk.mxu0 %vm67_vm0, %v22643_v3  ;;  %v13856_v1 = vld [vmem:[%s22401_s0 + $0x6c] sm:$0xff]  ;;  %v12934_v3 = vcombine.high %v12910_v63, %v12910_v63 }
 0x197   :  { %18777 = vmatpush1.msk.msra.mxu1 %vm67_vm0, %v22644_v4  ;;  %11288 = vmatprep.mubr.f32.mxu1 %v22524_v49  ;;  %v13880_v4 = vcombine.high %v13856_v1, %v13856_v1 }
 0x198   :  { %18786 = vmatpush1.msk.msra.mxu0 %vm67_vm0, %v22645_v5  ;;  %11501 = vmatprep.mubr.f32.mxu0 %v22524_v49  ;;  %v13858_v5 = vld [vmem:[%s22401_s0 + $0x7c] sm:$0xff] }
 0x199   :  { %18778 = vmatmul.mubr.msk.f32.vlgmr.msra.gmra.mrb[28].mxu1 %vm64_vm1, %v22638_v58  ;;  %18787 = vmatmul.mubr.msk.f32.vlgmr.msra.gmra.mrb[16].mxu0 %vm64_vm1, %v22638_v58 }
 0x19a   :  { %18782 = vmatprep.subr.msk.mxu1 %vm67_vm0, %v22646_v6  ;;  %18791 = vmatprep.subr.msk.mxu0 %vm67_vm0, %v22647_v7  ;;  %v13882_v6 = vcombine.high %v13858_v5, %v13858_v5  ;;  %v13857_v7 = vld [vmem:[%s22401_s0 + $0x74] sm:$0xff] }
 0x19b   :  { %18783 = vmatpush1.msk.msra.mxu1 %vm67_vm0, %v22648_v0  ;;  %11430 = vmatprep.mubr.f32.mxu1 %v22524_v49  ;;  %v13860_v0 = vld [vmem:[%s22401_s0 + $0x8c] sm:$0xff] }
 0x19c   :  { %18792 = vmatpush1.msk.msra.mxu0 %vm67_vm0, %v22649_v8  ;;  %11643 = vmatprep.mubr.f32.mxu0 %v22524_v49 }
 0x19d   :  { %18784 = vmatmul.mubr.msk.f32.vlgmr.msra.gmra.mrb[30].mxu1 %vm64_vm1, %v22638_v58  ;;  %18793 = vmatmul.mubr.msk.f32.vlgmr.msra.gmra.mrb[18].mxu0 %vm64_vm1, %v22638_v58 }
 0x19e   :  { %18788 = vmatprep.subr.msk.mxu1 %vm67_vm0, %v22650_v9  ;;  %18797 = vmatprep.subr.msk.mxu0 %vm67_vm0, %v22651_v10  ;;  %v12912_v9 = vld [vmem:[%s22401_s0 + $0x60] sm:$0xf] }
 0x19f   :  { %18789 = vmatpush1.msk.msra.mxu1 %vm67_vm0, %v22652_v11  ;;  %11572 = vmatprep.mubr.f32.mxu1 %v22524_v49 }
 0x1a0   :  { %18798 = vmatpush1.msk.msra.mxu0 %vm67_vm0, %v22653_v12  ;;  %11785 = vmatprep.mubr.f32.mxu0 %v22524_v49  ;;  %v13881_v12 = vcombine.high %v13857_v7, %v13857_v7 }
 0x1a1   :  { %18790 = vmatmul.mubr.msk.f32.vlgmr.msra.gmra.mrb[32].mxu1 %vm64_vm1, %v22638_v58  ;;  %18799 = vmatmul.mubr.msk.f32.vlgmr.msra.gmra.mrb[20].mxu0 %vm64_vm1, %v22638_v58 }
 0x1a2   :  { %18794 = vmatprep.subr.msk.mxu1 %vm67_vm0, %v22654_v13  ;;  %18803 = vmatprep.subr.msk.mxu0 %vm67_vm0, %v22655_v15  ;;  %v13884_v13 = vcombine.high %v13860_v0, %v13860_v0  ;;  %v13859_v15 = vld [vmem:[%s22401_s0 + $0x84] sm:$0xff] }
 0x1a3   :  { %18795 = vmatpush1.msk.msra.mxu1 %vm67_vm0, %v22656_v19  ;;  %11714 = vmatprep.mubr.f32.mxu1 %v22524_v49  ;;  %v13862_v19 = vld [vmem:[%s22401_s0 + $0x9c] sm:$0xff] }
 0x1a4   :  { %18804 = vmatpush1.msk.msra.mxu0 %vm67_vm0, %v22657_v20  ;;  %11927 = vmatprep.mubr.f32.mxu0 %v22524_v49  ;;  %v13883_v20 = vcombine.high %v13859_v15, %v13859_v15 }
 0x1a5   :  { %18796 = vmatmul.mubr.msk.f32.vlgmr.msra.gmra.mrb[34].mxu1 %vm64_vm1, %v22638_v58  ;;  %18805 = vmatmul.mubr.msk.f32.vlgmr.msra.gmra.mrb[22].mxu0 %vm64_vm1, %v22638_v58 }
 0x1a6   :  { %18800 = vmatprep.subr.msk.mxu1 %vm67_vm0, %v22658_v21  ;;  %18808 = vmatprep.subr.msk.mxu0 %vm67_vm0, %v22659_v23  ;;  %v13886_v21 = vcombine.high %v13862_v19, %v13862_v19  ;;  %v13861_v23 = vld [vmem:[%s22401_s0 + $0x94] sm:$0xff] }
 0x1a7   :  { %18801 = vmatpush1.msk.msra.mxu1 %vm67_vm0, %v22660_v24  ;;  %11856 = vmatprep.mubr.f32.mxu1 %v22524_v49  ;;  %v13864_v24 = vld [vmem:[%s22401_s0 + $0xac] sm:$0xff] }
 0x1a8   :  { %v3782_v25 = vpop.f32.mrb[18].mxu1  ;;  %18809 = vmatpush1.msk.msra.mxu0 %vm67_vm0, %v22661_v26  ;;  %12091 = vmatprep.mubr.f32.mxu0 %v22524_v49  ;;  %v13888_v26 = vcombine.high %v13864_v24, %v13864_v24 }
 0x1a9   :  { %v3808_v27 = vadd.f32 %v3782_v25, %v2847_v56  ;;  %v19099_v28 = vpop.f32.mrb[19].mxu1  ;;  %18802 = vmatmul.mubr.msk.f32.vlgmr.msra.gmra.mrb[36].mxu1 %vm64_vm1, %v22638_v58  ;;  %18810 = vmatmul.mubr.msk.f32.vlgmr.msra.gmra.mrb[12].mxu0 %vm64_vm1, %v22662_v29  ;;  %v12933_v56 = vcombine.high %v12909_v18, %v12909_v18  ;;  %v13885_v25 = vcombine.high %v13861_v23, %v13861_v23 }
 0x1aa   :  { %19140 = vmatprep.subr.mxu1 %v22524_v49  ;;  %18814 = vmatprep.subr.msk.mxu0 %vm67_vm0, %v22663_v30  ;;  %v13866_v28 = vld [vmem:[%s22401_s0 + $0xbc] sm:$0xff] }
 0x1ab   :  { %19141 = vmatpush3.msk.msra.mxu1 %vm67_vm0, %v22664_v31  ;;  %19142 = vmatprep.mubr.msk.f32.mxu1 %vm19677_vm2, %v22524_v49  ;;  %v13890_v30 = vcombine.high %v13866_v28, %v13866_v28  ;;  %v13865_v31 = vld [vmem:[%s22401_s0 + $0xb4] sm:$0xff] }
 0x1ac   :  { %18815 = vmatpush1.msk.msra.mxu0 %vm67_vm0, %v20852_v50  ;;  %12233 = vmatprep.mubr.f32.mxu0 %v22524_v49  ;;  %v22668_v50 = vld [vmem:[#allocation74_spill] sm:$0xff] }
 0x1ad   :  { %19143 = vmatmul.mubr.msk.f32.vlgmr.msra.gmra.mrb[46].mxu1 %vm64_vm1, %v22638_v58  ;;  %18816 = vmatmul.mubr.msk.f32.vlgmr.msra.gmra.mrb[14].mxu0 %vm64_vm1, %v22662_v29  ;;  %v12911_v58 = vld [vmem:[%s22401_s0 + $0x58] sm:$0xff] }
 0x1ae   :  { %18811 = vmatprep.subr.msk.mxu1 %vm67_vm0, %v22665_v60  ;;  %18820 = vmatprep.subr.msk.mxu0 %vm67_vm0, %v22666_v32  ;;  %v12935_v62 = vcombine.high %v12911_v58, %v12911_v58  ;;  %v13889_v60 = vcombine.high %v13865_v31, %v13865_v31 }
 0x1af   :  { %18812 = vmatpush1.msk.msra.mxu1 %vm67_vm0, %v22667_v33  ;;  %12162 = vmatprep.mubr.f32.mxu1 %v22524_v49  ;;  %v21757_v33 = vld [vmem:[%s22400_s1 + $0x4] sm:$0xff] }
 0x1b0   :  { %18821 = vmatpush1.msk.msra.mxu0 %vm67_vm0, %v22668_v50  ;;  %12375 = vmatprep.mubr.f32.mxu0 %v22524_v49 }
 0x1b1   :  { %18813 = vmatmul.mubr.msk.f32.vlgmr.msra.gmra.mrb[28].mxu1 %vm64_vm1, %v22662_v29  ;;  %18822 = vmatmul.mubr.msk.f32.vlgmr.msra.gmra.mrb[16].mxu0 %vm64_vm1, %v22662_v29 }
 0x1b2   :  { %18817 = vmatprep.subr.msk.mxu1 %vm67_vm0, %v22669_v34  ;;  %18826 = vmatprep.subr.msk.mxu0 %vm67_vm0, %v22670_v35 }
 0x1b3   :  { %18818 = vmatpush1.msk.msra.mxu1 %vm67_vm0, %v22671_v36  ;;  %12304 = vmatprep.mubr.f32.mxu1 %v22524_v49 }
 0x1b4   :  { %18827 = vmatpush1.msk.msra.mxu0 %vm67_vm0, %v20918_v54  ;;  %12517 = vmatprep.mubr.f32.mxu0 %v22524_v49  ;;  %v12901_v54 = vld [vmem:[%s22401_s0 + $0x8] sm:$0xff] }
 0x1b5   :  { %18819 = vmatmul.mubr.msk.f32.vlgmr.msra.gmra.mrb[30].mxu1 %vm64_vm1, %v22662_v29  ;;  %18828 = vmatmul.mubr.msk.f32.vlgmr.msra.gmra.mrb[18].mxu0 %vm64_vm1, %v22662_v29 }
 0x1b6   :  { %18823 = vmatprep.subr.msk.mxu1 %vm67_vm0, %v22672_v37  ;;  %18832 = vmatprep.subr.msk.mxu0 %vm67_vm0, %v22673_v38 }
 0x1b7   :  { %18824 = vmatpush1.msk.msra.mxu1 %vm67_vm0, %v20946_v61  ;;  %12446 = vmatprep.mubr.f32.mxu1 %v22524_v49  ;;  %v12925_v61 = vcombine.high %v12901_v54, %v12901_v54 }
 0x1b8   :  { %18833 = vmatpush1.msk.msra.mxu0 %vm67_vm0, %v20951_v2  ;;  %12659 = vmatprep.mubr.f32.mxu0 %v22524_v49  ;;  %v12903_v2 = vld [vmem:[%s22401_s0 + $0x18] sm:$0xff] }
 0x1b9   :  { %18825 = vmatmul.mubr.msk.f32.vlgmr.msra.gmra.mrb[32].mxu1 %vm64_vm1, %v22662_v29  ;;  %18834 = vmatmul.mubr.msk.f32.vlgmr.msra.gmra.mrb[20].mxu0 %vm64_vm1, %v22662_v29 }
 0x1ba   :  { %18829 = vmatprep.subr.msk.mxu1 %vm67_vm0, %v20997_v44  ;;  %18838 = vmatprep.subr.msk.mxu0 %vm67_vm0, %v21001_v52  ;;  %v12927_v44 = vcombine.high %v12903_v2, %v12903_v2 }
 0x1bb   :  { %18830 = vmatpush1.msk.msra.mxu1 %vm67_vm0, %v20978_v51  ;;  %12588 = vmatprep.mubr.f32.mxu1 %v22524_v49  ;;  %v12905_v51 = vld [vmem:[%s22401_s0 + $0x28] sm:$0xff] }
 0x1bc   :  { %18839 = vmatpush1.msk.msra.mxu0 %vm67_vm0, %v20983_v45  ;;  %12801 = vmatprep.mubr.f32.mxu0 %v22524_v49  ;;  %v12902_v45 = vld [vmem:[%s22401_s0 + $0x10] sm:$0xff]  ;;  %v12929_v41 = vcombine.high %v12905_v51, %v12905_v51 }
 0x1bd   :  { %18831 = vmatmul.mubr.msk.f32.vlgmr.msra.gmra.mrb[34].mxu1 %vm64_vm1, %v22662_v29  ;;  %18840 = vmatmul.mubr.msk.f32.vlgmr.msra.gmra.mrb[22].mxu0 %vm64_vm1, %v22662_v29  ;;  %v12926_v40 = vcombine.high %v12902_v45, %v12902_v45 }
 0x1be   :  { %18835 = vmatprep.subr.msk.mxu1 %vm67_vm0, %v21024_v48  ;;  %18843 = vmatprep.subr.msk.mxu0 %vm67_vm0, %v12925_v61 }
 0x1bf   :  { %18836 = vmatpush1.msk.msra.mxu1 %vm67_vm0, %v21010_v22  ;;  %12730 = vmatprep.mubr.f32.mxu1 %v22524_v49  ;;  %v22674_v22 = vld [vmem:[#allocation52_spill] sm:$0xff] }
 0x1c0   :  { %v4743_v52 = vpop.f32.mrb[20].mxu1  ;;  %18844 = vmatpush1.msk.msra.mxu0 %vm67_vm0, %v12901_v54  ;;  %13046 = vmatprep.mubr.f32.mxu0 %v22524_v49 }
 0x1c1   :  { %v21579_v48 = vadd.f32 %v4743_v52, %v3808_v27  ;;  %v19104_v39 = vpop.f32.mrb[21].mxu1  ;;  %18837 = vmatmul.mubr.msk.f32.vlgmr.msra.gmra.mrb[36].mxu1 %vm64_vm1, %v22662_v29  ;;  %18845 = vmatmul.mubr.msk.f32.vlgmr.msra.gmra.mrb[12].mxu0 %vm64_vm1, %v22674_v22  ;;  %v13863_v27 = vld [vmem:[%s22401_s0 + $0xa4] sm:$0xff] }
 0x1c2   :  { %19145 = vmatprep.subr.mxu1 %v22524_v49  ;;  %18849 = vmatprep.subr.msk.mxu0 %vm67_vm0, %v12927_v44 }
 0x1c3   :  { %19146 = vmatpush3.msk.msra.mxu1 %vm67_vm0, %v21053_v16  ;;  %19147 = vmatprep.mubr.msk.f32.mxu1 %vm19677_vm2, %v22524_v49  ;;  %v12928_v16 = vcombine.high %v12904_v42, %v12904_v42 }
 0x1c4   :  { %18850 = vmatpush1.msk.msra.mxu0 %vm67_vm0, %v12903_v2  ;;  %13188 = vmatprep.mubr.f32.mxu0 %v22524_v49 }
 0x1c5   :  { %19148 = vmatmul.mubr.msk.f32.vlgmr.msra.gmra.mrb[48].mxu1 %vm64_vm1, %v22662_v29  ;;  %18851 = vmatmul.mubr.msk.f32.vlgmr.msra.gmra.mrb[14].mxu0 %vm64_vm1, %v22674_v22  ;;  %v13887_v29 = vcombine.high %v13863_v27, %v13863_v27 }
 0x1c6   :  { %18846 = vmatprep.subr.msk.mxu1 %vm67_vm0, %v12926_v40  ;;  %18855 = vmatprep.subr.msk.mxu0 %vm67_vm0, %v12929_v41 }
 0x1c7   :  { %18847 = vmatpush1.msk.msra.mxu1 %vm67_vm0, %v12902_v45  ;;  %13117 = vmatprep.mubr.f32.mxu1 %v22524_v49 }
 0x1c8   :  { %18856 = vmatpush1.msk.msra.mxu0 %vm67_vm0, %v12905_v51  ;;  %13330 = vmatprep.mubr.f32.mxu0 %v22524_v49 }
 0x1c9   :  { %18848 = vmatmul.mubr.msk.f32.vlgmr.msra.gmra.mrb[28].mxu1 %vm64_vm1, %v22674_v22  ;;  %18857 = vmatmul.mubr.msk.f32.vlgmr.msra.gmra.mrb[16].mxu0 %vm64_vm1, %v22674_v22 }
 0x1ca   :  { %18852 = vmatprep.subr.msk.mxu1 %vm67_vm0, %v12928_v16  ;;  %18861 = vmatprep.subr.msk.mxu0 %vm67_vm0, %v12931_v47 }
 0x1cb   :  { %18853 = vmatpush1.msk.msra.mxu1 %vm67_vm0, %v12904_v42  ;;  %13259 = vmatprep.mubr.f32.mxu1 %v22524_v49 }
 0x1cc   :  { %18862 = vmatpush1.msk.msra.mxu0 %vm67_vm0, %v12907_v43  ;;  %13472 = vmatprep.mubr.f32.mxu0 %v22524_v49 }
 0x1cd   :  { %18854 = vmatmul.mubr.msk.f32.vlgmr.msra.gmra.mrb[30].mxu1 %vm64_vm1, %v22674_v22  ;;  %18863 = vmatmul.mubr.msk.f32.vlgmr.msra.gmra.mrb[18].mxu0 %vm64_vm1, %v22674_v22 }
 0x1ce   :  { %18858 = vmatprep.subr.msk.mxu1 %vm67_vm0, %v12930_v53  ;;  %18867 = vmatprep.subr.msk.mxu0 %vm67_vm0, %v12933_v56 }
 0x1cf   :  { %18859 = vmatpush1.msk.msra.mxu1 %vm67_vm0, %v12906_v17  ;;  %13401 = vmatprep.mubr.f32.mxu1 %v22524_v49 }
 0x1d0   :  { %18868 = vmatpush1.msk.msra.mxu0 %vm67_vm0, %v12909_v18  ;;  %13614 = vmatprep.mubr.f32.mxu0 %v22524_v49 }
 0x1d1   :  { %18860 = vmatmul.mubr.msk.f32.vlgmr.msra.gmra.mrb[32].mxu1 %vm64_vm1, %v22674_v22  ;;  %18869 = vmatmul.mubr.msk.f32.vlgmr.msra.gmra.mrb[20].mxu0 %vm64_vm1, %v22674_v22 }
 0x1d2   :  { %18864 = vmatprep.subr.msk.mxu1 %vm67_vm0, %v12932_v59  ;;  %18873 = vmatprep.subr.msk.mxu0 %vm67_vm0, %v12935_v62 }
 0x1d3   :  { %18865 = vmatpush1.msk.msra.mxu1 %vm67_vm0, %v12908_v57  ;;  %13543 = vmatprep.mubr.f32.mxu1 %v22524_v49 }
 0x1d4   :  { %18874 = vmatpush1.msk.msra.mxu0 %vm67_vm0, %v12911_v58  ;;  %13756 = vmatprep.mubr.f32.mxu0 %v22524_v49 }
 0x1d5   :  { %18866 = vmatmul.mubr.msk.f32.vlgmr.msra.gmra.mrb[34].mxu1 %vm64_vm1, %v22674_v22  ;;  %18875 = vmatmul.mubr.msk.f32.vlgmr.msra.gmra.mrb[22].mxu0 %vm64_vm1, %v22674_v22 }
 0x1d6   :  { %18870 = vmatprep.subr.msk.mxu1 %vm67_vm0, %v12934_v3  ;;  %18878 = vmatprep.subr.msk.mxu0 %vm67_vm0, %v13880_v4 }
 0x1d7   :  { %18871 = vmatpush1.msk.msra.mxu1 %vm67_vm0, %v12910_v63  ;;  %13685 = vmatprep.mubr.f32.mxu1 %v22524_v49 }
 0x1d8   :  { %v5704_v8 = vpop.f32.mrb[22].mxu1  ;;  %18879 = vmatpush1.msk.msra.mxu0 %vm67_vm0, %v13856_v1  ;;  %14001 = vmatprep.mubr.f32.mxu0 %v22524_v49 }
 0x1d9   :  { %v21680_v10 = vadd.f32 %v5704_v8, %v21579_v48  ;;  %v19109_v11 = vpop.f32.mrb[23].mxu1  ;;  %18872 = vmatmul.mubr.msk.f32.vlgmr.msra.gmra.mrb[36].mxu1 %vm64_vm1, %v22674_v22  ;;  %18880 = vmatmul.mubr.msk.f32.vlgmr.msra.gmra.mrb[12].mxu0 %vm64_vm1, %v20882_v46 }
 0x1da   :  { %19150 = vmatprep.subr.mxu1 %v22524_v49  ;;  %18884 = vmatprep.subr.msk.mxu0 %vm67_vm0, %v13882_v6  ;;  %v19679_v11 = vmov 16  }
 0x1db   :  { %19151 = vmatpush3.msk.msra.mxu1 %vm67_vm0, %v12912_v9  ;;  %19152 = vmatprep.mubr.msk.f32.mxu1 %vm19677_vm2, %v22524_v49 }
 0x1dc   :  { %18885 = vmatpush1.msk.msra.mxu0 %vm67_vm0, %v13858_v5  ;;  %14143 = vmatprep.mubr.f32.mxu0 %v22524_v49 }
 0x1dd   :  { %19153 = vmatmul.mubr.msk.f32.vlgmr.msra.gmra.mrb[50].mxu1 %vm64_vm1, %v22674_v22  ;;  %18886 = vmatmul.mubr.msk.f32.vlgmr.msra.gmra.mrb[14].mxu0 %vm64_vm1, %v20882_v46 }
 0x1de   :  { %18881 = vmatprep.subr.msk.mxu1 %vm67_vm0, %v13881_v12  ;;  %18890 = vmatprep.subr.msk.mxu0 %vm67_vm0, %v13884_v13 }
 0x1df   :  { %18882 = vmatpush1.msk.msra.mxu1 %vm67_vm0, %v13857_v7  ;;  %14072 = vmatprep.mubr.f32.mxu1 %v22524_v49 }
 0x1e0   :  { %18891 = vmatpush1.msk.msra.mxu0 %vm67_vm0, %v13860_v0  ;;  %14285 = vmatprep.mubr.f32.mxu0 %v22524_v49 }
 0x1e1   :  { %18883 = vmatmul.mubr.msk.f32.vlgmr.msra.gmra.mrb[28].mxu1 %vm64_vm1, %v20882_v46  ;;  %18892 = vmatmul.mubr.msk.f32.vlgmr.msra.gmra.mrb[16].mxu0 %vm64_vm1, %v20882_v46 }
 0x1e2   :  { %18887 = vmatprep.subr.msk.mxu1 %vm67_vm0, %v13883_v20  ;;  %18896 = vmatprep.subr.msk.mxu0 %vm67_vm0, %v13886_v21 }
 0x1e3   :  { %18888 = vmatpush1.msk.msra.mxu1 %vm67_vm0, %v13859_v15  ;;  %14214 = vmatprep.mubr.f32.mxu1 %v22524_v49 }
 0x1e4   :  { %18897 = vmatpush1.msk.msra.mxu0 %vm67_vm0, %v13862_v19  ;;  %14427 = vmatprep.mubr.f32.mxu0 %v22524_v49 }
 0x1e5   :  { %18889 = vmatmul.mubr.msk.f32.vlgmr.msra.gmra.mrb[30].mxu1 %vm64_vm1, %v20882_v46  ;;  %18898 = vmatmul.mubr.msk.f32.vlgmr.msra.gmra.mrb[18].mxu0 %vm64_vm1, %v20882_v46 }
 0x1e6   :  { %18893 = vmatprep.subr.msk.mxu1 %vm67_vm0, %v13885_v25  ;;  %18902 = vmatprep.subr.msk.mxu0 %vm67_vm0, %v13888_v26 }
 0x1e7   :  { %18894 = vmatpush1.msk.msra.mxu1 %vm67_vm0, %v13861_v23  ;;  %14356 = vmatprep.mubr.f32.mxu1 %v22524_v49 }
 0x1e8   :  { %18903 = vmatpush1.msk.msra.mxu0 %vm67_vm0, %v13864_v24  ;;  %14569 = vmatprep.mubr.f32.mxu0 %v22524_v49 }
 0x1e9   :  { %18895 = vmatmul.mubr.msk.f32.vlgmr.msra.gmra.mrb[32].mxu1 %vm64_vm1, %v20882_v46  ;;  %18904 = vmatmul.mubr.msk.f32.vlgmr.msra.gmra.mrb[20].mxu0 %vm64_vm1, %v20882_v46 }
 0x1ea   :  { %18899 = vmatprep.subr.msk.mxu1 %vm67_vm0, %v13887_v29  ;;  %18908 = vmatprep.subr.msk.mxu0 %vm67_vm0, %v13890_v30 }
 0x1eb   :  { %18900 = vmatpush1.msk.msra.mxu1 %vm67_vm0, %v13863_v27  ;;  %14498 = vmatprep.mubr.f32.mxu1 %v22524_v49 }
 0x1ec   :  { %v6845_v32 = vpop.f32.mrb[10].mxu0  ;;  %18909 = vmatpush1.msk.msra.mxu0 %vm67_vm0, %v13866_v28  ;;  %14711 = vmatprep.mubr.f32.mxu0 %v22524_v49 }
 0x1ed   :  { %v21760_v50 = vadd.f32 %v6845_v32, %v21139_v14  ;;  %v6847_v34 = vpop.f32.mrb[11].mxu0  ;;  %18901 = vmatmul.mubr.msk.f32.vlgmr.msra.gmra.mrb[34].mxu1 %vm64_vm1, %v20882_v46  ;;  %18910 = vmatmul.mubr.msk.f32.vlgmr.msra.gmra.mrb[22].mxu0 %vm64_vm1, %v20882_v46  ;;  %v13867_v14 = vld [vmem:[%s22401_s0 + $0xc4] sm:$0xf]  ;;  %v21835_v19 = vpop.permute.xlu1 %7654 }
 0x1ee   :  { %v21767_v35 = vadd.f32 %v6847_v34, %v21144_v55  ;;  %18905 = vmatprep.subr.msk.mxu1 %vm67_vm0, %v13889_v60  ;;  %14640 = vmatprep.mubr.f32.mxu1 %v22524_v49 }
 0x1ef   :  { %18906 = vmatpush1.msk.msra.mxu1 %vm67_vm0, %v13865_v31  ;;  %14859 = vrot.lane.b32.xlu0 %v21757_v33, %s19670_s13 }
 0x1f0   :  { %v6665_v36 = vpop.f32.mrb[24].mxu1  ;;  %v21777_v37 = vpop.f32.mrb[0].mxu0  ;;  %19155 = vmatprep.subr.mxu1 %v22524_v49  ;;  %16559 = vrot.lane.b32.xlu1 %v21757_v33, %s19672_s27 }
 0x1f1   :  { %v6691_v55 = vadd.f32 %v6665_v36, %v21680_v10  ;;  %v19114_v38 = vpop.f32.mrb[25].mxu1  ;;  %v21783_v54 = vpop.f32.mrb[1].mxu0  ;;  %18907 = vmatmul.mubr.msk.f32.vlgmr.msra.gmra.mrb[36].mxu1 %vm64_vm1, %v20882_v46  ;;  %14993 = vmatprep.mubr.f32.mxu0 %v22524_v49 }
 0x1f2   :  { %19156 = vmatpush3.msk.msra.mxu1 %vm67_vm0, %v13867_v14  ;;  %19157 = vmatprep.mubr.msk.f32.mxu1 %vm19677_vm2, %v22524_v49 }
 0x1f3   :  { %17369 = vrot.lane.b32.xlu0 %v21757_v33, %s19671_s20  ;;  %19552 = vset.pattern.permute.xlu1 %v19679_v11 }
 0x1f4   :  { %v21793_v61 = vpop.f32.mrb[2].mxu1  ;;  %v21795_v2 = vpop.f32.mrb[2].mxu0  ;;  %18181 = vperm.xlu1 %19552, %v21757_v33  }
 0x1f5   :  { %v21797_v44 = vpop.f32.mrb[3].mxu1  ;;  %v21799_v45 = vpop.f32.mrb[3].mxu0  ;;  %19158 = vmatmul.mubr.msk.f32.vlgmr.msra.gmra.mrb[52].mxu1 %vm64_vm1, %v20882_v46 }
 0x1f6   :  { %15064 = vmatprep.mubr.f32.mxu1 %v22524_v49 }
 0x1f8   :  { %v21804_v51 = vpop.f32.mrb[4].mxu1  ;;  %v21806_v52 = vpop.f32.mrb[4].mxu0 }
 0x1f9   :  { %v21808_v48 = vpop.f32.mrb[5].mxu1  ;;  %v21810_v39 = vpop.f32.mrb[5].mxu0 }
 0x1fc   :  { %v21812_v22 = vpop.f32.mrb[6].mxu1  ;;  %v21814_v40 = vpop.f32.mrb[6].mxu0 }
 0x1fd   :  { %v21816_v41 = vpop.f32.mrb[7].mxu1  ;;  %v21818_v42 = vpop.f32.mrb[7].mxu0 }
 0x200   :  { %v21820_v43 = vpop.f32.mrb[8].mxu1  ;;  %v21822_v46 = vpop.f32.mrb[8].mxu0 }
 0x201   :  { %v21824_v16 = vpop.f32.mrb[9].mxu1  ;;  %v21826_v47 = vpop.f32.mrb[9].mxu0 }
 0x204   :  { %v21828_v17 = vpop.f32.mrb[10].mxu1 }
 0x205   :  { %v21830_v18 = vpop.f32.mrb[11].mxu1 }
 0x208   :  { %v7626_v53 = vpop.f32.mrb[26].mxu1 }
 0x209   :  { %v21832_v56 = vadd.f32 %v7626_v53, %v6691_v55  ;;  %v19119_v57 = vpop.f32.mrb[27].mxu1 }
 0x220   :  { %v8550_v58 = vpop.f32.mrb[38].mxu1 }
 0x221   :  { %v19124_v59 = vpop.f32.mrb[39].mxu1 }
 0x238   :  { %v9401_v62 = vpop.f32.mrb[40].mxu1 }
 0x239   :  { %v9402_v63 = vadd.f32 %v9401_v62, %v8550_v58  ;;  %v19129_v1 = vpop.f32.mrb[41].mxu1 }
 0x250   :  { %v10252_v3 = vpop.f32.mrb[42].mxu1 }
 0x251   :  { %v10278_v4 = vadd.f32 %v10252_v3, %v9402_v63  ;;  %v19134_v5 = vpop.f32.mrb[43].mxu1 }
 0x261   :  { %v21841_v25 = vpop.permute.xlu0 %14859 }
 0x268   :  { %v11126_v6 = vpop.f32.mrb[44].mxu1 }
 0x269   :  { %v11152_v7 = vadd.f32 %v11126_v6, %v10278_v4  ;;  %v19139_v0 = vpop.f32.mrb[45].mxu1 }
 0x280   :  { %v12000_v8 = vpop.f32.mrb[46].mxu1 }
 0x281   :  { %v12026_v9 = vadd.f32 %v12000_v8, %v11152_v7  ;;  %v19144_v10 = vpop.f32.mrb[47].mxu1 }
 0x298   :  { %v12874_v12 = vpop.f32.mrb[48].mxu1 }
 0x299   :  { %v12900_v13 = vadd.f32 %v12874_v12, %v12026_v9  ;;  %v19149_v15 = vpop.f32.mrb[49].mxu1 }
 0x2ac   :  { %v14003_v20 = vpop.f32.mrb[12].mxu0 }
 0x2ad   :  { %v14811_v21 = vadd.f32 %v14003_v20, %v21835_v19  ;;  %v14005_v23 = vpop.f32.mrb[13].mxu0 }
 0x2ae   :  { %v21839_v24 = vadd.f32 %v14005_v23, %v21835_v19 }
 0x2af   :  { %v14834_v29 = vmax.f32 %v14811_v21, 0.0 }
 0x2b0   :  { %v22506_v26 = vmax.f32 %v21839_v24, 0.0  ;;  %v13829_v27 = vpop.f32.mrb[50].mxu1  ;;  %v14145_v28 = vpop.f32.mrb[14].mxu0 }
 0x2b1   :  { %v21844_v30 = vadd.f32 %v13829_v27, %v12900_v13  ;;  %v21847_v31 = vadd.f32 %v14145_v28, %v21835_v19  ;;  %v19154_v60 = vpop.f32.mrb[51].mxu1  ;;  %v14147_v32 = vpop.f32.mrb[15].mxu0 }
 0x2b2   :  { %v21850_v34 = vadd.f32 %v14147_v32, %v21835_v19  ;;  %18913 = vmatprep.subr.msk.mxu0 %vm67_vm0, %v22506_v26 }
 0x2b3   :  { %18914 = vmatpush1.msk.msra.mxu0 %vm67_vm0, %v14834_v29  ;;  %v22510_v38 = vmax.f32 %v21847_v31, 0.0 }
 0x2b4   :  { %v22496_v14 = vmax.f32 %v21850_v34, 0.0  ;;  %v14074_v36 = vpop.f32.mrb[28].mxu1  ;;  %v14287_v55 = vpop.f32.mrb[16].mxu0  ;;  %18915 = vmatmul.mubr.msk.f32.vlgmr.msra.gmra.mrb[24].mxu0 %vm64_vm1, %v21841_v25 }
 0x2b5   :  { %v21861_v53 = vadd.f32 %v14074_v36, %v21835_v19  ;;  %v21864_v57 = vadd.f32 %v14287_v55, %v21835_v19  ;;  %v14076_v58 = vpop.f32.mrb[29].mxu1  ;;  %v14289_v59 = vpop.f32.mrb[17].mxu0  ;;  %15135 = vmatprep.mubr.f32.mxu0 %v22524_v49 }
 0x2b6   :  { %v21868_v62 = vadd.f32 %v14076_v58, %v21835_v19  ;;  %v21871_v63 = vadd.f32 %v14289_v59, %v21835_v19  ;;  %18919 = vmatprep.subr.msk.mxu0 %vm67_vm0, %v22496_v14 }
 0x2b7   :  { %18920 = vmatpush1.msk.msra.mxu0 %vm67_vm0, %v22510_v38  ;;  %v22508_v6 = vmax.f32 %v21861_v53, 0.0  ;;  %v22507_v7 = vmax.f32 %v21864_v57, 0.0 }
 0x2b8   :  { %v22509_v1 = vmax.f32 %v21868_v62, 0.0  ;;  %v22491_v3 = vmax.f32 %v21871_v63, 0.0  ;;  %v14216_v4 = vpop.f32.mrb[30].mxu1  ;;  %v14429_v5 = vpop.f32.mrb[18].mxu0  ;;  %18921 = vmatmul.mubr.msk.f32.vlgmr.msra.gmra.mrb[26].mxu0 %vm64_vm1, %v21841_v25 }
 0x2b9   :  { %v21886_v0 = vadd.f32 %v14216_v4, %v21835_v19  ;;  %v21889_v8 = vadd.f32 %v14429_v5, %v21835_v19  ;;  %v14218_v9 = vpop.f32.mrb[31].mxu1  ;;  %v14431_v10 = vpop.f32.mrb[19].mxu0  ;;  %15277 = vmatprep.mubr.f32.mxu0 %v22524_v49 }
 0x2ba   :  { %v21893_v11 = vadd.f32 %v14218_v9, %v21835_v19  ;;  %v21896_v12 = vadd.f32 %v14431_v10, %v21835_v19  ;;  %18916 = vmatprep.subr.msk.mxu1 %vm67_vm0, %v22509_v1  ;;  %18925 = vmatprep.subr.msk.mxu0 %vm67_vm0, %v22491_v3 }
 0x2bb   :  { %18917 = vmatpush1.msk.msra.mxu1 %vm67_vm0, %v22508_v6  ;;  %18926 = vmatpush1.msk.msra.mxu0 %vm67_vm0, %v22507_v7  ;;  %v22502_v23 = vmax.f32 %v21886_v0, 0.0  ;;  %v22501_v27 = vmax.f32 %v21889_v8, 0.0  ;;  %v22118_v7 = vadd.f32 %v21835_v19, %v21818_v42 }
 0x2bc   :  { %v22503_v13 = vmax.f32 %v21893_v11, 0.0  ;;  %v22490_v15 = vmax.f32 %v21896_v12, 0.0  ;;  %v14358_v20 = vpop.f32.mrb[32].mxu1  ;;  %v14571_v21 = vpop.f32.mrb[20].mxu0  ;;  %18918 = vmatmul.mubr.msk.f32.vlgmr.msra.gmra.mrb[54].mxu1 %vm64_vm1, %v21841_v25  ;;  %18927 = vmatmul.mubr.msk.f32.vlgmr.msra.gmra.mrb[28].mxu0 %vm64_vm1, %v21841_v25 }
 0x2bd   :  { %v21919_v28 = vadd.f32 %v14358_v20, %v21835_v19  ;;  %v21922_v29 = vadd.f32 %v14571_v21, %v21835_v19  ;;  %v14360_v60 = vpop.f32.mrb[33].mxu1  ;;  %v14573_v32 = vpop.f32.mrb[21].mxu0  ;;  %15206 = vmatprep.mubr.f32.mxu1 %v22524_v49  ;;  %15419 = vmatprep.mubr.f32.mxu0 %v22524_v49  ;;  %v7697_v6 = vmax.f32 %v22118_v7, 0.0  ;;  %v22679_v7 = vmax.f32 %v21864_v57, 0.0 }
 0x2be   :  { %v21927_v36 = vadd.f32 %v14360_v60, %v21835_v19  ;;  %v21930_v55 = vadd.f32 %v14573_v32, %v21835_v19  ;;  %18922 = vmatprep.subr.msk.mxu1 %vm67_vm0, %v22503_v13  ;;  %18931 = vmatprep.subr.msk.mxu0 %vm67_vm0, %v22490_v15  ;;  %v22682_v57 = vmax.f32 %v21886_v0, 0.0 }
 0x2bf   :  { %18923 = vmatpush1.msk.msra.mxu1 %vm67_vm0, %v22502_v23  ;;  %18932 = vmatpush1.msk.msra.mxu0 %vm67_vm0, %v22501_v27  ;;  %v22494_v9 = vmax.f32 %v21919_v28, 0.0  ;;  %v22493_v10 = vmax.f32 %v21922_v29, 0.0  ;;  %v22041_v27 = vadd.f32 %v21835_v19, %v21808_v48 }
 0x2c0   :  { %v22495_v58 = vmax.f32 %v21927_v36, 0.0  ;;  %v22492_v59 = vmax.f32 %v21930_v55, 0.0  ;;  %v14500_v4 = vpop.f32.mrb[34].mxu1  ;;  %v14713_v5 = vpop.f32.mrb[22].mxu0  ;;  %18924 = vmatmul.mubr.msk.f32.vlgmr.msra.gmra.mrb[56].mxu1 %vm64_vm1, %v21841_v25  ;;  %18933 = vmatmul.mubr.msk.f32.vlgmr.msra.gmra.mrb[30].mxu0 %vm64_vm1, %v21841_v25  ;;  %v22685_v0 = vmax.f32 %v21927_v36, 0.0 }
 0x2c1   :  { %v21953_v20 = vadd.f32 %v14500_v4, %v21835_v19  ;;  %v21956_v21 = vadd.f32 %v14713_v5, %v21835_v19  ;;  %v14502_v60 = vpop.f32.mrb[35].mxu1  ;;  %v14715_v32 = vpop.f32.mrb[23].mxu0  ;;  %15348 = vmatprep.mubr.f32.mxu1 %v22524_v49  ;;  %15561 = vmatprep.mubr.f32.mxu0 %v22524_v49  ;;  %v21980_v4 = vadd.f32 %v21767_v35, %v21835_v19 }
 0x2c2   :  { %v21961_v15 = vadd.f32 %v14502_v60, %v21835_v19  ;;  %v21964_v3 = vadd.f32 %v14715_v32, %v21835_v19  ;;  %18928 = vmatprep.subr.msk.mxu1 %vm67_vm0, %v22495_v58  ;;  %18937 = vmatprep.subr.msk.mxu0 %vm67_vm0, %v22492_v59  ;;  %v21984_v5 = vadd.f32 %v21835_v19, %v21783_v54 }
 0x2c3   :  { %18929 = vmatpush1.msk.msra.mxu1 %vm67_vm0, %v22494_v9  ;;  %18938 = vmatpush1.msk.msra.mxu0 %vm67_vm0, %v22493_v10  ;;  %v7657_v10 = vadd.f32 %v21760_v50, %v21835_v19  ;;  %v22499_v35 = vmax.f32 %v21953_v20, 0.0  ;;  %v22500_v9 = vmax.f32 %v21956_v21, 0.0  ;;  %v22012_v50 = vadd.f32 %v21835_v19, %v21777_v37 }
 0x2c4   :  { %v22498_v60 = vmax.f32 %v21961_v15, 0.0  ;;  %v22497_v32 = vmax.f32 %v21964_v3, 0.0  ;;  %v14642_v59 = vpop.f32.mrb[36].mxu1  ;;  %18930 = vmatmul.mubr.msk.f32.vlgmr.msra.gmra.mrb[58].mxu1 %vm64_vm1, %v21841_v25  ;;  %18939 = vmatmul.mubr.msk.f32.vlgmr.msra.gmra.mrb[32].mxu0 %vm64_vm1, %v21841_v25  ;;  %v22028_v37 = vadd.f32 %v21835_v19, %v21793_v61  ;;  %v22691_v36 = vmax.f32 %v21956_v21, 0.0 }
 0x2c5   :  { %v21997_v54 = vadd.f32 %v14642_v59, %v21835_v19  ;;  %v14644_v58 = vpop.f32.mrb[37].mxu1  ;;  %15490 = vmatprep.mubr.f32.mxu1 %v22524_v49  ;;  %15703 = vmatprep.mubr.f32.mxu0 %v22524_v49  ;;  %v22016_v59 = vadd.f32 %v21835_v19, %v21797_v44  ;;  %v7684_v48 = vmax.f32 %v22012_v50, 0.0  ;;  %v16560_v50 = vpop.permute.xlu1 %16559 }
 0x2c6   :  { %v22002_v14 = vadd.f32 %v14644_v58, %v21835_v19  ;;  %18934 = vmatprep.subr.msk.mxu1 %vm67_vm0, %v22498_v60  ;;  %18943 = vmatprep.subr.msk.mxu0 %vm67_vm0, %v22497_v32  ;;  %v7681_v58 = vmax.f32 %v21980_v4, 0.0  ;;  %v7685_v32 = vmax.f32 %v21984_v5, 0.0 }
 0x2c7   :  { %18935 = vmatpush1.msk.msra.mxu1 %vm67_vm0, %v22499_v35  ;;  %18944 = vmatpush1.msk.msra.mxu0 %vm67_vm0, %v22500_v9  ;;  %v7680_v35 = vmax.f32 %v7657_v10, 0.0  ;;  %v22037_v9 = vadd.f32 %v21835_v19, %v21799_v45  ;;  %v22504_v61 = vmax.f32 %v21997_v54, 0.0  ;;  %v7683_v45 = vmax.f32 %v22016_v59, 0.0 }
 0x2c8   :  { %v22505_v60 = vmax.f32 %v22002_v14, 0.0  ;;  %v14784_v44 = vpop.f32.mrb[52].mxu1  ;;  %18936 = vmatmul.mubr.msk.f32.vlgmr.msra.gmra.mrb[60].mxu1 %vm64_vm1, %v21841_v25  ;;  %18945 = vmatmul.mubr.msk.f32.vlgmr.msra.gmra.mrb[34].mxu0 %vm64_vm1, %v21841_v25  ;;  %v22070_v10 = vadd.f32 %v21835_v19, %v21804_v51 }
 0x2c9   :  { %v22045_v23 = vadd.f32 %v14784_v44, %v21844_v30  ;;  %18946 = vmatprep.subr.msk.mxu0 %vm67_vm0, %v7681_v58  ;;  %v19159_v13 = vpop.f32.mrb[53].mxu1  ;;  %15632 = vmatprep.mubr.f32.mxu1 %v22524_v49  ;;  %v7682_v30 = vmax.f32 %v22028_v37, 0.0  ;;  %v7687_v44 = vmax.f32 %v22041_v27, 0.0  ;;  %v22676_v27 = vmax.f32 %v21847_v31, 0.0  ;;  %v22372_v5 = vpop.permute.xlu1 %18181 }
 0x2ca   :  { %18947 = vmatpush1.msk.msra.mxu0 %vm67_vm0, %v7680_v35  ;;  %18940 = vmatprep.subr.msk.mxu1 %vm67_vm0, %v22505_v60  ;;  %v22066_v13 = vadd.f32 %v21835_v19, %v21795_v2  ;;  %v7689_v35 = vmax.f32 %v22037_v9, 0.0  ;;  %v22083_v2 = vadd.f32 %v21835_v19, %v21816_v41  ;;  %v22106_v41 = vadd.f32 %v21835_v19, %v21806_v52 }
 0x2cb   :  { %18952 = vmatprep.subr.msk.mxu0 %vm67_vm0, %v7685_v32  ;;  %18941 = vmatpush1.msk.msra.mxu1 %vm67_vm0, %v22504_v61  ;;  %v22079_v61 = vadd.f32 %v21835_v19, %v21810_v39  ;;  %v7686_v39 = vmax.f32 %v22070_v10, 0.0  ;;  %v22122_v52 = vadd.f32 %v21835_v19, %v21824_v16  ;;  %v22142_v16 = vadd.f32 %v21835_v19, %v21814_v40 }
 0x2cc   :  { %15842 = vmatprep.mubr.f32.mxu0 %v22524_v49  ;;  %18942 = vmatmul.mubr.msk.f32.vlgmr.msra.gmra.mrb[62].mxu1 %vm64_vm1, %v21841_v25  ;;  %v7688_v51 = vmax.f32 %v22066_v13, 0.0  ;;  %v22110_v25 = vadd.f32 %v21835_v19, %v21812_v22  ;;  %v7691_v26 = vmax.f32 %v22083_v2, 0.0  ;;  %v7692_v22 = vmax.f32 %v22106_v41, 0.0 }
 0x2cd   :  { %18948 = vmatmul.mubr.msk.f32.vlgmr.msra.gmra.mrb[24].mxu0 %vm64_vm1, %v21757_v33  ;;  %18949 = vmatprep.subr.msk.mxu1 %vm67_vm0, %v7683_v45  ;;  %v7693_v60 = vmax.f32 %v22079_v61, 0.0  ;;  %v7671_v10 = vadd.f32 %v21835_v19, %v21820_v43  ;;  %v22511_v1 = vmax.f32 %v22122_v52, 0.0  ;;  %v22152_v41 = vadd.f32 %v21835_v19, %v21826_v47 }
 0x2ce   :  { %18953 = vmatpush1.msk.msra.mxu0 %vm67_vm0, %v7684_v48  ;;  %18950 = vmatpush1.msk.msra.mxu1 %vm67_vm0, %v7682_v30  ;;  %v7690_v42 = vmax.f32 %v22110_v25, 0.0  ;;  %v22156_v25 = vadd.f32 %v21835_v19, %v21830_v18  ;;  %v7696_v40 = vmax.f32 %v22142_v16, 0.0  ;;  %v7677_v47 = vadd.f32 %v21835_v19, %v21822_v46 }
 0x2cf   :  { %18958 = vmatprep.subr.msk.mxu0 %vm67_vm0, %v7689_v35  ;;  %18955 = vmatprep.subr.msk.mxu1 %vm67_vm0, %v7687_v44  ;;  %v7694_v43 = vmax.f32 %v7671_v10, 0.0  ;;  %v7675_v18 = vadd.f32 %v21835_v19, %v21828_v17  ;;  %v7701_v38 = vmax.f32 %v22152_v41, 0.0  ;;  %v22678_v31 = vmax.f32 %v21861_v53, 0.0 }
 0x2d0   :  { %15913 = vmatprep.mubr.f32.mxu1 %v22524_v49  ;;  %15984 = vmatprep.mubr.f32.mxu0 %v22524_v49  ;;  %v7700_v46 = vmax.f32 %v7677_v47, 0.0  ;;  %v22681_v53 = vmax.f32 %v21893_v11, 0.0  ;;  %v22687_v11 = vmax.f32 %v21922_v29, 0.0  ;;  %v22690_v29 = vmax.f32 %v21953_v20, 0.0 }
 0x2d1   :  { %18951 = vmatmul.mubr.msk.f32.vlgmr.msra.gmra.mrb[54].mxu1 %vm64_vm1, %v21757_v33  ;;  %18954 = vmatmul.mubr.msk.f32.vlgmr.msra.gmra.mrb[26].mxu0 %vm64_vm1, %v21757_v33  ;;  %v7698_v17 = vmax.f32 %v7675_v18, 0.0  ;;  %v22693_v9 = vmax.f32 %v22002_v14, 0.0  ;;  %v22694_v20 = vmax.f32 %v21997_v54, 0.0  ;;  %v22696_v14 = vmax.f32 %v21964_v3, 0.0 }
 0x2d2   :  { %18956 = vmatpush1.msk.msra.mxu1 %vm67_vm0, %v7686_v39  ;;  %18959 = vmatpush1.msk.msra.mxu0 %vm67_vm0, %v7688_v51 }
 0x2d3   :  { %18961 = vmatprep.subr.msk.mxu1 %vm67_vm0, %v7691_v26  ;;  %18964 = vmatprep.subr.msk.mxu0 %vm67_vm0, %v7693_v60 }
 0x2d4   :  { %16055 = vmatprep.mubr.f32.mxu1 %v22524_v49  ;;  %16126 = vmatprep.mubr.f32.mxu0 %v22524_v49 }
 0x2d5   :  { %18957 = vmatmul.mubr.msk.f32.vlgmr.msra.gmra.mrb[56].mxu1 %vm64_vm1, %v21757_v33  ;;  %18960 = vmatmul.mubr.msk.f32.vlgmr.msra.gmra.mrb[28].mxu0 %vm64_vm1, %v21757_v33 }
 0x2d6   :  { %18962 = vmatpush1.msk.msra.mxu1 %vm67_vm0, %v7690_v42  ;;  %18965 = vmatpush1.msk.msra.mxu0 %vm67_vm0, %v7692_v22 }
 0x2d7   :  { %18967 = vmatprep.subr.msk.mxu1 %vm67_vm0, %v22511_v1  ;;  %18970 = vmatprep.subr.msk.mxu0 %vm67_vm0, %v7697_v6  ;;  %v7699_v1 = vmax.f32 %v22156_v25, 0.0 }
 0x2d8   :  { %16197 = vmatprep.mubr.f32.mxu1 %v22524_v49  ;;  %16268 = vmatprep.mubr.f32.mxu0 %v22524_v49 }
 0x2d9   :  { %18963 = vmatmul.mubr.msk.f32.vlgmr.msra.gmra.mrb[58].mxu1 %vm64_vm1, %v21757_v33  ;;  %18966 = vmatmul.mubr.msk.f32.vlgmr.msra.gmra.mrb[30].mxu0 %vm64_vm1, %v21757_v33 }
 0x2da   :  { %18968 = vmatpush1.msk.msra.mxu1 %vm67_vm0, %v7694_v43  ;;  %18971 = vmatpush1.msk.msra.mxu0 %vm67_vm0, %v7696_v40 }
 0x2db   :  { %18973 = vmatprep.subr.msk.mxu1 %vm67_vm0, %v7699_v1  ;;  %18976 = vmatprep.subr.msk.mxu0 %vm67_vm0, %v7701_v38 }
 0x2dc   :  { %16339 = vmatprep.mubr.f32.mxu1 %v22524_v49  ;;  %16410 = vmatprep.mubr.f32.mxu0 %v22524_v49 }
 0x2dd   :  { %18969 = vmatmul.mubr.msk.f32.vlgmr.msra.gmra.mrb[60].mxu1 %vm64_vm1, %v21757_v33  ;;  %18972 = vmatmul.mubr.msk.f32.vlgmr.msra.gmra.mrb[32].mxu0 %vm64_vm1, %v21757_v33 }
 0x2de   :  { %18974 = vmatpush1.msk.msra.mxu1 %vm67_vm0, %v7698_v17  ;;  %18977 = vmatpush1.msk.msra.mxu0 %vm67_vm0, %v7700_v46 }
 0x2df   :  { %18979 = vmatprep.subr.msk.mxu0 %vm67_vm0, %v7682_v30  ;;  %18982 = vmatprep.subr.msk.mxu1 %vm67_vm0, %v7684_v48 }
 0x2e0   :  { %16481 = vmatprep.mubr.f32.mxu1 %v22524_v49  ;;  %16552 = vmatprep.mubr.f32.mxu0 %v22524_v49 }
 0x2e1   :  { %18975 = vmatmul.mubr.msk.f32.vlgmr.msra.gmra.mrb[62].mxu1 %vm64_vm1, %v21757_v33  ;;  %18978 = vmatmul.mubr.msk.f32.vlgmr.msra.gmra.mrb[34].mxu0 %vm64_vm1, %v21757_v33  ;;  %v7679_v33 = vadd.f32 %v21835_v19, %v21832_v56 }
 0x2e2   :  { %18980 = vmatpush1.msk.msra.mxu0 %vm67_vm0, %v7681_v58  ;;  %18983 = vmatpush1.msk.msra.mxu1 %vm67_vm0, %v7683_v45 }
 0x2e3   :  { %18985 = vmatprep.subr.msk.mxu0 %vm67_vm0, %v7686_v39  ;;  %18988 = vmatprep.subr.msk.mxu1 %vm67_vm0, %v7688_v51  ;;  %v7702_v56 = vmax.f32 %v7679_v33, 0.0 }
 0x2e4   :  { %16630 = vmatprep.mubr.f32.mxu0 %v22524_v49  ;;  %16701 = vmatprep.mubr.f32.mxu1 %v22524_v49 }
 0x2e5   :  { %18981 = vmatmul.mubr.msk.f32.vlgmr.msra.gmra.mrb[24].mxu0 %vm64_vm1, %v16560_v50  ;;  %18984 = vmatmul.mubr.msk.f32.vlgmr.msra.gmra.mrb[54].mxu1 %vm64_vm1, %v16560_v50 }
 0x2e6   :  { %18986 = vmatpush1.msk.msra.mxu0 %vm67_vm0, %v7685_v32  ;;  %18989 = vmatpush1.msk.msra.mxu1 %vm67_vm0, %v7687_v44 }
 0x2e7   :  { %18991 = vmatprep.subr.msk.mxu0 %vm67_vm0, %v7690_v42  ;;  %18994 = vmatprep.subr.msk.mxu1 %vm67_vm0, %v7692_v22 }
 0x2e8   :  { %16772 = vmatprep.mubr.f32.mxu0 %v22524_v49  ;;  %16843 = vmatprep.mubr.f32.mxu1 %v22524_v49 }
 0x2e9   :  { %18987 = vmatmul.mubr.msk.f32.vlgmr.msra.gmra.mrb[26].mxu0 %vm64_vm1, %v16560_v50  ;;  %18990 = vmatmul.mubr.msk.f32.vlgmr.msra.gmra.mrb[56].mxu1 %vm64_vm1, %v16560_v50 }
 0x2ea   :  { %18992 = vmatpush1.msk.msra.mxu0 %vm67_vm0, %v7689_v35  ;;  %18995 = vmatpush1.msk.msra.mxu1 %vm67_vm0, %v7691_v26  ;;  %v22675_v26 = vmax.f32 %v22122_v52, 0.0 }
 0x2eb   :  { %18997 = vmatprep.subr.msk.mxu0 %vm67_vm0, %v7694_v43  ;;  %19000 = vmatprep.subr.msk.mxu1 %vm67_vm0, %v7696_v40 }
 0x2ec   :  { %16914 = vmatprep.mubr.f32.mxu0 %v22524_v49  ;;  %16985 = vmatprep.mubr.f32.mxu1 %v22524_v49 }
 0x2ed   :  { %18993 = vmatmul.mubr.msk.f32.vlgmr.msra.gmra.mrb[28].mxu0 %vm64_vm1, %v16560_v50  ;;  %18996 = vmatmul.mubr.msk.f32.vlgmr.msra.gmra.mrb[58].mxu1 %vm64_vm1, %v16560_v50 }
 0x2ee   :  { %18998 = vmatpush1.msk.msra.mxu0 %vm67_vm0, %v7693_v60  ;;  %19001 = vmatpush1.msk.msra.mxu1 %vm67_vm0, %v22675_v26 }
 0x2ef   :  { %19003 = vmatprep.subr.msk.mxu0 %vm67_vm0, %v7698_v17  ;;  %19006 = vmatprep.subr.msk.mxu1 %vm67_vm0, %v7700_v46 }
 0x2f0   :  { %17056 = vmatprep.mubr.f32.mxu0 %v22524_v49  ;;  %17127 = vmatprep.mubr.f32.mxu1 %v22524_v49 }
 0x2f1   :  { %18999 = vmatmul.mubr.msk.f32.vlgmr.msra.gmra.mrb[30].mxu0 %vm64_vm1, %v16560_v50  ;;  %19002 = vmatmul.mubr.msk.f32.vlgmr.msra.gmra.mrb[60].mxu1 %vm64_vm1, %v16560_v50 }
 0x2f2   :  { %19004 = vmatpush1.msk.msra.mxu0 %vm67_vm0, %v7697_v6  ;;  %19007 = vmatpush1.msk.msra.mxu1 %vm67_vm0, %v7699_v1  ;;  %v22677_v1 = vmax.f32 %v21868_v62, 0.0  ;;  %v17370_v6 = vpop.permute.xlu0 %17369  ;;  %v22683_v62 = vmax.f32 %v21889_v8, 0.0  ;;  %v22686_v8 = vmax.f32 %v21919_v28, 0.0  ;;  %v22689_v28 = vmax.f32 %v21961_v15, 0.0 }
 0x2f3   :  { %19009 = vmatprep.subr.msk.mxu0 %vm67_vm0, %v7702_v56  ;;  %19015 = vmatprep.subr.msk.mxu1 %vm67_vm0, %v22676_v27  ;;  %v22692_v15 = vmax.f32 %v21896_v12, 0.0  ;;  %v22695_v12 = vmax.f32 %v21930_v55, 0.0  ;;  %v19680_v55 = vmov 8  }
 0x2f4   :  { %17198 = vmatprep.mubr.f32.mxu0 %v22524_v49  ;;  %17269 = vmatprep.mubr.f32.mxu1 %v22524_v49 }
 0x2f5   :  { %19005 = vmatmul.mubr.msk.f32.vlgmr.msra.gmra.mrb[32].mxu0 %vm64_vm1, %v16560_v50  ;;  %19008 = vmatmul.mubr.msk.f32.vlgmr.msra.gmra.mrb[62].mxu1 %vm64_vm1, %v16560_v50 }
 0x2f6   :  { %19010 = vmatpush1.msk.msra.mxu0 %vm67_vm0, %v7701_v38  ;;  %19016 = vmatpush1.msk.msra.mxu1 %vm67_vm0, %v22677_v1  ;;  %v22680_v38 = vmax.f32 %v21839_v24, 0.0  ;;  %v22684_v24 = vmax.f32 %v21850_v34, 0.0  ;;  %v22688_v34 = vmax.f32 %v21871_v63, 0.0  ;;  %v14833_v63 = vadd.f32 %v22045_v23, %v21835_v19  ;;  %v22369_v23 = vld [vmem:[%s22400_s1 + $0xc] sm:$0x3] }
 0x2f7   :  { %19012 = vmatprep.subr.msk.mxu0 %vm67_vm0, %v22678_v31  ;;  %19021 = vmatprep.subr.msk.mxu1 %vm67_vm0, %v22679_v7 }
 0x2f8   :  { %17340 = vmatprep.mubr.f32.mxu0 %v22524_v49  ;;  %17511 = vmatprep.mubr.f32.mxu1 %v22524_v49  ;;  %v14856_v19 = vmax.f32 %v14833_v63, 0.0 }
 0x2f9   :  { %19011 = vmatmul.mubr.msk.f32.vlgmr.msra.gmra.mrb[34].mxu0 %vm64_vm1, %v16560_v50  ;;  %19017 = vmatmul.mubr.msk.f32.vlgmr.msra.gmra.mrb[54].mxu1 %vm64_vm1, %v17370_v6 }
 0x2fa   :  { %19013 = vmatpush1.msk.msra.mxu0 %vm67_vm0, %v22680_v38  ;;  %19022 = vmatpush1.msk.msra.mxu1 %vm67_vm0, %v22681_v53 }
 0x2fb   :  { %19018 = vmatprep.subr.msk.mxu0 %vm67_vm0, %v22682_v57  ;;  %19027 = vmatprep.subr.msk.mxu1 %vm67_vm0, %v22683_v62 }
 0x2fc   :  { %17440 = vmatprep.mubr.f32.mxu0 %v22524_v49  ;;  %17653 = vmatprep.mubr.f32.mxu1 %v22524_v49 }
 0x2fd   :  { %19014 = vmatmul.mubr.msk.f32.vlgmr.msra.gmra.mrb[24].mxu0 %vm64_vm1, %v17370_v6  ;;  %19023 = vmatmul.mubr.msk.f32.vlgmr.msra.gmra.mrb[56].mxu1 %vm64_vm1, %v17370_v6 }
 0x2fe   :  { %19019 = vmatpush1.msk.msra.mxu0 %vm67_vm0, %v22684_v24  ;;  %19028 = vmatpush1.msk.msra.mxu1 %vm67_vm0, %v22685_v0 }
 0x2ff   :  { %19024 = vmatprep.subr.msk.mxu0 %vm67_vm0, %v22686_v8  ;;  %19033 = vmatprep.subr.msk.mxu1 %vm67_vm0, %v22687_v11 }
 0x300   :  { %17582 = vmatprep.mubr.f32.mxu0 %v22524_v49  ;;  %17795 = vmatprep.mubr.f32.mxu1 %v22524_v49 }
 0x301   :  { %19020 = vmatmul.mubr.msk.f32.vlgmr.msra.gmra.mrb[26].mxu0 %vm64_vm1, %v17370_v6  ;;  %19029 = vmatmul.mubr.msk.f32.vlgmr.msra.gmra.mrb[58].mxu1 %vm64_vm1, %v17370_v6 }
 0x302   :  { %19025 = vmatpush1.msk.msra.mxu0 %vm67_vm0, %v22688_v34  ;;  %19034 = vmatpush1.msk.msra.mxu1 %vm67_vm0, %v22689_v28 }
 0x303   :  { %19030 = vmatprep.subr.msk.mxu0 %vm67_vm0, %v22690_v29  ;;  %19039 = vmatprep.subr.msk.mxu1 %vm67_vm0, %v22691_v36 }
 0x304   :  { %17724 = vmatprep.mubr.f32.mxu0 %v22524_v49  ;;  %17937 = vmatprep.mubr.f32.mxu1 %v22524_v49 }
 0x305   :  { %19026 = vmatmul.mubr.msk.f32.vlgmr.msra.gmra.mrb[28].mxu0 %vm64_vm1, %v17370_v6  ;;  %19035 = vmatmul.mubr.msk.f32.vlgmr.msra.gmra.mrb[60].mxu1 %vm64_vm1, %v17370_v6 }
 0x306   :  { %19031 = vmatpush1.msk.msra.mxu0 %vm67_vm0, %v22692_v15  ;;  %19040 = vmatpush1.msk.msra.mxu1 %vm67_vm0, %v22693_v9 }
 0x307   :  { %19036 = vmatprep.subr.msk.mxu0 %vm67_vm0, %v22694_v20  ;;  %17866 = vmatprep.mubr.f32.mxu0 %v22524_v49 }
 0x308   :  { %18079 = vmatprep.mubr.f32.mxu1 %v22524_v49  ;;  %19160 = vmatprep.subr.mxu1 %v22524_v49 }
 0x309   :  { %19032 = vmatmul.mubr.msk.f32.vlgmr.msra.gmra.mrb[30].mxu0 %vm64_vm1, %v17370_v6  ;;  %19041 = vmatmul.mubr.msk.f32.vlgmr.msra.gmra.mrb[62].mxu1 %vm64_vm1, %v17370_v6 }
 0x30a   :  { %19037 = vmatpush1.msk.msra.mxu0 %vm67_vm0, %v22695_v12  ;;  %18008 = vmatprep.mubr.f32.mxu0 %v22524_v49 }
 0x30b   :  { %19042 = vmatprep.subr.msk.mxu0 %vm67_vm0, %v14856_v19  ;;  %19162 = vmatprep.mubr.msk.f32.mxu1 %vm19677_vm2, %v22524_v49 }
 0x30c   :  { %19553 = vset.pattern.permute.xlu0 %v19680_v55 }
 0x30d   :  { %19038 = vmatmul.mubr.msk.f32.vlgmr.msra.gmra.mrb[32].mxu0 %vm64_vm1, %v17370_v6  ;;  %18252 = vperm.xlu0 %19553, %v22369_v23  }
 0x30e   :  { %19043 = vmatpush1.msk.msra.mxu0 %vm67_vm0, %v22696_v14  ;;  %18150 = vmatprep.mubr.f32.mxu0 %v22524_v49 }
 0x311   :  { %19044 = vmatmul.mubr.msk.f32.vlgmr.msra.gmra.mrb[34].mxu0 %vm64_vm1, %v17370_v6 }
 0x3cc   :  { %v17513_v21 = vpop.f32.mrb[54].mxu1 }
 0x3cd   :  { %v17515_v4 = vpop.f32.mrb[55].mxu1  ;;  %v18186_v59 = vadd.f32 %v22372_v5, %v17513_v21 }
 0x3ce   :  { %v18187_v61 = vadd.f32 %v22372_v5, %v17515_v4 }
 0x3cf   :  { %v18208_v44 = vmax.f32 %v18186_v59, 0.0 }
 0x3d0   :  { %v17442_v3 = vpop.f32.mrb[24].mxu0  ;;  %v17655_v60 = vpop.f32.mrb[56].mxu1  ;;  %v18209_v39 = vmax.f32 %v18187_v61, 0.0 }
 0x3d1   :  { %v18184_v32 = vadd.f32 %v22372_v5, %v17442_v3  ;;  %v17444_v49 = vpop.f32.mrb[25].mxu0  ;;  %v17657_v54 = vpop.f32.mrb[57].mxu1  ;;  %v18190_v25 = vadd.f32 %v22372_v5, %v17655_v60 }
 0x3d2   :  { %v18185_v58 = vadd.f32 %v22372_v5, %v17444_v49  ;;  %v18191_v47 = vadd.f32 %v22372_v5, %v17657_v54 }
 0x3d3   :  { %v18206_v37 = vmax.f32 %v18184_v32, 0.0  ;;  %v18212_v56 = vmax.f32 %v18190_v25, 0.0  ;;  %v18253_v25 = vpop.permute.xlu0 %18252 }
 0x3d4   :  { %v18207_v45 = vmax.f32 %v18185_v58, 0.0  ;;  %v17584_v48 = vpop.f32.mrb[26].mxu0  ;;  %v17797_v30 = vpop.f32.mrb[58].mxu1  ;;  %v18213_v6 = vmax.f32 %v18191_v47, 0.0 }
 0x3d5   :  { %v17586_v13 = vpop.f32.mrb[27].mxu0  ;;  %v17799_v35 = vpop.f32.mrb[59].mxu1  ;;  %v18188_v51 = vadd.f32 %v22372_v5, %v17584_v48  ;;  %v18194_v57 = vadd.f32 %v22372_v5, %v17797_v30 }
 0x3d6   :  { %v18228_v2 = vadd.f32 %v18207_v45, %v18206_v37  ;;  %v18189_v22 = vadd.f32 %v22372_v5, %v17586_v13  ;;  %v18195_v0 = vadd.f32 %v22372_v5, %v17799_v35 }
 0x3d7   :  { %v18210_v40 = vmax.f32 %v18188_v51, 0.0  ;;  %v18216_v29 = vmax.f32 %v18194_v57, 0.0 }
 0x3d8   :  { %v18229_v52 = vadd.f32 %v18228_v2, %v18208_v44  ;;  %v17726_v42 = vpop.f32.mrb[28].mxu0  ;;  %v17939_v16 = vpop.f32.mrb[60].mxu1  ;;  %v18211_v46 = vmax.f32 %v18189_v22, 0.0  ;;  %v18217_v15 = vmax.f32 %v18195_v0, 0.0 }
 0x3d9   :  { %v17728_v10 = vpop.f32.mrb[29].mxu0  ;;  %v17941_v41 = vpop.f32.mrb[61].mxu1  ;;  %v18192_v1 = vadd.f32 %v22372_v5, %v17726_v42  ;;  %v18198_v19 = vadd.f32 %v22372_v5, %v17939_v16 }
 0x3da   :  { %v18230_v43 = vadd.f32 %v18229_v52, %v18209_v39  ;;  %v18193_v7 = vadd.f32 %v22372_v5, %v17728_v10  ;;  %v18199_v55 = vadd.f32 %v22372_v5, %v17941_v41 }
 0x3db   :  { %v18214_v62 = vmax.f32 %v18192_v1, 0.0  ;;  %v18220_v3 = vmax.f32 %v18198_v19, 0.0 }
 0x3dc   :  { %v18231_v18 = vadd.f32 %v18230_v43, %v18210_v40  ;;  %v17868_v17 = vpop.f32.mrb[30].mxu0  ;;  %v18081_v50 = vpop.f32.mrb[62].mxu1  ;;  %v18215_v11 = vmax.f32 %v18193_v7, 0.0  ;;  %v18221_v49 = vmax.f32 %v18199_v55, 0.0 }
 0x3dd   :  { %v17870_v33 = vpop.f32.mrb[31].mxu0  ;;  %v18083_v26 = vpop.f32.mrb[63].mxu1  ;;  %v18196_v63 = vadd.f32 %v22372_v5, %v17868_v17  ;;  %v18202_v58 = vadd.f32 %v22372_v5, %v18081_v50 }
 0x3de   :  { %v18232_v27 = vadd.f32 %v18231_v18, %v18211_v46  ;;  %v18197_v20 = vadd.f32 %v22372_v5, %v17870_v33  ;;  %v18203_v45 = vadd.f32 %v22372_v5, %v18083_v26 }
 0x3df   :  { %v18218_v12 = vmax.f32 %v18196_v63, 0.0  ;;  %v18224_v13 = vmax.f32 %v18202_v58, 0.0 }
 0x3e0   :  { %v18233_v31 = vadd.f32 %v18232_v27, %v18212_v56  ;;  %v18010_v38 = vpop.f32.mrb[32].mxu0  ;;  %v18219_v4 = vmax.f32 %v18197_v20, 0.0  ;;  %v18225_v2 = vmax.f32 %v18203_v45, 0.0 }
 0x3e1   :  { %v18012_v53 = vpop.f32.mrb[33].mxu0  ;;  %v18200_v32 = vadd.f32 %v22372_v5, %v18010_v38 }
 0x3e2   :  { %v18234_v24 = vadd.f32 %v18233_v31, %v18213_v6  ;;  %v18201_v59 = vadd.f32 %v22372_v5, %v18012_v53 }
 0x3e3   :  { %v18222_v37 = vmax.f32 %v18200_v32, 0.0 }
 0x3e4   :  { %v18235_v8 = vadd.f32 %v18234_v24, %v18214_v62  ;;  %v18152_v34 = vpop.f32.mrb[34].mxu0  ;;  %v18223_v30 = vmax.f32 %v18201_v59, 0.0 }
 0x3e5   :  { %v18154_v28 = vpop.f32.mrb[35].mxu0  ;;  %v18204_v44 = vadd.f32 %v22372_v5, %v18152_v34 }
 0x3e6   :  { %v18236_v36 = vadd.f32 %v18235_v8, %v18215_v11  ;;  %v18205_v39 = vadd.f32 %v22372_v5, %v18154_v28 }
 0x3e7   :  { %v18226_v52 = vmax.f32 %v18204_v44, 0.0 }
 0x3e8   :  { %v18237_v9 = vadd.f32 %v18236_v36, %v18216_v29  ;;  %v18227_v16 = vmax.f32 %v18205_v39, 0.0 }
 0x3ea   :  { %v18238_v14 = vadd.f32 %v18237_v9, %v18217_v15 }
 0x3ec   :  { %v18239_v21 = vadd.f32 %v18238_v14, %v18218_v12 }
 0x3ee   :  { %v18240_v60 = vadd.f32 %v18239_v21, %v18219_v4 }
 0x3f0   :  { %v18241_v54 = vadd.f32 %v18240_v60, %v18220_v3 }
 0x3f2   :  { %v18242_v61 = vadd.f32 %v18241_v54, %v18221_v49 }
 0x3f4   :  { %v18243_v48 = vadd.f32 %v18242_v61, %v18222_v37 }
 0x3f6   :  { %v18244_v35 = vadd.f32 %v18243_v48, %v18223_v30 }
 0x3f8   :  { %v18245_v51 = vadd.f32 %v18244_v35, %v18224_v13 }
 0x3fa   :  { %v18246_v22 = vadd.f32 %v18245_v51, %v18225_v2 }
 0x3fc   :  { %v18247_v42 = vadd.f32 %v18246_v22, %v18226_v52 }
 0x3fe   :  { %v18248_v10 = vadd.f32 %v18247_v42, %v18227_v16 }
 0x400   :  { %v18249_v41 = vmul.f32 0.045454547, %v18248_v10 }
 0x402   :  { %19161 = vmatpush3.msra.mxu1 %v18249_v41 }
 0x403   :  { %19163 = vmatmul.mubr.msk.f32.vlgmr.msra.gmra.mrb[64].mxu1 %vm18255_vm3, %v22369_v23 }
 0x4d6   :  { %v18324_v40 = vpop.f32.mrb[64].mxu1 }
 0x4d7   :  { %v18325_v43 = vadd.f32 %v18324_v40, %v18253_v25  ;;  %v19164_v47 = vpop.f32.mrb[65].mxu1 }
 0x4d9   :  { %v18329_v18 = vsel %vm18328_vm4, %v18325_v43, -inf }
 0x4da   :  { %v18330_v46 = vrot.slane %v18329_v18, 4 }
 0x4dc   :  { %v18331_v17 = vmax.f32 %v18329_v18, %v18330_v46 }
 0x4de   :  { %v18332_v50 = vrot.slane %v18331_v17, 2 }
 0x4e0   :  { %v18333_v5 = vmax.f32 %v18331_v17, %v18332_v50 }
 0x4e2   :  { %v18334_v33 = vrot.slane %v18333_v5, 1 }
 0x4e4   :  { %v18335_v26 = vmax.f32 %v18333_v5, %v18334_v33 }
 0x4e6   :  { %v18336_v56 = vsub.f32 %v18325_v43, %v18335_v26 }
 0x4e8   :  { %v18337_v27 = vmul.f32 1.442695, %v18336_v56 }
 0x4ea   :  { %19664 = vpow2.f32 %v18337_v27 }
 0x4f4   :  { %v19665_v1 = vpop.eup %19664 }
 0x4f5   :  { %v18339_v6 = vsel %vm18328_vm4, %v19665_v1, 0.0 }
 0x4f6   :  { %v18340_v31 = vrot.slane %v18339_v6, 4 }
 0x4f8   :  { %v18341_v7 = vadd.f32 %v18340_v31, %v18339_v6 }
 0x4fa   :  { %v18342_v23 = vrot.slane %v18341_v7, 2 }
 0x4fc   :  { %v18343_v38 = vadd.f32 %v18342_v23, %v18341_v7 }
 0x4fe   :  { %v18344_v53 = vrot.slane %v18343_v38, 1 }
 0x500   :  { %v18345_v57 = vadd.f32 %v18344_v53, %v18343_v38 }
 0x502   :  { %19666 = vrcp.f32 %v18345_v57 }
 0x50c   :  { %v19667_v62 = vpop.eup %19666 }
 0x50d   :  { %v18347_v24 = vmul.f32 %v19667_v62, %v19665_v1 }
 0x50f   :  { %18348 = vst [vmem:[%s22402_s2] sm:$0x3] %v18347_v24 }

</bundles_post_ra>
